<compile_context>
chip_gen: v6e
topology: v6e:2x2x1
jax: 0.10.0
libtpu: 0.0.40
codegen_flags: <defaults>
</compile_context>

<pallas_src>
import math
import functools

import jax
import jax.numpy as jnp
from jax import lax
from jax.experimental import pallas as pl
from jax.experimental.pallas import tpu as pltpu


VMEM_LIMIT = 32 * 1024 * 1024


# ------------------------------- helpers -----------------------------------

def _round_up(v, m):
    return ((v + m - 1) // m) * m


def _row_tiles(M):
    """Pick row padding / tile so blocks are legal and there are >=2 parallel steps."""
    Mp = _round_up(M, 16)
    if Mp <= 512:
        return Mp, Mp // 2              # 2 grid steps, both TensorCores busy on v7x
    tm = 128
    return _round_up(M, tm), tm


def _ln(x, g, b, eps=1e-5):
    mean = jnp.mean(x, axis=-1, keepdims=True)
    var = jnp.mean(jnp.square(x - mean), axis=-1, keepdims=True)
    return (x - mean) * lax.rsqrt(var + eps) * g + b


def _swish(x):
    return x * jax.nn.sigmoid(x)


def _bf(x):
    return x.astype(jnp.bfloat16)


def _bcast_spec(a):
    """Full-array block, same block for every grid step (weights / small vectors)."""
    return pl.BlockSpec(a.shape, lambda b, _n=a.ndim: (0,) * _n)


# ------------------------ generic matmul kernel -----------------------------
# Used only for the conv-subsampling stem and the input projection (once per forward).

def _matmul_kernel(x_ref, w_ref, b_ref, o_ref, *, activation):
    acc = jnp.dot(_bf(x_ref[...]), w_ref[...], preferred_element_type=jnp.float32)
    acc = acc + b_ref[...]
    if activation == "relu":
        acc = jnp.maximum(acc, 0.0)
    o_ref[...] = acc


def fused_matmul(x, w, b, *, activation=None):
    """out = act(x @ w + b); w is pre-transposed (K, N) bf16, accumulation in f32."""
    M, K = x.shape
    _, N = w.shape
    Mp, tm = _row_tiles(M)
    x_p = x if Mp == M else jnp.pad(x, ((0, Mp - M), (0, 0)))
    out = pl.pallas_call(
        functools.partial(_matmul_kernel, activation=activation),
        out_shape=jax.ShapeDtypeStruct((Mp, N), jnp.float32),
        grid=(Mp // tm,),
        in_specs=[pl.BlockSpec((tm, K), lambda i: (i, 0)),
                  pl.BlockSpec((K, N), lambda i: (0, 0)),
                  pl.BlockSpec((1, N), lambda i: (0, 0))],
        out_specs=pl.BlockSpec((tm, N), lambda i: (i, 0)),
        compiler_params=pltpu.CompilerParams(
            dimension_semantics=("parallel",), vmem_limit_bytes=VMEM_LIMIT),
    )(x_p, w, b.reshape(1, N))
    return out[:M] if Mp != M else out


# --------------------- Conformer block: fused kernels ------------------------

def _ff_block(x, g, b, w1, b1, w2, b2):
    """LayerNorm -> Linear -> Swish -> Linear, returning x + 0.5 * FF(x)."""
    xn = _ln(x, g, b)
    h = jnp.dot(_bf(xn), w1, preferred_element_type=jnp.float32) + b1
    h = _swish(h)
    y = jnp.dot(_bf(h), w2, preferred_element_type=jnp.float32) + b2
    return x + 0.5 * y


def _block_pre_kernel(x_ref,
                      f1g_ref, f1b_ref, f1w1_ref, f1b1_ref, f1w2_ref, f1b2_ref,
                      ag_ref, ab_ref, wqkv_ref, bqkv_ref, wp_ref, pe_ref, vb_ref,
                      x1_ref, qkv_ref, ps_ref, *, num_heads):
    D = x_ref.shape[-1]
    dh = D // num_heads

    x = x_ref[0]                                          # (T, D) f32

    # ---- FF1 (+ 0.5 * residual) ----
    x1 = _ff_block(x, f1g_ref[...], f1b_ref[...],
                   f1w1_ref[...], f1b1_ref[...], f1w2_ref[...], f1b2_ref[...])
    x1_ref[0] = x1

    # ---- attention LayerNorm + fused QKV projection ----
    an = _ln(x1, ag_ref[...], ab_ref[...])
    qkv = jnp.dot(_bf(an), wqkv_ref[...],
                  preferred_element_type=jnp.float32) + bqkv_ref[...]
    qkv_ref[0] = _bf(qkv)                                 # bf16 stream to post-kernel

    # ---- positional-embedding projection + per-head positional scores ----
    pe_proj = jnp.dot(_bf(pe_ref[...]), wp_ref[...],
                      preferred_element_type=jnp.float32)  # (T, D)
    q = qkv[:, :D]
    vb = vb_ref[...]                                       # (1, D) v-bias, f32
    for h in range(num_heads):
        sl = slice(h * dh, (h + 1) * dh)
        qh = _bf(q[:, sl] + vb[:, sl])                     # (T, dh)
        peh = _bf(pe_proj[:, sl])                          # (T, dh)
        ps_ref[0, h] = lax.dot_general(
            qh, peh, (((1,), (1,)), ((), ())),
            preferred_element_type=jnp.float32)            # (T, T)


def _block_post_kernel(x1_ref, qkv_ref, ps_ref, u_ref, wo_ref, bo_ref,
                       cg_ref, cb_ref, wpw1_ref, bpw1_ref, dw_ref, bns_ref, bnt_ref,
                       wpw2_ref, bpw2_ref,
                       f2g_ref, f2b_ref, f2w1_ref, f2b1_ref, f2w2_ref, f2b2_ref,
                       lg_ref, lb_ref, o_ref, *, num_heads, ksize, scale):
    T = x1_ref.shape[1]
    D = x1_ref.shape[2]
    dh = D // num_heads
    pad = (ksize - 1) // 2

    x1 = x1_ref[0]                                        # (T, D) f32
    qkv = qkv_ref[0]                                      # (T, 3D) bf16
    qf = qkv[:, :D].astype(jnp.float32)
    kpart = qkv[:, D:2 * D]
    vpart = qkv[:, 2 * D:]
    u = u_ref[...]                                        # (1, D)
    wo = wo_ref[...]                                      # (D, D) bf16

    # ---- content scores + softmax + P@V + out-projection (per head, lane slices) ----
    attn_out = jnp.zeros((T, D), jnp.float32)
    for h in range(num_heads):
        sl = slice(h * dh, (h + 1) * dh)
        qh = _bf(qf[:, sl] + u[:, sl])
        content = lax.dot_general(qh, kpart[:, sl], (((1,), (1,)), ((), ())),
                                  preferred_element_type=jnp.float32)   # (T, T)
        score = (content + ps_ref[0, h]) * scale
        m = jnp.max(score, axis=-1, keepdims=True)
        e = jnp.exp(score - m)
        attn = e * pl.reciprocal(jnp.sum(e, axis=-1, keepdims=True), approx=True)
        ctx_h = jnp.dot(_bf(attn), vpart[:, sl],
                        preferred_element_type=jnp.float32)             # (T, dh)
        attn_out = attn_out + jnp.dot(_bf(ctx_h), wo[sl, :],
                                      preferred_element_type=jnp.float32)
    x2 = x1 + attn_out + bo_ref[...]

    # ---- convolution module ----
    cn = _ln(x2, cg_ref[...], cb_ref[...])
    hg = jnp.dot(_bf(cn), wpw1_ref[...],
                 preferred_element_type=jnp.float32) + bpw1_ref[...]     # (T, 2D)
    hcv = hg[:, :D] * jax.nn.sigmoid(hg[:, D:])                          # GLU

    # depthwise conv (SAME padding) via banded selection matmuls (scratch-free,
    # fully aligned; for long T switch to pltpu.roll + edge masks).
    row = lax.broadcasted_iota(jnp.int32, (T, T), 0)
    col = lax.broadcasted_iota(jnp.int32, (T, T), 1)
    dw = dw_ref[...]                                                     # (K, D)
    acc = jnp.zeros((T, D), jnp.float32)
    for kk in range(ksize):
        sel = (col - row == (kk - pad)).astype(jnp.float32)              # (T, T)
        tap = jnp.dot(sel, hcv, preferred_element_type=jnp.float32)      # (T, D)
        acc = acc + tap * dw[kk:kk + 1, :]

    y = acc * bns_ref[...] + bnt_ref[...]            # folded BatchNorm1d (eval)
    y = _swish(y)
    cout = jnp.dot(_bf(y), wpw2_ref[...],
                   preferred_element_type=jnp.float32) + bpw2_ref[...]
    x3 = x2 + cout

    # ---- FF2 (+ 0.5 * residual) + final LayerNorm ----
    x4 = _ff_block(x3, f2g_ref[...], f2b_ref[...],
                   f2w1_ref[...], f2b1_ref[...], f2w2_ref[...], f2b2_ref[...])
    o_ref[0] = _ln(x4, lg_ref[...], lb_ref[...])


def relative_shift(pos_score):
    # TODO(synk): exact Transformer-XL relative shift stays as a tiny XLA pad/reshape
    # gather between the two per-block kernels (its row-mixing gather pattern is kept
    # in XLA rather than risking in-kernel strided-roll semantics).
    B, H, T1, T2 = pos_score.shape
    zeros = jnp.zeros((B, H, T1, 1), pos_score.dtype)
    padded = jnp.concatenate([zeros, pos_score], axis=-1)
    padded = padded.reshape(B, H, T2 + 1, T1)
    return padded[:, :, 1:].reshape(B, H, T1, T2)


def conformer_block(x, pe, p, num_heads, kernel_size):
    B, T, D = x.shape
    H = num_heads
    F = p["ff1"]["w1"].shape[1]
    a = p["attn"]
    c = p["conv"]
    f1 = p["ff1"]
    f2 = p["ff2"]

    batch3 = pl.BlockSpec((1, T, D), lambda b: (b, 0, 0))
    qkv_spec = pl.BlockSpec((1, T, 3 * D), lambda b: (b, 0, 0))
    score_spec = pl.BlockSpec((1, H, T, T), lambda b: (b, 0, 0, 0))

    # ---------------- pre-kernel: FF1 + LN + QKV + pos projection + pos scores ------
    pre_ins = [
        x,
        f1["ln_g"].reshape(1, D), f1["ln_b"].reshape(1, D),
        f1["w1"], f1["b1"].reshape(1, F), f1["w2"], f1["b2"].reshape(1, D),
        a["ln_g"].reshape(1, D), a["ln_b"].reshape(1, D),
        a["wqkv"], a["bqkv"].reshape(1, 3 * D),
        a["wp"], pe, a["v"].reshape(1, D),
    ]
    pre_specs = [batch3] + [_bcast_spec(t) for t in pre_ins[1:]]
    x1, qkv, pos_score = pl.pallas_call(
        functools.partial(_block_pre_kernel, num_heads=H),
        out_shape=(jax.ShapeDtypeStruct((B, T, D), jnp.float32),
                   jax.ShapeDtypeStruct((B, T, 3 * D), jnp.bfloat16),
                   jax.ShapeDtypeStruct((B, H, T, T), jnp.float32)),
        grid=(B,),
        in_specs=pre_specs,
        out_specs=(batch3, qkv_spec, score_spec),
        compiler_params=pltpu.CompilerParams(
            dimension_semantics=("parallel",), vmem_limit_bytes=VMEM_LIMIT),
    )(*pre_ins)

    pos_score = relative_shift(pos_score)

    # ----- post-kernel: attention core + out-proj + conv module + FF2 + final LN ----
    scale = 1.0 / math.sqrt(D)
    post_ins = [
        x1, qkv, pos_score,
        a["u"].reshape(1, D), a["wo"], a["bo"].reshape(1, D),
        c["ln_g"].reshape(1, D), c["ln_b"].reshape(1, D),
        c["pw1_w"], c["pw1_b"].reshape(1, 2 * D),
        c["dw_w"], c["bn_scale"].reshape(1, D), c["bn_shift"].reshape(1, D),
        c["pw2_w"], c["pw2_b"].reshape(1, D),
        f2["ln_g"].reshape(1, D), f2["ln_b"].reshape(1, D),
        f2["w1"], f2["b1"].reshape(1, F), f2["w2"], f2["b2"].reshape(1, D),
        p["ln_g"].reshape(1, D), p["ln_b"].reshape(1, D),
    ]
    post_specs = [batch3, qkv_spec, score_spec] + [_bcast_spec(t) for t in post_ins[3:]]
    out = pl.pallas_call(
        functools.partial(_block_post_kernel, num_heads=H,
                          ksize=kernel_size, scale=scale),
        out_shape=jax.ShapeDtypeStruct((B, T, D), jnp.float32),
        grid=(B,),
        in_specs=post_specs,
        out_specs=batch3,
        compiler_params=pltpu.CompilerParams(
            dimension_semantics=("parallel",), vmem_limit_bytes=VMEM_LIMIT),
    )(*post_ins)
    return out


# ------------------------------ model glue ----------------------------------

def positional_encoding(length, d_model):
    pos = jnp.arange(length, dtype=jnp.float32)[:, None]
    div = jnp.exp(jnp.arange(0, d_model, 2, dtype=jnp.float32)
                  * -(math.log(10000.0) / d_model))
    pe = jnp.zeros((length, d_model), jnp.float32)
    pe = pe.at[:, 0::2].set(jnp.sin(pos * div))
    pe = pe.at[:, 1::2].set(jnp.cos(pos * div))
    return pe


def im2col(x, k, stride):
    """x: (B, C, H, W) -> (B*Ho*Wo, C*k*k) patches, PyTorch weight-flatten order."""
    B, C, H, W = x.shape
    Ho = (H - k) // stride + 1
    Wo = (W - k) // stride + 1
    patches = []
    for di in range(k):
        for dj in range(k):
            patches.append(x[:, :,
                             di:di + stride * (Ho - 1) + 1:stride,
                             dj:dj + stride * (Wo - 1) + 1:stride])
    p = jnp.stack(patches, axis=2)                       # (B, C, k*k, Ho, Wo)
    p = p.transpose(0, 3, 4, 1, 2).reshape(B * Ho * Wo, C * k * k)
    return p, Ho, Wo


def conv_subsampling(x, p, E):
    B, T, F = x.shape
    h = x[:, None, :, :]                                 # (B, 1, T, F)
    patches, Ho, Wo = im2col(h, 3, 2)
    h = fused_matmul(patches, p["w1"], p["b1"], activation="relu")
    h = h.reshape(B, Ho, Wo, E).transpose(0, 3, 1, 2)    # (B, E, Ho, Wo)
    patches, Ho2, Wo2 = im2col(h, 3, 2)
    h = fused_matmul(patches, p["w2"], p["b2"], activation="relu")
    h = h.reshape(B, Ho2, Wo2, E).transpose(0, 1, 3, 2).reshape(B, Ho2, E * Wo2)
    return h


def conformer_encoder(x, input_lengths, params, num_heads, kernel_size):
    E = params["proj_b"].shape[0]
    h = conv_subsampling(x, params["sub"], E)
    B, T2, _ = h.shape
    out_lengths = (input_lengths >> 2) - 1
    h = fused_matmul(h.reshape(B * T2, -1), params["proj_w"],
                     params["proj_b"]).reshape(B, T2, E)
    pe = positional_encoding(T2, E)                      # hoisted: once per forward
    for lp in params["layers"]:
        h = conformer_block(h, pe, lp, num_heads, kernel_size)
    return h, out_lengths


# ----------------------------- parameter init --------------------------------
# Weights are generated directly in matmul-ready (in_dim, out_dim) layout and
# pre-cast to bf16 once (MXU operands); norm / bias / BN params stay f32.

def make_params(key, input_dim, E, num_layers, num_heads, ff_exp, kernel_size):
    keys = iter(jax.random.split(key, 256))

    def nrm(shape, scale=0.05):
        return jax.random.normal(next(keys), shape, jnp.float32) * scale

    def lin(k_in, k_out):
        return nrm((k_in, k_out)).astype(jnp.bfloat16)

    sub_dim = ((input_dim - 1) // 2 - 1) // 2
    ones = lambda n: jnp.ones((n,), jnp.float32)
    zeros = lambda n: jnp.zeros((n,), jnp.float32)

    def ff_params():
        return dict(ln_g=ones(E), ln_b=zeros(E),
                    w1=lin(E, ff_exp * E), b1=nrm((ff_exp * E,)),
                    w2=lin(ff_exp * E, E), b2=nrm((E,)))

    def attn_params():
        # q/k/v projections fused into one (E, 3E) weight; u/v biases flattened (H*dh,)
        return dict(ln_g=ones(E), ln_b=zeros(E),
                    wqkv=lin(E, 3 * E), bqkv=nrm((3 * E,)),
                    wp=lin(E, E),
                    u=nrm((E,)), v=nrm((E,)),
                    wo=lin(E, E), bo=nrm((E,)))

    def conv_params():
        # TODO(synk): Dropout is identity and BatchNorm1d uses freshly-initialized
        # running stats folded to a per-channel affine (eval-mode semantics).
        bn_g, bn_b, bn_rm, bn_rv = ones(E), zeros(E), zeros(E), ones(E)
        bn_scale = bn_g / jnp.sqrt(bn_rv + 1e-5)
        bn_shift = bn_b - bn_rm * bn_scale
        return dict(ln_g=ones(E), ln_b=zeros(E),
                    pw1_w=lin(E, 2 * E), pw1_b=nrm((2 * E,)),    # fused GLU value|gate
                    dw_w=nrm((kernel_size, E)),
                    bn_scale=bn_scale, bn_shift=bn_shift,
                    pw2_w=lin(E, E), pw2_b=nrm((E,)))

    layers = [dict(ff1=ff_params(), attn=attn_params(), conv=conv_params(),
                   ff2=ff_params(), ln_g=ones(E), ln_b=zeros(E))
              for _ in range(num_layers)]

    return dict(sub=dict(w1=lin(1 * 3 * 3, E), b1=nrm((E,)),
                         w2=lin(E * 3 * 3, E), b2=nrm((E,))),
                proj_w=lin(E * sub_dim, E), proj_b=nrm((E,)),
                layers=layers)


# ---------------------------------- main --------------------------------------

if __name__ == "__main__":
    INPUT_DIM, ENC_DIM, NUM_LAYERS, HEADS, FF_EXP, CONV_KS = 16, 32, 2, 4, 4, 7
    B, T = 2, 32

    key = jax.random.PRNGKey(0)
    kx, kp = jax.random.split(key)
    x = jax.random.normal(kx, (B, T, INPUT_DIM), jnp.float32)
    input_lengths = jnp.array([T, T - 4], jnp.int32)
    params = make_params(kp, INPUT_DIM, ENC_DIM, NUM_LAYERS, HEADS, FF_EXP, CONV_KS)

    fwd = jax.jit(functools.partial(conformer_encoder,
                                    num_heads=HEADS, kernel_size=CONV_KS))
    out, out_lengths = fwd(x, input_lengths, params)
    jax.block_until_ready((out, out_lengths))

    # T=32 -> two stride-2 convs -> 7 frames, feature dim = ENC_DIM
    assert out.shape == (B, 7, ENC_DIM), out.shape
    assert out_lengths.shape == (B,)
    assert bool(jnp.all(jnp.isfinite(out)))
    print("KERNEL_OK")
</pallas_src>

<mosaic_0001>
module attributes {stable_mosaic.version = 11 : i64} {
  func.func @_matmul_kernel(%arg0: i32, %arg1: memref<112x9xf32, #tpu.memory_space<vmem>>, %arg2: memref<9x32xbf16, #tpu.memory_space<vmem>>, %arg3: memref<1x32xf32, #tpu.memory_space<vmem>>, %arg4: memref<112x32xf32, #tpu.memory_space<vmem>>) attributes {dimension_semantics = [#tpu.dimension_semantics<parallel>], iteration_bounds = array<i64: 2>, scalar_prefetch = 0 : i64, scratch_operands = 0 : i64, tpu.core_type = #tpu.core_type<tc>, window_params = [{transform_indices = @transform_0, window_bounds = array<i64: 112, 9>}, {pipeline_mode = #tpu.pipeline_mode<synchronous>, transform_indices = @transform_1, window_bounds = array<i64: 9, 32>}, {pipeline_mode = #tpu.pipeline_mode<synchronous>, transform_indices = @transform_2, window_bounds = array<i64: 1, 32>}, {transform_indices = @transform_3, window_bounds = array<i64: 112, 32>}]} {
    %c0 = arith.constant 0 : index
    %c0_0 = arith.constant 0 : index
    %0 = vector.load %arg1[%c0, %c0_0] : memref<112x9xf32, #tpu.memory_space<vmem>>, vector<112x9xf32>
    %1 = arith.truncf %0 : vector<112x9xf32> to vector<112x9xbf16>
    %c0_1 = arith.constant 0 : index
    %c0_2 = arith.constant 0 : index
    %2 = vector.load %arg2[%c0_1, %c0_2] : memref<9x32xbf16, #tpu.memory_space<vmem>>, vector<9x32xbf16>
    %cst = arith.constant dense<0.000000e+00> : vector<112x32xf32>
    %3 = tpu.matmul %1, %2, %cst {dimension_numbers = #tpu.dot_dimension_numbers<[1], [0], [0], [1], [0, 0, 1, 1], [], []>} : vector<112x9xbf16>, vector<9x32xbf16>, vector<112x32xf32> -> vector<112x32xf32>
    %c0_3 = arith.constant 0 : index
    %c0_4 = arith.constant 0 : index
    %4 = vector.load %arg3[%c0_3, %c0_4] : memref<1x32xf32, #tpu.memory_space<vmem>>, vector<1x32xf32>
    %5 = vector.broadcast %4 : vector<1x32xf32> to vector<112x32xf32>
    %6 = arith.addf %3, %5 : vector<112x32xf32>
    %cst_5 = arith.constant 0.000000e+00 : f32
    %7 = vector.broadcast %cst_5 : f32 to vector<112x32xf32>
    %8 = arith.maximumf %6, %7 : vector<112x32xf32>
    %c0_6 = arith.constant 0 : index
    %c0_7 = arith.constant 0 : index
    %9 = vector.load %arg4[%c0_6, %c0_7] : memref<112x32xf32, #tpu.memory_space<vmem>>, vector<112x32xf32>
    tpu.vector_store %arg4[%c0_6, %c0_7], %8 {strides = array<i32>} : memref<112x32xf32, #tpu.memory_space<vmem>>, vector<112x32xf32>,
    return
  }
  func.func @transform_0(%arg0: i32) -> (i32, i32) {
    %c0_i32 = arith.constant 0 : i32
    %c0_i32_0 = arith.constant 0 : i32
    return %arg0, %c0_i32 : i32, i32
  }
  func.func @transform_1(%arg0: i32) -> (i32, i32) {
    %c0_i32 = arith.constant 0 : i32
    %c0_i32_0 = arith.constant 0 : i32
    %c0_i32_1 = arith.constant 0 : i32
    return %c0_i32, %c0_i32_0 : i32, i32
  }
  func.func @transform_2(%arg0: i32) -> (i32, i32) {
    %c0_i32 = arith.constant 0 : i32
    %c0_i32_0 = arith.constant 0 : i32
    %c0_i32_1 = arith.constant 0 : i32
    return %c0_i32, %c0_i32_0 : i32, i32
  }
  func.func @transform_3(%arg0: i32) -> (i32, i32) {
    %c0_i32 = arith.constant 0 : i32
    %c0_i32_0 = arith.constant 0 : i32
    return %arg0, %c0_i32 : i32, i32
  }
}

module attributes {stable_mosaic.version = 11 : i64} {
  func.func @_matmul_kernel(%arg0: i32, %arg1: memref<24x288xf32, #tpu.memory_space<vmem>>, %arg2: memref<288x32xbf16, #tpu.memory_space<vmem>>, %arg3: memref<1x32xf32, #tpu.memory_space<vmem>>, %arg4: memref<24x32xf32, #tpu.memory_space<vmem>>) attributes {dimension_semantics = [#tpu.dimension_semantics<parallel>], iteration_bounds = array<i64: 2>, scalar_prefetch = 0 : i64, scratch_operands = 0 : i64, tpu.core_type = #tpu.core_type<tc>, window_params = [{transform_indices = @transform_0, window_bounds = array<i64: 24, 288>}, {pipeline_mode = #tpu.pipeline_mode<synchronous>, transform_indices = @transform_1, window_bounds = array<i64: 288, 32>}, {pipeline_mode = #tpu.pipeline_mode<synchronous>, transform_indices = @transform_2, window_bounds = array<i64: 1, 32>}, {transform_indices = @transform_3, window_bounds = array<i64: 24, 32>}]} {
    %c0 = arith.constant 0 : index
    %c0_0 = arith.constant 0 : index
    %0 = vector.load %arg1[%c0, %c0_0] : memref<24x288xf32, #tpu.memory_space<vmem>>, vector<24x288xf32>
    %1 = arith.truncf %0 : vector<24x288xf32> to vector<24x288xbf16>
    %c0_1 = arith.constant 0 : index
    %c0_2 = arith.constant 0 : index
    %2 = vector.load %arg2[%c0_1, %c0_2] : memref<288x32xbf16, #tpu.memory_space<vmem>>, vector<288x32xbf16>
    %cst = arith.constant dense<0.000000e+00> : vector<24x32xf32>
    %3 = tpu.matmul %1, %2, %cst {dimension_numbers = #tpu.dot_dimension_numbers<[1], [0], [0], [1], [0, 0, 1, 1], [], []>} : vector<24x288xbf16>, vector<288x32xbf16>, vector<24x32xf32> -> vector<24x32xf32>
    %c0_3 = arith.constant 0 : index
    %c0_4 = arith.constant 0 : index
    %4 = vector.load %arg3[%c0_3, %c0_4] : memref<1x32xf32, #tpu.memory_space<vmem>>, vector<1x32xf32>
    %5 = vector.broadcast %4 : vector<1x32xf32> to vector<24x32xf32>
    %6 = arith.addf %3, %5 : vector<24x32xf32>
    %cst_5 = arith.constant 0.000000e+00 : f32
    %7 = vector.broadcast %cst_5 : f32 to vector<24x32xf32>
    %8 = arith.maximumf %6, %7 : vector<24x32xf32>
    %c0_6 = arith.constant 0 : index
    %c0_7 = arith.constant 0 : index
    %9 = vector.load %arg4[%c0_6, %c0_7] : memref<24x32xf32, #tpu.memory_space<vmem>>, vector<24x32xf32>
    tpu.vector_store %arg4[%c0_6, %c0_7], %8 {strides = array<i32>} : memref<24x32xf32, #tpu.memory_space<vmem>>, vector<24x32xf32>,
    return
  }
  func.func @transform_0(%arg0: i32) -> (i32, i32) {
    %c0_i32 = arith.constant 0 : i32
    %c0_i32_0 = arith.constant 0 : i32
    return %arg0, %c0_i32 : i32, i32
  }
  func.func @transform_1(%arg0: i32) -> (i32, i32) {
    %c0_i32 = arith.constant 0 : i32
    %c0_i32_0 = arith.constant 0 : i32
    %c0_i32_1 = arith.constant 0 : i32
    return %c0_i32, %c0_i32_0 : i32, i32
  }
  func.func @transform_2(%arg0: i32) -> (i32, i32) {
    %c0_i32 = arith.constant 0 : i32
    %c0_i32_0 = arith.constant 0 : i32
    %c0_i32_1 = arith.constant 0 : i32
    return %c0_i32, %c0_i32_0 : i32, i32
  }
  func.func @transform_3(%arg0: i32) -> (i32, i32) {
    %c0_i32 = arith.constant 0 : i32
    %c0_i32_0 = arith.constant 0 : i32
    return %arg0, %c0_i32 : i32, i32
  }
}

module attributes {stable_mosaic.version = 11 : i64} {
  func.func @_matmul_kernel(%arg0: i32, %arg1: memref<8x96xf32, #tpu.memory_space<vmem>>, %arg2: memref<96x32xbf16, #tpu.memory_space<vmem>>, %arg3: memref<1x32xf32, #tpu.memory_space<vmem>>, %arg4: memref<8x32xf32, #tpu.memory_space<vmem>>) attributes {dimension_semantics = [#tpu.dimension_semantics<parallel>], iteration_bounds = array<i64: 2>, scalar_prefetch = 0 : i64, scratch_operands = 0 : i64, tpu.core_type = #tpu.core_type<tc>, window_params = [{transform_indices = @transform_0, window_bounds = array<i64: 8, 96>}, {pipeline_mode = #tpu.pipeline_mode<synchronous>, transform_indices = @transform_1, window_bounds = array<i64: 96, 32>}, {pipeline_mode = #tpu.pipeline_mode<synchronous>, transform_indices = @transform_2, window_bounds = array<i64: 1, 32>}, {transform_indices = @transform_3, window_bounds = array<i64: 8, 32>}]} {
    %c0 = arith.constant 0 : index
    %c0_0 = arith.constant 0 : index
    %0 = vector.load %arg1[%c0, %c0_0] : memref<8x96xf32, #tpu.memory_space<vmem>>, vector<8x96xf32>
    %1 = arith.truncf %0 : vector<8x96xf32> to vector<8x96xbf16>
    %c0_1 = arith.constant 0 : index
    %c0_2 = arith.constant 0 : index
    %2 = vector.load %arg2[%c0_1, %c0_2] : memref<96x32xbf16, #tpu.memory_space<vmem>>, vector<96x32xbf16>
    %cst = arith.constant dense<0.000000e+00> : vector<8x32xf32>
    %3 = tpu.matmul %1, %2, %cst {dimension_numbers = #tpu.dot_dimension_numbers<[1], [0], [0], [1], [0, 0, 1, 1], [], []>} : vector<8x96xbf16>, vector<96x32xbf16>, vector<8x32xf32> -> vector<8x32xf32>
    %c0_3 = arith.constant 0 : index
    %c0_4 = arith.constant 0 : index
    %4 = vector.load %arg3[%c0_3, %c0_4] : memref<1x32xf32, #tpu.memory_space<vmem>>, vector<1x32xf32>
    %5 = vector.broadcast %4 : vector<1x32xf32> to vector<8x32xf32>
    %6 = arith.addf %3, %5 : vector<8x32xf32>
    %c0_5 = arith.constant 0 : index
    %c0_6 = arith.constant 0 : index
    %7 = vector.load %arg4[%c0_5, %c0_6] : memref<8x32xf32, #tpu.memory_space<vmem>>, vector<8x32xf32>
    tpu.vector_store %arg4[%c0_5, %c0_6], %6 {strides = array<i32>} : memref<8x32xf32, #tpu.memory_space<vmem>>, vector<8x32xf32>,
    return
  }
  func.func @transform_0(%arg0: i32) -> (i32, i32) {
    %c0_i32 = arith.constant 0 : i32
    %c0_i32_0 = arith.constant 0 : i32
    return %arg0, %c0_i32 : i32, i32
  }
  func.func @transform_1(%arg0: i32) -> (i32, i32) {
    %c0_i32 = arith.constant 0 : i32
    %c0_i32_0 = arith.constant 0 : i32
    %c0_i32_1 = arith.constant 0 : i32
    return %c0_i32, %c0_i32_0 : i32, i32
  }
  func.func @transform_2(%arg0: i32) -> (i32, i32) {
    %c0_i32 = arith.constant 0 : i32
    %c0_i32_0 = arith.constant 0 : i32
    %c0_i32_1 = arith.constant 0 : i32
    return %c0_i32, %c0_i32_0 : i32, i32
  }
  func.func @transform_3(%arg0: i32) -> (i32, i32) {
    %c0_i32 = arith.constant 0 : i32
    %c0_i32_0 = arith.constant 0 : i32
    return %arg0, %c0_i32 : i32, i32
  }
}

module attributes {stable_mosaic.version = 11 : i64} {
  func.func @_block_pre_kernel(%arg0: i32, %arg1: memref<1x7x32xf32, #tpu.memory_space<vmem>>, %arg2: memref<1x32xf32, #tpu.memory_space<vmem>>, %arg3: memref<1x32xf32, #tpu.memory_space<vmem>>, %arg4: memref<32x128xbf16, #tpu.memory_space<vmem>>, %arg5: memref<1x128xf32, #tpu.memory_space<vmem>>, %arg6: memref<128x32xbf16, #tpu.memory_space<vmem>>, %arg7: memref<1x32xf32, #tpu.memory_space<vmem>>, %arg8: memref<1x32xf32, #tpu.memory_space<vmem>>, %arg9: memref<1x32xf32, #tpu.memory_space<vmem>>, %arg10: memref<32x96xbf16, #tpu.memory_space<vmem>>, %arg11: memref<1x96xf32, #tpu.memory_space<vmem>>, %arg12: memref<32x32xbf16, #tpu.memory_space<vmem>>, %arg13: memref<7x32xf32, #tpu.memory_space<vmem>>, %arg14: memref<1x32xf32, #tpu.memory_space<vmem>>, %arg15: memref<1x7x32xf32, #tpu.memory_space<vmem>>, %arg16: memref<1x7x96xbf16, #tpu.memory_space<vmem>>, %arg17: memref<1x4x7x7xf32, #tpu.memory_space<vmem>>) attributes {dimension_semantics = [#tpu.dimension_semantics<parallel>], iteration_bounds = array<i64: 2>, scalar_prefetch = 0 : i64, scratch_operands = 0 : i64, tpu.core_type = #tpu.core_type<tc>, window_params = [{transform_indices = @transform_0, window_bounds = array<i64: 1, 7, 32>}, {pipeline_mode = #tpu.pipeline_mode<synchronous>, transform_indices = @transform_1, window_bounds = array<i64: 1, 32>}, {pipeline_mode = #tpu.pipeline_mode<synchronous>, transform_indices = @transform_2, window_bounds = array<i64: 1, 32>}, {pipeline_mode = #tpu.pipeline_mode<synchronous>, transform_indices = @transform_3, window_bounds = array<i64: 32, 128>}, {pipeline_mode = #tpu.pipeline_mode<synchronous>, transform_indices = @transform_4, window_bounds = array<i64: 1, 128>}, {pipeline_mode = #tpu.pipeline_mode<synchronous>, transform_indices = @transform_5, window_bounds = array<i64: 128, 32>}, {pipeline_mode = #tpu.pipeline_mode<synchronous>, transform_indices = @transform_6, window_bounds = array<i64: 1, 32>}, {pipeline_mode = #tpu.pipeline_mode<synchronous>, transform_indices = @transform_7, window_bounds = array<i64: 1, 32>}, {pipeline_mode = #tpu.pipeline_mode<synchronous>, transform_indices = @transform_8, window_bounds = array<i64: 1, 32>}, {pipeline_mode = #tpu.pipeline_mode<synchronous>, transform_indices = @transform_9, window_bounds = array<i64: 32, 96>}, {pipeline_mode = #tpu.pipeline_mode<synchronous>, transform_indices = @transform_10, window_bounds = array<i64: 1, 96>}, {pipeline_mode = #tpu.pipeline_mode<synchronous>, transform_indices = @transform_11, window_bounds = array<i64: 32, 32>}, {pipeline_mode = #tpu.pipeline_mode<synchronous>, transform_indices = @transform_12, window_bounds = array<i64: 7, 32>}, {pipeline_mode = #tpu.pipeline_mode<synchronous>, transform_indices = @transform_13, window_bounds = array<i64: 1, 32>}, {transform_indices = @transform_14, window_bounds = array<i64: 1, 7, 32>}, {transform_indices = @transform_15, window_bounds = array<i64: 1, 7, 96>}, {transform_indices = @transform_16, window_bounds = array<i64: 1, 4, 7, 7>}]} {
    %c0 = arith.constant 0 : index
    %c0_0 = arith.constant 0 : index
    %c0_1 = arith.constant 0 : index
    %0 = vector.load %arg1[%c0, %c0_0, %c0_1] : memref<1x7x32xf32, #tpu.memory_space<vmem>>, vector<1x7x32xf32>
    %1 = vector.shape_cast %0 : vector<1x7x32xf32> to vector<7x32xf32>
    %c0_2 = arith.constant 0 : index
    %c0_3 = arith.constant 0 : index
    %2 = vector.load %arg2[%c0_2, %c0_3] : memref<1x32xf32, #tpu.memory_space<vmem>>, vector<1x32xf32>
    %c0_4 = arith.constant 0 : index
    %c0_5 = arith.constant 0 : index
    %3 = vector.load %arg3[%c0_4, %c0_5] : memref<1x32xf32, #tpu.memory_space<vmem>>, vector<1x32xf32>
    %c0_6 = arith.constant 0 : index
    %c0_7 = arith.constant 0 : index
    %4 = vector.load %arg4[%c0_6, %c0_7] : memref<32x128xbf16, #tpu.memory_space<vmem>>, vector<32x128xbf16>
    %c0_8 = arith.constant 0 : index
    %c0_9 = arith.constant 0 : index
    %5 = vector.load %arg5[%c0_8, %c0_9] : memref<1x128xf32, #tpu.memory_space<vmem>>, vector<1x128xf32>
    %c0_10 = arith.constant 0 : index
    %c0_11 = arith.constant 0 : index
    %6 = vector.load %arg6[%c0_10, %c0_11] : memref<128x32xbf16, #tpu.memory_space<vmem>>, vector<128x32xbf16>
    %c0_12 = arith.constant 0 : index
    %c0_13 = arith.constant 0 : index
    %7 = vector.load %arg7[%c0_12, %c0_13] : memref<1x32xf32, #tpu.memory_space<vmem>>, vector<1x32xf32>
    %cst = arith.constant dense<0.000000e+00> : vector<7xf32>
    %8 = vector.multi_reduction <add>, %1, %cst [1] : vector<7x32xf32> to vector<7xf32>
    %9 = vector.shape_cast %8 : vector<7xf32> to vector<7x1xf32>
    %cst_14 = arith.constant 3.200000e+01 : f32
    %10 = vector.broadcast %cst_14 : f32 to vector<7x1xf32>
    %11 = arith.divf %9, %10 : vector<7x1xf32>
    %12 = vector.broadcast %11 : vector<7x1xf32> to vector<7x32xf32>
    %13 = arith.subf %1, %12 : vector<7x32xf32>
    %14 = arith.mulf %13, %13 : vector<7x32xf32>
    %cst_15 = arith.constant dense<0.000000e+00> : vector<7xf32>
    %15 = vector.multi_reduction <add>, %14, %cst_15 [1] : vector<7x32xf32> to vector<7xf32>
    %16 = vector.shape_cast %15 : vector<7xf32> to vector<7x1xf32>
    %cst_16 = arith.constant 3.200000e+01 : f32
    %17 = vector.broadcast %cst_16 : f32 to vector<7x1xf32>
    %18 = arith.divf %16, %17 : vector<7x1xf32>
    %19 = vector.broadcast %11 : vector<7x1xf32> to vector<7x32xf32>
    %20 = arith.subf %1, %19 : vector<7x32xf32>
    %cst_17 = arith.constant 9.99999974E-6 : f32
    %21 = vector.broadcast %cst_17 : f32 to vector<7x1xf32>
    %22 = arith.addf %18, %21 : vector<7x1xf32>
    %23 = math.rsqrt %22 : vector<7x1xf32>
    %24 = vector.broadcast %23 : vector<7x1xf32> to vector<7x32xf32>
    %25 = arith.mulf %20, %24 : vector<7x32xf32>
    %26 = vector.broadcast %2 : vector<1x32xf32> to vector<7x32xf32>
    %27 = arith.mulf %25, %26 : vector<7x32xf32>
    %28 = vector.broadcast %3 : vector<1x32xf32> to vector<7x32xf32>
    %29 = arith.addf %27, %28 : vector<7x32xf32>
    %30 = arith.truncf %29 : vector<7x32xf32> to vector<7x32xbf16>
    %cst_18 = arith.constant dense<0.000000e+00> : vector<7x128xf32>
    %31 = tpu.matmul %30, %4, %cst_18 {dimension_numbers = #tpu.dot_dimension_numbers<[1], [0], [0], [1], [0, 0, 1, 1], [], []>} : vector<7x32xbf16>, vector<32x128xbf16>, vector<7x128xf32> -> vector<7x128xf32>
    %32 = vector.broadcast %5 : vector<1x128xf32> to vector<7x128xf32>
    %33 = arith.addf %31, %32 : vector<7x128xf32>
    %34 = arith.negf %33 : vector<7x128xf32>
    %35 = math.exp %34 : vector<7x128xf32>
    %cst_19 = arith.constant 1.000000e+00 : f32
    %36 = vector.broadcast %cst_19 : f32 to vector<7x128xf32>
    %37 = arith.addf %36, %35 : vector<7x128xf32>
    %38 = arith.divf %36, %37 : vector<7x128xf32>
    %39 = arith.mulf %33, %38 : vector<7x128xf32>
    %40 = arith.truncf %39 : vector<7x128xf32> to vector<7x128xbf16>
    %cst_20 = arith.constant dense<0.000000e+00> : vector<7x32xf32>
    %41 = tpu.matmul %40, %6, %cst_20 {dimension_numbers = #tpu.dot_dimension_numbers<[1], [0], [0], [1], [0, 0, 1, 1], [], []>} : vector<7x128xbf16>, vector<128x32xbf16>, vector<7x32xf32> -> vector<7x32xf32>
    %42 = vector.broadcast %7 : vector<1x32xf32> to vector<7x32xf32>
    %43 = arith.addf %41, %42 : vector<7x32xf32>
    %cst_21 = arith.constant 5.000000e-01 : f32
    %44 = vector.broadcast %cst_21 : f32 to vector<7x32xf32>
    %45 = arith.mulf %44, %43 : vector<7x32xf32>
    %46 = arith.addf %1, %45 : vector<7x32xf32>
    %c0_22 = arith.constant 0 : index
    %c0_23 = arith.constant 0 : index
    %c0_24 = arith.constant 0 : index
    %47 = vector.load %arg15[%c0_22, %c0_23, %c0_24] : memref<1x7x32xf32, #tpu.memory_space<vmem>>, vector<1x7x32xf32>
    %48 = vector.shape_cast %47 : vector<1x7x32xf32> to vector<7x32xf32>
    %49 = vector.shape_cast %46 : vector<7x32xf32> to vector<1x7x32xf32>
    tpu.vector_store %arg15[%c0_22, %c0_23, %c0_24], %49 {strides = array<i32>} : memref<1x7x32xf32, #tpu.memory_space<vmem>>, vector<1x7x32xf32>,
    %c0_25 = arith.constant 0 : index
    %c0_26 = arith.constant 0 : index
    %50 = vector.load %arg8[%c0_25, %c0_26] : memref<1x32xf32, #tpu.memory_space<vmem>>, vector<1x32xf32>
    %c0_27 = arith.constant 0 : index
    %c0_28 = arith.constant 0 : index
    %51 = vector.load %arg9[%c0_27, %c0_28] : memref<1x32xf32, #tpu.memory_space<vmem>>, vector<1x32xf32>
    %cst_29 = arith.constant dense<0.000000e+00> : vector<7xf32>
    %52 = vector.multi_reduction <add>, %46, %cst_29 [1] : vector<7x32xf32> to vector<7xf32>
    %53 = vector.shape_cast %52 : vector<7xf32> to vector<7x1xf32>
    %cst_30 = arith.constant 3.200000e+01 : f32
    %54 = vector.broadcast %cst_30 : f32 to vector<7x1xf32>
    %55 = arith.divf %53, %54 : vector<7x1xf32>
    %56 = vector.broadcast %55 : vector<7x1xf32> to vector<7x32xf32>
    %57 = arith.subf %46, %56 : vector<7x32xf32>
    %58 = arith.mulf %57, %57 : vector<7x32xf32>
    %cst_31 = arith.constant dense<0.000000e+00> : vector<7xf32>
    %59 = vector.multi_reduction <add>, %58, %cst_31 [1] : vector<7x32xf32> to vector<7xf32>
    %60 = vector.shape_cast %59 : vector<7xf32> to vector<7x1xf32>
    %cst_32 = arith.constant 3.200000e+01 : f32
    %61 = vector.broadcast %cst_32 : f32 to vector<7x1xf32>
    %62 = arith.divf %60, %61 : vector<7x1xf32>
    %63 = vector.broadcast %55 : vector<7x1xf32> to vector<7x32xf32>
    %64 = arith.subf %46, %63 : vector<7x32xf32>
    %cst_33 = arith.constant 9.99999974E-6 : f32
    %65 = vector.broadcast %cst_33 : f32 to vector<7x1xf32>
    %66 = arith.addf %62, %65 : vector<7x1xf32>
    %67 = math.rsqrt %66 : vector<7x1xf32>
    %68 = vector.broadcast %67 : vector<7x1xf32> to vector<7x32xf32>
    %69 = arith.mulf %64, %68 : vector<7x32xf32>
    %70 = vector.broadcast %50 : vector<1x32xf32> to vector<7x32xf32>
    %71 = arith.mulf %69, %70 : vector<7x32xf32>
    %72 = vector.broadcast %51 : vector<1x32xf32> to vector<7x32xf32>
    %73 = arith.addf %71, %72 : vector<7x32xf32>
    %74 = arith.truncf %73 : vector<7x32xf32> to vector<7x32xbf16>
    %c0_34 = arith.constant 0 : index
    %c0_35 = arith.constant 0 : index
    %75 = vector.load %arg10[%c0_34, %c0_35] : memref<32x96xbf16, #tpu.memory_space<vmem>>, vector<32x96xbf16>
    %cst_36 = arith.constant dense<0.000000e+00> : vector<7x96xf32>
    %76 = tpu.matmul %74, %75, %cst_36 {dimension_numbers = #tpu.dot_dimension_numbers<[1], [0], [0], [1], [0, 0, 1, 1], [], []>} : vector<7x32xbf16>, vector<32x96xbf16>, vector<7x96xf32> -> vector<7x96xf32>
    %c0_37 = arith.constant 0 : index
    %c0_38 = arith.constant 0 : index
    %77 = vector.load %arg11[%c0_37, %c0_38] : memref<1x96xf32, #tpu.memory_space<vmem>>, vector<1x96xf32>
    %78 = vector.broadcast %77 : vector<1x96xf32> to vector<7x96xf32>
    %79 = arith.addf %76, %78 : vector<7x96xf32>
    %80 = arith.truncf %79 : vector<7x96xf32> to vector<7x96xbf16>
    %c0_39 = arith.constant 0 : index
    %c0_40 = arith.constant 0 : index
    %c0_41 = arith.constant 0 : index
    %81 = vector.load %arg16[%c0_39, %c0_40, %c0_41] : memref<1x7x96xbf16, #tpu.memory_space<vmem>>, vector<1x7x96xbf16>
    %82 = vector.shape_cast %81 : vector<1x7x96xbf16> to vector<7x96xbf16>
    %83 = vector.shape_cast %80 : vector<7x96xbf16> to vector<1x7x96xbf16>
    tpu.vector_store %arg16[%c0_39, %c0_40, %c0_41], %83 {strides = array<i32>} : memref<1x7x96xbf16, #tpu.memory_space<vmem>>, vector<1x7x96xbf16>,
    %c0_42 = arith.constant 0 : index
    %c0_43 = arith.constant 0 : index
    %84 = vector.load %arg13[%c0_42, %c0_43] : memref<7x32xf32, #tpu.memory_space<vmem>>, vector<7x32xf32>
    %85 = arith.truncf %84 : vector<7x32xf32> to vector<7x32xbf16>
    %c0_44 = arith.constant 0 : index
    %c0_45 = arith.constant 0 : index
    %86 = vector.load %arg12[%c0_44, %c0_45] : memref<32x32xbf16, #tpu.memory_space<vmem>>, vector<32x32xbf16>
    %cst_46 = arith.constant dense<0.000000e+00> : vector<7x32xf32>
    %87 = tpu.matmul %85, %86, %cst_46 {dimension_numbers = #tpu.dot_dimension_numbers<[1], [0], [0], [1], [0, 0, 1, 1], [], []>} : vector<7x32xbf16>, vector<32x32xbf16>, vector<7x32xf32> -> vector<7x32xf32>
    %88 = vector.extract_strided_slice %79 {offsets = [0, 0], sizes = [7, 32], strides = [1, 1]} : vector<7x96xf32> to vector<7x32xf32>
    %c0_47 = arith.constant 0 : index
    %c0_48 = arith.constant 0 : index
    %89 = vector.load %arg14[%c0_47, %c0_48] : memref<1x32xf32, #tpu.memory_space<vmem>>, vector<1x32xf32>
    %90 = vector.extract_strided_slice %88 {offsets = [0, 0], sizes = [7, 8], strides = [1, 1]} : vector<7x32xf32> to vector<7x8xf32>
    %91 = vector.extract_strided_slice %89 {offsets = [0, 0], sizes = [1, 8], strides = [1, 1]} : vector<1x32xf32> to vector<1x8xf32>
    %92 = vector.broadcast %91 : vector<1x8xf32> to vector<7x8xf32>
    %93 = arith.addf %90, %92 : vector<7x8xf32>
    %94 = arith.truncf %93 : vector<7x8xf32> to vector<7x8xbf16>
    %95 = vector.extract_strided_slice %87 {offsets = [0, 0], sizes = [7, 8], strides = [1, 1]} : vector<7x32xf32> to vector<7x8xf32>
    %96 = arith.truncf %95 : vector<7x8xf32> to vector<7x8xbf16>
    %cst_49 = arith.constant dense<0.000000e+00> : vector<7x7xf32>
    %97 = tpu.matmul %94, %96, %cst_49 {dimension_numbers = #tpu.dot_dimension_numbers<[1], [1], [0], [0], [0, 0, 1, 0], [], []>} : vector<7x8xbf16>, vector<7x8xbf16>, vector<7x7xf32> -> vector<7x7xf32>
    %c0_50 = arith.constant 0 : index
    %c0_51 = arith.constant 0 : index
    %c0_52 = arith.constant 0 : index
    %c0_53 = arith.constant 0 : index
    %98 = vector.load %arg17[%c0_50, %c0_51, %c0_52, %c0_53] : memref<1x4x7x7xf32, #tpu.memory_space<vmem>>, vector<1x1x7x7xf32>
    %99 = vector.shape_cast %98 : vector<1x1x7x7xf32> to vector<7x7xf32>
    %100 = vector.shape_cast %97 : vector<7x7xf32> to vector<1x1x7x7xf32>
    tpu.vector_store %arg17[%c0_50, %c0_51, %c0_52, %c0_53], %100 {strides = array<i32>} : memref<1x4x7x7xf32, #tpu.memory_space<vmem>>, vector<1x1x7x7xf32>,
    %101 = vector.extract_strided_slice %88 {offsets = [0, 8], sizes = [7, 8], strides = [1, 1]} : vector<7x32xf32> to vector<7x8xf32>
    %102 = vector.extract_strided_slice %89 {offsets = [0, 8], sizes = [1, 8], strides = [1, 1]} : vector<1x32xf32> to vector<1x8xf32>
    %103 = vector.broadcast %102 : vector<1x8xf32> to vector<7x8xf32>
    %104 = arith.addf %101, %103 : vector<7x8xf32>
    %105 = arith.truncf %104 : vector<7x8xf32> to vector<7x8xbf16>
    %106 = vector.extract_strided_slice %87 {offsets = [0, 8], sizes = [7, 8], strides = [1, 1]} : vector<7x32xf32> to vector<7x8xf32>
    %107 = arith.truncf %106 : vector<7x8xf32> to vector<7x8xbf16>
    %cst_54 = arith.constant dense<0.000000e+00> : vector<7x7xf32>
    %108 = tpu.matmul %105, %107, %cst_54 {dimension_numbers = #tpu.dot_dimension_numbers<[1], [1], [0], [0], [0, 0, 1, 0], [], []>} : vector<7x8xbf16>, vector<7x8xbf16>, vector<7x7xf32> -> vector<7x7xf32>
    %c0_55 = arith.constant 0 : index
    %c1 = arith.constant 1 : index
    %c0_56 = arith.constant 0 : index
    %c0_57 = arith.constant 0 : index
    %109 = vector.load %arg17[%c0_55, %c1, %c0_56, %c0_57] : memref<1x4x7x7xf32, #tpu.memory_space<vmem>>, vector<1x1x7x7xf32>
    %110 = vector.shape_cast %109 : vector<1x1x7x7xf32> to vector<7x7xf32>
    %111 = vector.shape_cast %108 : vector<7x7xf32> to vector<1x1x7x7xf32>
    tpu.vector_store %arg17[%c0_55, %c1, %c0_56, %c0_57], %111 {strides = array<i32>} : memref<1x4x7x7xf32, #tpu.memory_space<vmem>>, vector<1x1x7x7xf32>,
    %112 = vector.extract_strided_slice %88 {offsets = [0, 16], sizes = [7, 8], strides = [1, 1]} : vector<7x32xf32> to vector<7x8xf32>
    %113 = vector.extract_strided_slice %89 {offsets = [0, 16], sizes = [1, 8], strides = [1, 1]} : vector<1x32xf32> to vector<1x8xf32>
    %114 = vector.broadcast %113 : vector<1x8xf32> to vector<7x8xf32>
    %115 = arith.addf %112, %114 : vector<7x8xf32>
    %116 = arith.truncf %115 : vector<7x8xf32> to vector<7x8xbf16>
    %117 = vector.extract_strided_slice %87 {offsets = [0, 16], sizes = [7, 8], strides = [1, 1]} : vector<7x32xf32> to vector<7x8xf32>
    %118 = arith.truncf %117 : vector<7x8xf32> to vector<7x8xbf16>
    %cst_58 = arith.constant dense<0.000000e+00> : vector<7x7xf32>
    %119 = tpu.matmul %116, %118, %cst_58 {dimension_numbers = #tpu.dot_dimension_numbers<[1], [1], [0], [0], [0, 0, 1, 0], [], []>} : vector<7x8xbf16>, vector<7x8xbf16>, vector<7x7xf32> -> vector<7x7xf32>
    %c0_59 = arith.constant 0 : index
    %c2 = arith.constant 2 : index
    %c0_60 = arith.constant 0 : index
    %c0_61 = arith.constant 0 : index
    %120 = vector.load %arg17[%c0_59, %c2, %c0_60, %c0_61] : memref<1x4x7x7xf32, #tpu.memory_space<vmem>>, vector<1x1x7x7xf32>
    %121 = vector.shape_cast %120 : vector<1x1x7x7xf32> to vector<7x7xf32>
    %122 = vector.shape_cast %119 : vector<7x7xf32> to vector<1x1x7x7xf32>
    tpu.vector_store %arg17[%c0_59, %c2, %c0_60, %c0_61], %122 {strides = array<i32>} : memref<1x4x7x7xf32, #tpu.memory_space<vmem>>, vector<1x1x7x7xf32>,
    %123 = vector.extract_strided_slice %88 {offsets = [0, 24], sizes = [7, 8], strides = [1, 1]} : vector<7x32xf32> to vector<7x8xf32>
    %124 = vector.extract_strided_slice %89 {offsets = [0, 24], sizes = [1, 8], strides = [1, 1]} : vector<1x32xf32> to vector<1x8xf32>
    %125 = vector.broadcast %124 : vector<1x8xf32> to vector<7x8xf32>
    %126 = arith.addf %123, %125 : vector<7x8xf32>
    %127 = arith.truncf %126 : vector<7x8xf32> to vector<7x8xbf16>
    %128 = vector.extract_strided_slice %87 {offsets = [0, 24], sizes = [7, 8], strides = [1, 1]} : vector<7x32xf32> to vector<7x8xf32>
    %129 = arith.truncf %128 : vector<7x8xf32> to vector<7x8xbf16>
    %cst_62 = arith.constant dense<0.000000e+00> : vector<7x7xf32>
    %130 = tpu.matmul %127, %129, %cst_62 {dimension_numbers = #tpu.dot_dimension_numbers<[1], [1], [0], [0], [0, 0, 1, 0], [], []>} : vector<7x8xbf16>, vector<7x8xbf16>, vector<7x7xf32> -> vector<7x7xf32>
    %c0_63 = arith.constant 0 : index
    %c3 = arith.constant 3 : index
    %c0_64 = arith.constant 0 : index
    %c0_65 = arith.constant 0 : index
    %131 = vector.load %arg17[%c0_63, %c3, %c0_64, %c0_65] : memref<1x4x7x7xf32, #tpu.memory_space<vmem>>, vector<1x1x7x7xf32>
    %132 = vector.shape_cast %131 : vector<1x1x7x7xf32> to vector<7x7xf32>
    %133 = vector.shape_cast %130 : vector<7x7xf32> to vector<1x1x7x7xf32>
    tpu.vector_store %arg17[%c0_63, %c3, %c0_64, %c0_65], %133 {strides = array<i32>} : memref<1x4x7x7xf32, #tpu.memory_space<vmem>>, vector<1x1x7x7xf32>,
    return
  }
  func.func @transform_0(%arg0: i32) -> (i32, i32, i32) {
    %c0_i32 = arith.constant 0 : i32
    %c0_i32_0 = arith.constant 0 : i32
    %c0_i32_1 = arith.constant 0 : i32
    return %arg0, %c0_i32, %c0_i32_0 : i32, i32, i32
  }
  func.func @transform_1(%arg0: i32) -> (i32, i32) {
    %c0_i32 = arith.constant 0 : i32
    %c0_i32_0 = arith.constant 0 : i32
    %c0_i32_1 = arith.constant 0 : i32
    return %c0_i32, %c0_i32_0 : i32, i32
  }
  func.func @transform_2(%arg0: i32) -> (i32, i32) {
    %c0_i32 = arith.constant 0 : i32
    %c0_i32_0 = arith.constant 0 : i32
    %c0_i32_1 = arith.constant 0 : i32
    return %c0_i32, %c0_i32_0 : i32, i32
  }
  func.func @transform_3(%arg0: i32) -> (i32, i32) {
    %c0_i32 = arith.constant 0 : i32
    %c0_i32_0 = arith.constant 0 : i32
    %c0_i32_1 = arith.constant 0 : i32
    return %c0_i32, %c0_i32_0 : i32, i32
  }
  func.func @transform_4(%arg0: i32) -> (i32, i32) {
    %c0_i32 = arith.constant 0 : i32
    %c0_i32_0 = arith.constant 0 : i32
    %c0_i32_1 = arith.constant 0 : i32
    return %c0_i32, %c0_i32_0 : i32, i32
  }
  func.func @transform_5(%arg0: i32) -> (i32, i32) {
    %c0_i32 = arith.constant 0 : i32
    %c0_i32_0 = arith.constant 0 : i32
    %c0_i32_1 = arith.constant 0 : i32
    return %c0_i32, %c0_i32_0 : i32, i32
  }
  func.func @transform_6(%arg0: i32) -> (i32, i32) {
    %c0_i32 = arith.constant 0 : i32
    %c0_i32_0 = arith.constant 0 : i32
    %c0_i32_1 = arith.constant 0 : i32
    return %c0_i32, %c0_i32_0 : i32, i32
  }
  func.func @transform_7(%arg0: i32) -> (i32, i32) {
    %c0_i32 = arith.constant 0 : i32
    %c0_i32_0 = arith.constant 0 : i32
    %c0_i32_1 = arith.constant 0 : i32
    return %c0_i32, %c0_i32_0 : i32, i32
  }
  func.func @transform_8(%arg0: i32) -> (i32, i32) {
    %c0_i32 = arith.constant 0 : i32
    %c0_i32_0 = arith.constant 0 : i32
    %c0_i32_1 = arith.constant 0 : i32
    return %c0_i32, %c0_i32_0 : i32, i32
  }
  func.func @transform_9(%arg0: i32) -> (i32, i32) {
    %c0_i32 = arith.constant 0 : i32
    %c0_i32_0 = arith.constant 0 : i32
    %c0_i32_1 = arith.constant 0 : i32
    return %c0_i32, %c0_i32_0 : i32, i32
  }
  func.func @transform_10(%arg0: i32) -> (i32, i32) {
    %c0_i32 = arith.constant 0 : i32
    %c0_i32_0 = arith.constant 0 : i32
    %c0_i32_1 = arith.constant 0 : i32
    return %c0_i32, %c0_i32_0 : i32, i32
  }
  func.func @transform_11(%arg0: i32) -> (i32, i32) {
    %c0_i32 = arith.constant 0 : i32
    %c0_i32_0 = arith.constant 0 : i32
    %c0_i32_1 = arith.constant 0 : i32
    return %c0_i32, %c0_i32_0 : i32, i32
  }
  func.func @transform_12(%arg0: i32) -> (i32, i32) {
    %c0_i32 = arith.constant 0 : i32
    %c0_i32_0 = arith.constant 0 : i32
    %c0_i32_1 = arith.constant 0 : i32
    return %c0_i32, %c0_i32_0 : i32, i32
  }
  func.func @transform_13(%arg0: i32) -> (i32, i32) {
    %c0_i32 = arith.constant 0 : i32
    %c0_i32_0 = arith.constant 0 : i32
    %c0_i32_1 = arith.constant 0 : i32
    return %c0_i32, %c0_i32_0 : i32, i32
  }
  func.func @transform_14(%arg0: i32) -> (i32, i32, i32) {
    %c0_i32 = arith.constant 0 : i32
    %c0_i32_0 = arith.constant 0 : i32
    %c0_i32_1 = arith.constant 0 : i32
    return %arg0, %c0_i32, %c0_i32_0 : i32, i32, i32
  }
  func.func @transform_15(%arg0: i32) -> (i32, i32, i32) {
    %c0_i32 = arith.constant 0 : i32
    %c0_i32_0 = arith.constant 0 : i32
    %c0_i32_1 = arith.constant 0 : i32
    return %arg0, %c0_i32, %c0_i32_0 : i32, i32, i32
  }
  func.func @transform_16(%arg0: i32) -> (i32, i32, i32, i32) {
    %c0_i32 = arith.constant 0 : i32
    %c0_i32_0 = arith.constant 0 : i32
    %c0_i32_1 = arith.constant 0 : i32
    %c0_i32_2 = arith.constant 0 : i32
    return %arg0, %c0_i32, %c0_i32_0, %c0_i32_1 : i32, i32, i32, i32
  }
}

module attributes {stable_mosaic.version = 11 : i64} {
  func.func @_block_post_kernel(%arg0: i32, %arg1: memref<1x7x32xf32, #tpu.memory_space<vmem>>, %arg2: memref<1x7x96xbf16, #tpu.memory_space<vmem>>, %arg3: memref<1x4x7x7xf32, #tpu.memory_space<vmem>>, %arg4: memref<1x32xf32, #tpu.memory_space<vmem>>, %arg5: memref<32x32xbf16, #tpu.memory_space<vmem>>, %arg6: memref<1x32xf32, #tpu.memory_space<vmem>>, %arg7: memref<1x32xf32, #tpu.memory_space<vmem>>, %arg8: memref<1x32xf32, #tpu.memory_space<vmem>>, %arg9: memref<32x64xbf16, #tpu.memory_space<vmem>>, %arg10: memref<1x64xf32, #tpu.memory_space<vmem>>, %arg11: memref<7x32xf32, #tpu.memory_space<vmem>>, %arg12: memref<1x32xf32, #tpu.memory_space<vmem>>, %arg13: memref<1x32xf32, #tpu.memory_space<vmem>>, %arg14: memref<32x32xbf16, #tpu.memory_space<vmem>>, %arg15: memref<1x32xf32, #tpu.memory_space<vmem>>, %arg16: memref<1x32xf32, #tpu.memory_space<vmem>>, %arg17: memref<1x32xf32, #tpu.memory_space<vmem>>, %arg18: memref<32x128xbf16, #tpu.memory_space<vmem>>, %arg19: memref<1x128xf32, #tpu.memory_space<vmem>>, %arg20: memref<128x32xbf16, #tpu.memory_space<vmem>>, %arg21: memref<1x32xf32, #tpu.memory_space<vmem>>, %arg22: memref<1x32xf32, #tpu.memory_space<vmem>>, %arg23: memref<1x32xf32, #tpu.memory_space<vmem>>, %arg24: memref<1x7x32xf32, #tpu.memory_space<vmem>>) attributes {dimension_semantics = [#tpu.dimension_semantics<parallel>], iteration_bounds = array<i64: 2>, scalar_prefetch = 0 : i64, scratch_operands = 0 : i64, tpu.core_type = #tpu.core_type<tc>, window_params = [{transform_indices = @transform_0, window_bounds = array<i64: 1, 7, 32>}, {transform_indices = @transform_1, window_bounds = array<i64: 1, 7, 96>}, {transform_indices = @transform_2, window_bounds = array<i64: 1, 4, 7, 7>}, {pipeline_mode = #tpu.pipeline_mode<synchronous>, transform_indices = @transform_3, window_bounds = array<i64: 1, 32>}, {pipeline_mode = #tpu.pipeline_mode<synchronous>, transform_indices = @transform_4, window_bounds = array<i64: 32, 32>}, {pipeline_mode = #tpu.pipeline_mode<synchronous>, transform_indices = @transform_5, window_bounds = array<i64: 1, 32>}, {pipeline_mode = #tpu.pipeline_mode<synchronous>, transform_indices = @transform_6, window_bounds = array<i64: 1, 32>}, {pipeline_mode = #tpu.pipeline_mode<synchronous>, transform_indices = @transform_7, window_bounds = array<i64: 1, 32>}, {pipeline_mode = #tpu.pipeline_mode<synchronous>, transform_indices = @transform_8, window_bounds = array<i64: 32, 64>}, {pipeline_mode = #tpu.pipeline_mode<synchronous>, transform_indices = @transform_9, window_bounds = array<i64: 1, 64>}, {pipeline_mode = #tpu.pipeline_mode<synchronous>, transform_indices = @transform_10, window_bounds = array<i64: 7, 32>}, {pipeline_mode = #tpu.pipeline_mode<synchronous>, transform_indices = @transform_11, window_bounds = array<i64: 1, 32>}, {pipeline_mode = #tpu.pipeline_mode<synchronous>, transform_indices = @transform_12, window_bounds = array<i64: 1, 32>}, {pipeline_mode = #tpu.pipeline_mode<synchronous>, transform_indices = @transform_13, window_bounds = array<i64: 32, 32>}, {pipeline_mode = #tpu.pipeline_mode<synchronous>, transform_indices = @transform_14, window_bounds = array<i64: 1, 32>}, {pipeline_mode = #tpu.pipeline_mode<synchronous>, transform_indices = @transform_15, window_bounds = array<i64: 1, 32>}, {pipeline_mode = #tpu.pipeline_mode<synchronous>, transform_indices = @transform_16, window_bounds = array<i64: 1, 32>}, {pipeline_mode = #tpu.pipeline_mode<synchronous>, transform_indices = @transform_17, window_bounds = array<i64: 32, 128>}, {pipeline_mode = #tpu.pipeline_mode<synchronous>, transform_indices = @transform_18, window_bounds = array<i64: 1, 128>}, {pipeline_mode = #tpu.pipeline_mode<synchronous>, transform_indices = @transform_19, window_bounds = array<i64: 128, 32>}, {pipeline_mode = #tpu.pipeline_mode<synchronous>, transform_indices = @transform_20, window_bounds = array<i64: 1, 32>}, {pipeline_mode = #tpu.pipeline_mode<synchronous>, transform_indices = @transform_21, window_bounds = array<i64: 1, 32>}, {pipeline_mode = #tpu.pipeline_mode<synchronous>, transform_indices = @transform_22, window_bounds = array<i64: 1, 32>}, {transform_indices = @transform_23, window_bounds = array<i64: 1, 7, 32>}]} {
    %c0 = arith.constant 0 : index
    %c0_0 = arith.constant 0 : index
    %c0_1 = arith.constant 0 : index
    %0 = vector.load %arg1[%c0, %c0_0, %c0_1] : memref<1x7x32xf32, #tpu.memory_space<vmem>>, vector<1x7x32xf32>
    %1 = vector.shape_cast %0 : vector<1x7x32xf32> to vector<7x32xf32>
    %c0_2 = arith.constant 0 : index
    %c0_3 = arith.constant 0 : index
    %c0_4 = arith.constant 0 : index
    %2 = vector.load %arg2[%c0_2, %c0_3, %c0_4] : memref<1x7x96xbf16, #tpu.memory_space<vmem>>, vector<1x7x96xbf16>
    %3 = vector.shape_cast %2 : vector<1x7x96xbf16> to vector<7x96xbf16>
    %4 = vector.extract_strided_slice %3 {offsets = [0, 0], sizes = [7, 32], strides = [1, 1]} : vector<7x96xbf16> to vector<7x32xbf16>
    %5 = arith.extf %4 : vector<7x32xbf16> to vector<7x32xf32>
    %6 = vector.extract_strided_slice %3 {offsets = [0, 32], sizes = [7, 32], strides = [1, 1]} : vector<7x96xbf16> to vector<7x32xbf16>
    %7 = vector.extract_strided_slice %3 {offsets = [0, 64], sizes = [7, 32], strides = [1, 1]} : vector<7x96xbf16> to vector<7x32xbf16>
    %c0_5 = arith.constant 0 : index
    %c0_6 = arith.constant 0 : index
    %8 = vector.load %arg4[%c0_5, %c0_6] : memref<1x32xf32, #tpu.memory_space<vmem>>, vector<1x32xf32>
    %c0_7 = arith.constant 0 : index
    %c0_8 = arith.constant 0 : index
    %9 = vector.load %arg5[%c0_7, %c0_8] : memref<32x32xbf16, #tpu.memory_space<vmem>>, vector<32x32xbf16>
    %cst = arith.constant 0.000000e+00 : f32
    %10 = vector.broadcast %cst : f32 to vector<7x32xf32>
    %11 = vector.extract_strided_slice %5 {offsets = [0, 0], sizes = [7, 8], strides = [1, 1]} : vector<7x32xf32> to vector<7x8xf32>
    %12 = vector.extract_strided_slice %8 {offsets = [0, 0], sizes = [1, 8], strides = [1, 1]} : vector<1x32xf32> to vector<1x8xf32>
    %13 = vector.broadcast %12 : vector<1x8xf32> to vector<7x8xf32>
    %14 = arith.addf %11, %13 : vector<7x8xf32>
    %15 = arith.truncf %14 : vector<7x8xf32> to vector<7x8xbf16>
    %16 = vector.extract_strided_slice %6 {offsets = [0, 0], sizes = [7, 8], strides = [1, 1]} : vector<7x32xbf16> to vector<7x8xbf16>
    %cst_9 = arith.constant dense<0.000000e+00> : vector<7x7xf32>
    %17 = tpu.matmul %15, %16, %cst_9 {dimension_numbers = #tpu.dot_dimension_numbers<[1], [1], [0], [0], [0, 0, 1, 0], [], []>} : vector<7x8xbf16>, vector<7x8xbf16>, vector<7x7xf32> -> vector<7x7xf32>
    %c0_10 = arith.constant 0 : index
    %c0_11 = arith.constant 0 : index
    %c0_12 = arith.constant 0 : index
    %c0_13 = arith.constant 0 : index
    %18 = vector.load %arg3[%c0_10, %c0_11, %c0_12, %c0_13] : memref<1x4x7x7xf32, #tpu.memory_space<vmem>>, vector<1x1x7x7xf32>
    %19 = vector.shape_cast %18 : vector<1x1x7x7xf32> to vector<7x7xf32>
    %20 = arith.addf %17, %19 : vector<7x7xf32>
    %cst_14 = arith.constant 0.176776692 : f32
    %21 = vector.broadcast %cst_14 : f32 to vector<7x7xf32>
    %22 = arith.mulf %20, %21 : vector<7x7xf32>
    %cst_15 = arith.constant dense<0xFF800000> : vector<7xf32>
    %23 = vector.multi_reduction <maximumf>, %22, %cst_15 [1] : vector<7x7xf32> to vector<7xf32>
    %24 = vector.shape_cast %23 : vector<7xf32> to vector<7x1xf32>
    %25 = vector.broadcast %24 : vector<7x1xf32> to vector<7x7xf32>
    %26 = arith.subf %22, %25 : vector<7x7xf32>
    %27 = math.exp %26 : vector<7x7xf32>
    %cst_16 = arith.constant dense<0.000000e+00> : vector<7xf32>
    %28 = vector.multi_reduction <add>, %27, %cst_16 [1] : vector<7x7xf32> to vector<7xf32>
    %29 = vector.shape_cast %28 : vector<7xf32> to vector<7x1xf32>
    %30 = tpu.reciprocal %29 {approx = true} : vector<7x1xf32> -> vector<7x1xf32>
    %31 = vector.broadcast %30 : vector<7x1xf32> to vector<7x7xf32>
    %32 = arith.mulf %27, %31 : vector<7x7xf32>
    %33 = arith.truncf %32 : vector<7x7xf32> to vector<7x7xbf16>
    %34 = vector.extract_strided_slice %7 {offsets = [0, 0], sizes = [7, 8], strides = [1, 1]} : vector<7x32xbf16> to vector<7x8xbf16>
    %cst_17 = arith.constant dense<0.000000e+00> : vector<7x8xf32>
    %35 = tpu.matmul %33, %34, %cst_17 {dimension_numbers = #tpu.dot_dimension_numbers<[1], [0], [0], [1], [0, 0, 1, 1], [], []>} : vector<7x7xbf16>, vector<7x8xbf16>, vector<7x8xf32> -> vector<7x8xf32>
    %36 = arith.truncf %35 : vector<7x8xf32> to vector<7x8xbf16>
    %37 = vector.extract_strided_slice %9 {offsets = [0, 0], sizes = [8, 32], strides = [1, 1]} : vector<32x32xbf16> to vector<8x32xbf16>
    %cst_18 = arith.constant dense<0.000000e+00> : vector<7x32xf32>
    %38 = tpu.matmul %36, %37, %cst_18 {dimension_numbers = #tpu.dot_dimension_numbers<[1], [0], [0], [1], [0, 0, 1, 1], [], []>} : vector<7x8xbf16>, vector<8x32xbf16>, vector<7x32xf32> -> vector<7x32xf32>
    %39 = arith.addf %10, %38 : vector<7x32xf32>
    %40 = vector.extract_strided_slice %5 {offsets = [0, 8], sizes = [7, 8], strides = [1, 1]} : vector<7x32xf32> to vector<7x8xf32>
    %41 = vector.extract_strided_slice %8 {offsets = [0, 8], sizes = [1, 8], strides = [1, 1]} : vector<1x32xf32> to vector<1x8xf32>
    %42 = vector.broadcast %41 : vector<1x8xf32> to vector<7x8xf32>
    %43 = arith.addf %40, %42 : vector<7x8xf32>
    %44 = arith.truncf %43 : vector<7x8xf32> to vector<7x8xbf16>
    %45 = vector.extract_strided_slice %6 {offsets = [0, 8], sizes = [7, 8], strides = [1, 1]} : vector<7x32xbf16> to vector<7x8xbf16>
    %cst_19 = arith.constant dense<0.000000e+00> : vector<7x7xf32>
    %46 = tpu.matmul %44, %45, %cst_19 {dimension_numbers = #tpu.dot_dimension_numbers<[1], [1], [0], [0], [0, 0, 1, 0], [], []>} : vector<7x8xbf16>, vector<7x8xbf16>, vector<7x7xf32> -> vector<7x7xf32>
    %c0_20 = arith.constant 0 : index
    %c1 = arith.constant 1 : index
    %c0_21 = arith.constant 0 : index
    %c0_22 = arith.constant 0 : index
    %47 = vector.load %arg3[%c0_20, %c1, %c0_21, %c0_22] : memref<1x4x7x7xf32, #tpu.memory_space<vmem>>, vector<1x1x7x7xf32>
    %48 = vector.shape_cast %47 : vector<1x1x7x7xf32> to vector<7x7xf32>
    %49 = arith.addf %46, %48 : vector<7x7xf32>
    %cst_23 = arith.constant 0.176776692 : f32
    %50 = vector.broadcast %cst_23 : f32 to vector<7x7xf32>
    %51 = arith.mulf %49, %50 : vector<7x7xf32>
    %cst_24 = arith.constant dense<0xFF800000> : vector<7xf32>
    %52 = vector.multi_reduction <maximumf>, %51, %cst_24 [1] : vector<7x7xf32> to vector<7xf32>
    %53 = vector.shape_cast %52 : vector<7xf32> to vector<7x1xf32>
    %54 = vector.broadcast %53 : vector<7x1xf32> to vector<7x7xf32>
    %55 = arith.subf %51, %54 : vector<7x7xf32>
    %56 = math.exp %55 : vector<7x7xf32>
    %cst_25 = arith.constant dense<0.000000e+00> : vector<7xf32>
    %57 = vector.multi_reduction <add>, %56, %cst_25 [1] : vector<7x7xf32> to vector<7xf32>
    %58 = vector.shape_cast %57 : vector<7xf32> to vector<7x1xf32>
    %59 = tpu.reciprocal %58 {approx = true} : vector<7x1xf32> -> vector<7x1xf32>
    %60 = vector.broadcast %59 : vector<7x1xf32> to vector<7x7xf32>
    %61 = arith.mulf %56, %60 : vector<7x7xf32>
    %62 = arith.truncf %61 : vector<7x7xf32> to vector<7x7xbf16>
    %63 = vector.extract_strided_slice %7 {offsets = [0, 8], sizes = [7, 8], strides = [1, 1]} : vector<7x32xbf16> to vector<7x8xbf16>
    %cst_26 = arith.constant dense<0.000000e+00> : vector<7x8xf32>
    %64 = tpu.matmul %62, %63, %cst_26 {dimension_numbers = #tpu.dot_dimension_numbers<[1], [0], [0], [1], [0, 0, 1, 1], [], []>} : vector<7x7xbf16>, vector<7x8xbf16>, vector<7x8xf32> -> vector<7x8xf32>
    %65 = arith.truncf %64 : vector<7x8xf32> to vector<7x8xbf16>
    %66 = vector.extract_strided_slice %9 {offsets = [8, 0], sizes = [8, 32], strides = [1, 1]} : vector<32x32xbf16> to vector<8x32xbf16>
    %cst_27 = arith.constant dense<0.000000e+00> : vector<7x32xf32>
    %67 = tpu.matmul %65, %66, %cst_27 {dimension_numbers = #tpu.dot_dimension_numbers<[1], [0], [0], [1], [0, 0, 1, 1], [], []>} : vector<7x8xbf16>, vector<8x32xbf16>, vector<7x32xf32> -> vector<7x32xf32>
    %68 = arith.addf %39, %67 : vector<7x32xf32>
    %69 = vector.extract_strided_slice %5 {offsets = [0, 16], sizes = [7, 8], strides = [1, 1]} : vector<7x32xf32> to vector<7x8xf32>
    %70 = vector.extract_strided_slice %8 {offsets = [0, 16], sizes = [1, 8], strides = [1, 1]} : vector<1x32xf32> to vector<1x8xf32>
    %71 = vector.broadcast %70 : vector<1x8xf32> to vector<7x8xf32>
    %72 = arith.addf %69, %71 : vector<7x8xf32>
    %73 = arith.truncf %72 : vector<7x8xf32> to vector<7x8xbf16>
    %74 = vector.extract_strided_slice %6 {offsets = [0, 16], sizes = [7, 8], strides = [1, 1]} : vector<7x32xbf16> to vector<7x8xbf16>
    %cst_28 = arith.constant dense<0.000000e+00> : vector<7x7xf32>
    %75 = tpu.matmul %73, %74, %cst_28 {dimension_numbers = #tpu.dot_dimension_numbers<[1], [1], [0], [0], [0, 0, 1, 0], [], []>} : vector<7x8xbf16>, vector<7x8xbf16>, vector<7x7xf32> -> vector<7x7xf32>
    %c0_29 = arith.constant 0 : index
    %c2 = arith.constant 2 : index
    %c0_30 = arith.constant 0 : index
    %c0_31 = arith.constant 0 : index
    %76 = vector.load %arg3[%c0_29, %c2, %c0_30, %c0_31] : memref<1x4x7x7xf32, #tpu.memory_space<vmem>>, vector<1x1x7x7xf32>
    %77 = vector.shape_cast %76 : vector<1x1x7x7xf32> to vector<7x7xf32>
    %78 = arith.addf %75, %77 : vector<7x7xf32>
    %cst_32 = arith.constant 0.176776692 : f32
    %79 = vector.broadcast %cst_32 : f32 to vector<7x7xf32>
    %80 = arith.mulf %78, %79 : vector<7x7xf32>
    %cst_33 = arith.constant dense<0xFF800000> : vector<7xf32>
    %81 = vector.multi_reduction <maximumf>, %80, %cst_33 [1] : vector<7x7xf32> to vector<7xf32>
    %82 = vector.shape_cast %81 : vector<7xf32> to vector<7x1xf32>
    %83 = vector.broadcast %82 : vector<7x1xf32> to vector<7x7xf32>
    %84 = arith.subf %80, %83 : vector<7x7xf32>
    %85 = math.exp %84 : vector<7x7xf32>
    %cst_34 = arith.constant dense<0.000000e+00> : vector<7xf32>
    %86 = vector.multi_reduction <add>, %85, %cst_34 [1] : vector<7x7xf32> to vector<7xf32>
    %87 = vector.shape_cast %86 : vector<7xf32> to vector<7x1xf32>
    %88 = tpu.reciprocal %87 {approx = true} : vector<7x1xf32> -> vector<7x1xf32>
    %89 = vector.broadcast %88 : vector<7x1xf32> to vector<7x7xf32>
    %90 = arith.mulf %85, %89 : vector<7x7xf32>
    %91 = arith.truncf %90 : vector<7x7xf32> to vector<7x7xbf16>
    %92 = vector.extract_strided_slice %7 {offsets = [0, 16], sizes = [7, 8], strides = [1, 1]} : vector<7x32xbf16> to vector<7x8xbf16>
    %cst_35 = arith.constant dense<0.000000e+00> : vector<7x8xf32>
    %93 = tpu.matmul %91, %92, %cst_35 {dimension_numbers = #tpu.dot_dimension_numbers<[1], [0], [0], [1], [0, 0, 1, 1], [], []>} : vector<7x7xbf16>, vector<7x8xbf16>, vector<7x8xf32> -> vector<7x8xf32>
    %94 = arith.truncf %93 : vector<7x8xf32> to vector<7x8xbf16>
    %95 = vector.extract_strided_slice %9 {offsets = [16, 0], sizes = [8, 32], strides = [1, 1]} : vector<32x32xbf16> to vector<8x32xbf16>
    %cst_36 = arith.constant dense<0.000000e+00> : vector<7x32xf32>
    %96 = tpu.matmul %94, %95, %cst_36 {dimension_numbers = #tpu.dot_dimension_numbers<[1], [0], [0], [1], [0, 0, 1, 1], [], []>} : vector<7x8xbf16>, vector<8x32xbf16>, vector<7x32xf32> -> vector<7x32xf32>
    %97 = arith.addf %68, %96 : vector<7x32xf32>
    %98 = vector.extract_strided_slice %5 {offsets = [0, 24], sizes = [7, 8], strides = [1, 1]} : vector<7x32xf32> to vector<7x8xf32>
    %99 = vector.extract_strided_slice %8 {offsets = [0, 24], sizes = [1, 8], strides = [1, 1]} : vector<1x32xf32> to vector<1x8xf32>
    %100 = vector.broadcast %99 : vector<1x8xf32> to vector<7x8xf32>
    %101 = arith.addf %98, %100 : vector<7x8xf32>
    %102 = arith.truncf %101 : vector<7x8xf32> to vector<7x8xbf16>
    %103 = vector.extract_strided_slice %6 {offsets = [0, 24], sizes = [7, 8], strides = [1, 1]} : vector<7x32xbf16> to vector<7x8xbf16>
    %cst_37 = arith.constant dense<0.000000e+00> : vector<7x7xf32>
    %104 = tpu.matmul %102, %103, %cst_37 {dimension_numbers = #tpu.dot_dimension_numbers<[1], [1], [0], [0], [0, 0, 1, 0], [], []>} : vector<7x8xbf16>, vector<7x8xbf16>, vector<7x7xf32> -> vector<7x7xf32>
    %c0_38 = arith.constant 0 : index
    %c3 = arith.constant 3 : index
    %c0_39 = arith.constant 0 : index
    %c0_40 = arith.constant 0 : index
    %105 = vector.load %arg3[%c0_38, %c3, %c0_39, %c0_40] : memref<1x4x7x7xf32, #tpu.memory_space<vmem>>, vector<1x1x7x7xf32>
    %106 = vector.shape_cast %105 : vector<1x1x7x7xf32> to vector<7x7xf32>
    %107 = arith.addf %104, %106 : vector<7x7xf32>
    %cst_41 = arith.constant 0.176776692 : f32
    %108 = vector.broadcast %cst_41 : f32 to vector<7x7xf32>
    %109 = arith.mulf %107, %108 : vector<7x7xf32>
    %cst_42 = arith.constant dense<0xFF800000> : vector<7xf32>
    %110 = vector.multi_reduction <maximumf>, %109, %cst_42 [1] : vector<7x7xf32> to vector<7xf32>
    %111 = vector.shape_cast %110 : vector<7xf32> to vector<7x1xf32>
    %112 = vector.broadcast %111 : vector<7x1xf32> to vector<7x7xf32>
    %113 = arith.subf %109, %112 : vector<7x7xf32>
    %114 = math.exp %113 : vector<7x7xf32>
    %cst_43 = arith.constant dense<0.000000e+00> : vector<7xf32>
    %115 = vector.multi_reduction <add>, %114, %cst_43 [1] : vector<7x7xf32> to vector<7xf32>
    %116 = vector.shape_cast %115 : vector<7xf32> to vector<7x1xf32>
    %117 = tpu.reciprocal %116 {approx = true} : vector<7x1xf32> -> vector<7x1xf32>
    %118 = vector.broadcast %117 : vector<7x1xf32> to vector<7x7xf32>
    %119 = arith.mulf %114, %118 : vector<7x7xf32>
    %120 = arith.truncf %119 : vector<7x7xf32> to vector<7x7xbf16>
    %121 = vector.extract_strided_slice %7 {offsets = [0, 24], sizes = [7, 8], strides = [1, 1]} : vector<7x32xbf16> to vector<7x8xbf16>
    %cst_44 = arith.constant dense<0.000000e+00> : vector<7x8xf32>
    %122 = tpu.matmul %120, %121, %cst_44 {dimension_numbers = #tpu.dot_dimension_numbers<[1], [0], [0], [1], [0, 0, 1, 1], [], []>} : vector<7x7xbf16>, vector<7x8xbf16>, vector<7x8xf32> -> vector<7x8xf32>
    %123 = arith.truncf %122 : vector<7x8xf32> to vector<7x8xbf16>
    %124 = vector.extract_strided_slice %9 {offsets = [24, 0], sizes = [8, 32], strides = [1, 1]} : vector<32x32xbf16> to vector<8x32xbf16>
    %cst_45 = arith.constant dense<0.000000e+00> : vector<7x32xf32>
    %125 = tpu.matmul %123, %124, %cst_45 {dimension_numbers = #tpu.dot_dimension_numbers<[1], [0], [0], [1], [0, 0, 1, 1], [], []>} : vector<7x8xbf16>, vector<8x32xbf16>, vector<7x32xf32> -> vector<7x32xf32>
    %126 = arith.addf %97, %125 : vector<7x32xf32>
    %127 = arith.addf %1, %126 : vector<7x32xf32>
    %c0_46 = arith.constant 0 : index
    %c0_47 = arith.constant 0 : index
    %128 = vector.load %arg6[%c0_46, %c0_47] : memref<1x32xf32, #tpu.memory_space<vmem>>, vector<1x32xf32>
    %129 = vector.broadcast %128 : vector<1x32xf32> to vector<7x32xf32>
    %130 = arith.addf %127, %129 : vector<7x32xf32>
    %c0_48 = arith.constant 0 : index
    %c0_49 = arith.constant 0 : index
    %131 = vector.load %arg7[%c0_48, %c0_49] : memref<1x32xf32, #tpu.memory_space<vmem>>, vector<1x32xf32>
    %c0_50 = arith.constant 0 : index
    %c0_51 = arith.constant 0 : index
    %132 = vector.load %arg8[%c0_50, %c0_51] : memref<1x32xf32, #tpu.memory_space<vmem>>, vector<1x32xf32>
    %cst_52 = arith.constant dense<0.000000e+00> : vector<7xf32>
    %133 = vector.multi_reduction <add>, %130, %cst_52 [1] : vector<7x32xf32> to vector<7xf32>
    %134 = vector.shape_cast %133 : vector<7xf32> to vector<7x1xf32>
    %cst_53 = arith.constant 3.200000e+01 : f32
    %135 = vector.broadcast %cst_53 : f32 to vector<7x1xf32>
    %136 = arith.divf %134, %135 : vector<7x1xf32>
    %137 = vector.broadcast %136 : vector<7x1xf32> to vector<7x32xf32>
    %138 = arith.subf %130, %137 : vector<7x32xf32>
    %139 = arith.mulf %138, %138 : vector<7x32xf32>
    %cst_54 = arith.constant dense<0.000000e+00> : vector<7xf32>
    %140 = vector.multi_reduction <add>, %139, %cst_54 [1] : vector<7x32xf32> to vector<7xf32>
    %141 = vector.shape_cast %140 : vector<7xf32> to vector<7x1xf32>
    %cst_55 = arith.constant 3.200000e+01 : f32
    %142 = vector.broadcast %cst_55 : f32 to vector<7x1xf32>
    %143 = arith.divf %141, %142 : vector<7x1xf32>
    %144 = vector.broadcast %136 : vector<7x1xf32> to vector<7x32xf32>
    %145 = arith.subf %130, %144 : vector<7x32xf32>
    %cst_56 = arith.constant 9.99999974E-6 : f32
    %146 = vector.broadcast %cst_56 : f32 to vector<7x1xf32>
    %147 = arith.addf %143, %146 : vector<7x1xf32>
    %148 = math.rsqrt %147 : vector<7x1xf32>
    %149 = vector.broadcast %148 : vector<7x1xf32> to vector<7x32xf32>
    %150 = arith.mulf %145, %149 : vector<7x32xf32>
    %151 = vector.broadcast %131 : vector<1x32xf32> to vector<7x32xf32>
    %152 = arith.mulf %150, %151 : vector<7x32xf32>
    %153 = vector.broadcast %132 : vector<1x32xf32> to vector<7x32xf32>
    %154 = arith.addf %152, %153 : vector<7x32xf32>
    %155 = arith.truncf %154 : vector<7x32xf32> to vector<7x32xbf16>
    %c0_57 = arith.constant 0 : index
    %c0_58 = arith.constant 0 : index
    %156 = vector.load %arg9[%c0_57, %c0_58] : memref<32x64xbf16, #tpu.memory_space<vmem>>, vector<32x64xbf16>
    %cst_59 = arith.constant dense<0.000000e+00> : vector<7x64xf32>
    %157 = tpu.matmul %155, %156, %cst_59 {dimension_numbers = #tpu.dot_dimension_numbers<[1], [0], [0], [1], [0, 0, 1, 1], [], []>} : vector<7x32xbf16>, vector<32x64xbf16>, vector<7x64xf32> -> vector<7x64xf32>
    %c0_60 = arith.constant 0 : index
    %c0_61 = arith.constant 0 : index
    %158 = vector.load %arg10[%c0_60, %c0_61] : memref<1x64xf32, #tpu.memory_space<vmem>>, vector<1x64xf32>
    %159 = vector.broadcast %158 : vector<1x64xf32> to vector<7x64xf32>
    %160 = arith.addf %157, %159 : vector<7x64xf32>
    %161 = vector.extract_strided_slice %160 {offsets = [0, 0], sizes = [7, 32], strides = [1, 1]} : vector<7x64xf32> to vector<7x32xf32>
    %162 = vector.extract_strided_slice %160 {offsets = [0, 32], sizes = [7, 32], strides = [1, 1]} : vector<7x64xf32> to vector<7x32xf32>
    %163 = arith.negf %162 : vector<7x32xf32>
    %164 = math.exp %163 : vector<7x32xf32>
    %cst_62 = arith.constant 1.000000e+00 : f32
    %165 = vector.broadcast %cst_62 : f32 to vector<7x32xf32>
    %166 = arith.addf %165, %164 : vector<7x32xf32>
    %167 = arith.divf %165, %166 : vector<7x32xf32>
    %168 = arith.mulf %161, %167 : vector<7x32xf32>
    %169 = tpu.iota {dimensions = array<i32: 0>} : vector<7x7xi32>
    %170 = tpu.iota {dimensions = array<i32: 1>} : vector<7x7xi32>
    %c0_63 = arith.constant 0 : index
    %c0_64 = arith.constant 0 : index
    %171 = vector.load %arg11[%c0_63, %c0_64] : memref<7x32xf32, #tpu.memory_space<vmem>>, vector<7x32xf32>
    %cst_65 = arith.constant 0.000000e+00 : f32
    %172 = vector.broadcast %cst_65 : f32 to vector<7x32xf32>
    %173 = arith.subi %170, %169 : vector<7x7xi32>
    %c-3_i32 = arith.constant -3 : i32
    %174 = vector.broadcast %c-3_i32 : i32 to vector<7x7xi32>
    %175 = arith.cmpi eq, %173, %174 : vector<7x7xi32>
    %176 = arith.extui %175 : vector<7x7xi1> to vector<7x7xi32>
    %177 = arith.sitofp %176 : vector<7x7xi32> to vector<7x7xf32>
    %cst_66 = arith.constant dense<0.000000e+00> : vector<7x32xf32>
    %178 = tpu.matmul %177, %168, %cst_66 {dimension_numbers = #tpu.dot_dimension_numbers<[1], [0], [0], [1], [0, 0, 1, 1], [], []>} : vector<7x7xf32>, vector<7x32xf32>, vector<7x32xf32> -> vector<7x32xf32>
    %179 = vector.extract_strided_slice %171 {offsets = [0, 0], sizes = [1, 32], strides = [1, 1]} : vector<7x32xf32> to vector<1x32xf32>
    %180 = vector.broadcast %179 : vector<1x32xf32> to vector<7x32xf32>
    %181 = arith.mulf %178, %180 : vector<7x32xf32>
    %182 = arith.addf %172, %181 : vector<7x32xf32>
    %183 = arith.subi %170, %169 : vector<7x7xi32>
    %c-2_i32 = arith.constant -2 : i32
    %184 = vector.broadcast %c-2_i32 : i32 to vector<7x7xi32>
    %185 = arith.cmpi eq, %183, %184 : vector<7x7xi32>
    %186 = arith.extui %185 : vector<7x7xi1> to vector<7x7xi32>
    %187 = arith.sitofp %186 : vector<7x7xi32> to vector<7x7xf32>
    %cst_67 = arith.constant dense<0.000000e+00> : vector<7x32xf32>
    %188 = tpu.matmul %187, %168, %cst_67 {dimension_numbers = #tpu.dot_dimension_numbers<[1], [0], [0], [1], [0, 0, 1, 1], [], []>} : vector<7x7xf32>, vector<7x32xf32>, vector<7x32xf32> -> vector<7x32xf32>
    %189 = vector.extract_strided_slice %171 {offsets = [1, 0], sizes = [1, 32], strides = [1, 1]} : vector<7x32xf32> to vector<1x32xf32>
    %190 = vector.broadcast %189 : vector<1x32xf32> to vector<7x32xf32>
    %191 = arith.mulf %188, %190 : vector<7x32xf32>
    %192 = arith.addf %182, %191 : vector<7x32xf32>
    %193 = arith.subi %170, %169 : vector<7x7xi32>
    %c-1_i32 = arith.constant -1 : i32
    %194 = vector.broadcast %c-1_i32 : i32 to vector<7x7xi32>
    %195 = arith.cmpi eq, %193, %194 : vector<7x7xi32>
    %196 = arith.extui %195 : vector<7x7xi1> to vector<7x7xi32>
    %197 = arith.sitofp %196 : vector<7x7xi32> to vector<7x7xf32>
    %cst_68 = arith.constant dense<0.000000e+00> : vector<7x32xf32>
    %198 = tpu.matmul %197, %168, %cst_68 {dimension_numbers = #tpu.dot_dimension_numbers<[1], [0], [0], [1], [0, 0, 1, 1], [], []>} : vector<7x7xf32>, vector<7x32xf32>, vector<7x32xf32> -> vector<7x32xf32>
    %199 = vector.extract_strided_slice %171 {offsets = [2, 0], sizes = [1, 32], strides = [1, 1]} : vector<7x32xf32> to vector<1x32xf32>
    %200 = vector.broadcast %199 : vector<1x32xf32> to vector<7x32xf32>
    %201 = arith.mulf %198, %200 : vector<7x32xf32>
    %202 = arith.addf %192, %201 : vector<7x32xf32>
    %203 = arith.subi %170, %169 : vector<7x7xi32>
    %c0_i32 = arith.constant 0 : i32
    %204 = vector.broadcast %c0_i32 : i32 to vector<7x7xi32>
    %205 = arith.cmpi eq, %203, %204 : vector<7x7xi32>
    %206 = arith.extui %205 : vector<7x7xi1> to vector<7x7xi32>
    %207 = arith.sitofp %206 : vector<7x7xi32> to vector<7x7xf32>
    %cst_69 = arith.constant dense<0.000000e+00> : vector<7x32xf32>
    %208 = tpu.matmul %207, %168, %cst_69 {dimension_numbers = #tpu.dot_dimension_numbers<[1], [0], [0], [1], [0, 0, 1, 1], [], []>} : vector<7x7xf32>, vector<7x32xf32>, vector<7x32xf32> -> vector<7x32xf32>
    %209 = vector.extract_strided_slice %171 {offsets = [3, 0], sizes = [1, 32], strides = [1, 1]} : vector<7x32xf32> to vector<1x32xf32>
    %210 = vector.broadcast %209 : vector<1x32xf32> to vector<7x32xf32>
    %211 = arith.mulf %208, %210 : vector<7x32xf32>
    %212 = arith.addf %202, %211 : vector<7x32xf32>
    %213 = arith.subi %170, %169 : vector<7x7xi32>
    %c1_i32 = arith.constant 1 : i32
    %214 = vector.broadcast %c1_i32 : i32 to vector<7x7xi32>
    %215 = arith.cmpi eq, %213, %214 : vector<7x7xi32>
    %216 = arith.extui %215 : vector<7x7xi1> to vector<7x7xi32>
    %217 = arith.sitofp %216 : vector<7x7xi32> to vector<7x7xf32>
    %cst_70 = arith.constant dense<0.000000e+00> : vector<7x32xf32>
    %218 = tpu.matmul %217, %168, %cst_70 {dimension_numbers = #tpu.dot_dimension_numbers<[1], [0], [0], [1], [0, 0, 1, 1], [], []>} : vector<7x7xf32>, vector<7x32xf32>, vector<7x32xf32> -> vector<7x32xf32>
    %219 = vector.extract_strided_slice %171 {offsets = [4, 0], sizes = [1, 32], strides = [1, 1]} : vector<7x32xf32> to vector<1x32xf32>
    %220 = vector.broadcast %219 : vector<1x32xf32> to vector<7x32xf32>
    %221 = arith.mulf %218, %220 : vector<7x32xf32>
    %222 = arith.addf %212, %221 : vector<7x32xf32>
    %223 = arith.subi %170, %169 : vector<7x7xi32>
    %c2_i32 = arith.constant 2 : i32
    %224 = vector.broadcast %c2_i32 : i32 to vector<7x7xi32>
    %225 = arith.cmpi eq, %223, %224 : vector<7x7xi32>
    %226 = arith.extui %225 : vector<7x7xi1> to vector<7x7xi32>
    %227 = arith.sitofp %226 : vector<7x7xi32> to vector<7x7xf32>
    %cst_71 = arith.constant dense<0.000000e+00> : vector<7x32xf32>
    %228 = tpu.matmul %227, %168, %cst_71 {dimension_numbers = #tpu.dot_dimension_numbers<[1], [0], [0], [1], [0, 0, 1, 1], [], []>} : vector<7x7xf32>, vector<7x32xf32>, vector<7x32xf32> -> vector<7x32xf32>
    %229 = vector.extract_strided_slice %171 {offsets = [5, 0], sizes = [1, 32], strides = [1, 1]} : vector<7x32xf32> to vector<1x32xf32>
    %230 = vector.broadcast %229 : vector<1x32xf32> to vector<7x32xf32>
    %231 = arith.mulf %228, %230 : vector<7x32xf32>
    %232 = arith.addf %222, %231 : vector<7x32xf32>
    %233 = arith.subi %170, %169 : vector<7x7xi32>
    %c3_i32 = arith.constant 3 : i32
    %234 = vector.broadcast %c3_i32 : i32 to vector<7x7xi32>
    %235 = arith.cmpi eq, %233, %234 : vector<7x7xi32>
    %236 = arith.extui %235 : vector<7x7xi1> to vector<7x7xi32>
    %237 = arith.sitofp %236 : vector<7x7xi32> to vector<7x7xf32>
    %cst_72 = arith.constant dense<0.000000e+00> : vector<7x32xf32>
    %238 = tpu.matmul %237, %168, %cst_72 {dimension_numbers = #tpu.dot_dimension_numbers<[1], [0], [0], [1], [0, 0, 1, 1], [], []>} : vector<7x7xf32>, vector<7x32xf32>, vector<7x32xf32> -> vector<7x32xf32>
    %239 = vector.extract_strided_slice %171 {offsets = [6, 0], sizes = [1, 32], strides = [1, 1]} : vector<7x32xf32> to vector<1x32xf32>
    %240 = vector.broadcast %239 : vector<1x32xf32> to vector<7x32xf32>
    %241 = arith.mulf %238, %240 : vector<7x32xf32>
    %242 = arith.addf %232, %241 : vector<7x32xf32>
    %c0_73 = arith.constant 0 : index
    %c0_74 = arith.constant 0 : index
    %243 = vector.load %arg12[%c0_73, %c0_74] : memref<1x32xf32, #tpu.memory_space<vmem>>, vector<1x32xf32>
    %244 = vector.broadcast %243 : vector<1x32xf32> to vector<7x32xf32>
    %245 = arith.mulf %242, %244 : vector<7x32xf32>
    %c0_75 = arith.constant 0 : index
    %c0_76 = arith.constant 0 : index
    %246 = vector.load %arg13[%c0_75, %c0_76] : memref<1x32xf32, #tpu.memory_space<vmem>>, vector<1x32xf32>
    %247 = vector.broadcast %246 : vector<1x32xf32> to vector<7x32xf32>
    %248 = arith.addf %245, %247 : vector<7x32xf32>
    %249 = arith.negf %248 : vector<7x32xf32>
    %250 = math.exp %249 : vector<7x32xf32>
    %cst_77 = arith.constant 1.000000e+00 : f32
    %251 = vector.broadcast %cst_77 : f32 to vector<7x32xf32>
    %252 = arith.addf %251, %250 : vector<7x32xf32>
    %253 = arith.divf %251, %252 : vector<7x32xf32>
    %254 = arith.mulf %248, %253 : vector<7x32xf32>
    %255 = arith.truncf %254 : vector<7x32xf32> to vector<7x32xbf16>
    %c0_78 = arith.constant 0 : index
    %c0_79 = arith.constant 0 : index
    %256 = vector.load %arg14[%c0_78, %c0_79] : memref<32x32xbf16, #tpu.memory_space<vmem>>, vector<32x32xbf16>
    %cst_80 = arith.constant dense<0.000000e+00> : vector<7x32xf32>
    %257 = tpu.matmul %255, %256, %cst_80 {dimension_numbers = #tpu.dot_dimension_numbers<[1], [0], [0], [1], [0, 0, 1, 1], [], []>} : vector<7x32xbf16>, vector<32x32xbf16>, vector<7x32xf32> -> vector<7x32xf32>
    %c0_81 = arith.constant 0 : index
    %c0_82 = arith.constant 0 : index
    %258 = vector.load %arg15[%c0_81, %c0_82] : memref<1x32xf32, #tpu.memory_space<vmem>>, vector<1x32xf32>
    %259 = vector.broadcast %258 : vector<1x32xf32> to vector<7x32xf32>
    %260 = arith.addf %257, %259 : vector<7x32xf32>
    %261 = arith.addf %130, %260 : vector<7x32xf32>
    %c0_83 = arith.constant 0 : index
    %c0_84 = arith.constant 0 : index
    %262 = vector.load %arg16[%c0_83, %c0_84] : memref<1x32xf32, #tpu.memory_space<vmem>>, vector<1x32xf32>
    %c0_85 = arith.constant 0 : index
    %c0_86 = arith.constant 0 : index
    %263 = vector.load %arg17[%c0_85, %c0_86] : memref<1x32xf32, #tpu.memory_space<vmem>>, vector<1x32xf32>
    %c0_87 = arith.constant 0 : index
    %c0_88 = arith.constant 0 : index
    %264 = vector.load %arg18[%c0_87, %c0_88] : memref<32x128xbf16, #tpu.memory_space<vmem>>, vector<32x128xbf16>
    %c0_89 = arith.constant 0 : index
    %c0_90 = arith.constant 0 : index
    %265 = vector.load %arg19[%c0_89, %c0_90] : memref<1x128xf32, #tpu.memory_space<vmem>>, vector<1x128xf32>
    %c0_91 = arith.constant 0 : index
    %c0_92 = arith.constant 0 : index
    %266 = vector.load %arg20[%c0_91, %c0_92] : memref<128x32xbf16, #tpu.memory_space<vmem>>, vector<128x32xbf16>
    %c0_93 = arith.constant 0 : index
    %c0_94 = arith.constant 0 : index
    %267 = vector.load %arg21[%c0_93, %c0_94] : memref<1x32xf32, #tpu.memory_space<vmem>>, vector<1x32xf32>
    %cst_95 = arith.constant dense<0.000000e+00> : vector<7xf32>
    %268 = vector.multi_reduction <add>, %261, %cst_95 [1] : vector<7x32xf32> to vector<7xf32>
    %269 = vector.shape_cast %268 : vector<7xf32> to vector<7x1xf32>
    %cst_96 = arith.constant 3.200000e+01 : f32
    %270 = vector.broadcast %cst_96 : f32 to vector<7x1xf32>
    %271 = arith.divf %269, %270 : vector<7x1xf32>
    %272 = vector.broadcast %271 : vector<7x1xf32> to vector<7x32xf32>
    %273 = arith.subf %261, %272 : vector<7x32xf32>
    %274 = arith.mulf %273, %273 : vector<7x32xf32>
    %cst_97 = arith.constant dense<0.000000e+00> : vector<7xf32>
    %275 = vector.multi_reduction <add>, %274, %cst_97 [1] : vector<7x32xf32> to vector<7xf32>
    %276 = vector.shape_cast %275 : vector<7xf32> to vector<7x1xf32>
    %cst_98 = arith.constant 3.200000e+01 : f32
    %277 = vector.broadcast %cst_98 : f32 to vector<7x1xf32>
    %278 = arith.divf %276, %277 : vector<7x1xf32>
    %279 = vector.broadcast %271 : vector<7x1xf32> to vector<7x32xf32>
    %280 = arith.subf %261, %279 : vector<7x32xf32>
    %cst_99 = arith.constant 9.99999974E-6 : f32
    %281 = vector.broadcast %cst_99 : f32 to vector<7x1xf32>
    %282 = arith.addf %278, %281 : vector<7x1xf32>
    %283 = math.rsqrt %282 : vector<7x1xf32>
    %284 = vector.broadcast %283 : vector<7x1xf32> to vector<7x32xf32>
    %285 = arith.mulf %280, %284 : vector<7x32xf32>
    %286 = vector.broadcast %262 : vector<1x32xf32> to vector<7x32xf32>
    %287 = arith.mulf %285, %286 : vector<7x32xf32>
    %288 = vector.broadcast %263 : vector<1x32xf32> to vector<7x32xf32>
    %289 = arith.addf %287, %288 : vector<7x32xf32>
    %290 = arith.truncf %289 : vector<7x32xf32> to vector<7x32xbf16>
    %cst_100 = arith.constant dense<0.000000e+00> : vector<7x128xf32>
    %291 = tpu.matmul %290, %264, %cst_100 {dimension_numbers = #tpu.dot_dimension_numbers<[1], [0], [0], [1], [0, 0, 1, 1], [], []>} : vector<7x32xbf16>, vector<32x128xbf16>, vector<7x128xf32> -> vector<7x128xf32>
    %292 = vector.broadcast %265 : vector<1x128xf32> to vector<7x128xf32>
    %293 = arith.addf %291, %292 : vector<7x128xf32>
    %294 = arith.negf %293 : vector<7x128xf32>
    %295 = math.exp %294 : vector<7x128xf32>
    %cst_101 = arith.constant 1.000000e+00 : f32
    %296 = vector.broadcast %cst_101 : f32 to vector<7x128xf32>
    %297 = arith.addf %296, %295 : vector<7x128xf32>
    %298 = arith.divf %296, %297 : vector<7x128xf32>
    %299 = arith.mulf %293, %298 : vector<7x128xf32>
    %300 = arith.truncf %299 : vector<7x128xf32> to vector<7x128xbf16>
    %cst_102 = arith.constant dense<0.000000e+00> : vector<7x32xf32>
    %301 = tpu.matmul %300, %266, %cst_102 {dimension_numbers = #tpu.dot_dimension_numbers<[1], [0], [0], [1], [0, 0, 1, 1], [], []>} : vector<7x128xbf16>, vector<128x32xbf16>, vector<7x32xf32> -> vector<7x32xf32>
    %302 = vector.broadcast %267 : vector<1x32xf32> to vector<7x32xf32>
    %303 = arith.addf %301, %302 : vector<7x32xf32>
    %cst_103 = arith.constant 5.000000e-01 : f32
    %304 = vector.broadcast %cst_103 : f32 to vector<7x32xf32>
    %305 = arith.mulf %304, %303 : vector<7x32xf32>
    %306 = arith.addf %261, %305 : vector<7x32xf32>
    %c0_104 = arith.constant 0 : index
    %c0_105 = arith.constant 0 : index
    %307 = vector.load %arg22[%c0_104, %c0_105] : memref<1x32xf32, #tpu.memory_space<vmem>>, vector<1x32xf32>
    %c0_106 = arith.constant 0 : index
    %c0_107 = arith.constant 0 : index
    %308 = vector.load %arg23[%c0_106, %c0_107] : memref<1x32xf32, #tpu.memory_space<vmem>>, vector<1x32xf32>
    %cst_108 = arith.constant dense<0.000000e+00> : vector<7xf32>
    %309 = vector.multi_reduction <add>, %306, %cst_108 [1] : vector<7x32xf32> to vector<7xf32>
    %310 = vector.shape_cast %309 : vector<7xf32> to vector<7x1xf32>
    %cst_109 = arith.constant 3.200000e+01 : f32
    %311 = vector.broadcast %cst_109 : f32 to vector<7x1xf32>
    %312 = arith.divf %310, %311 : vector<7x1xf32>
    %313 = vector.broadcast %312 : vector<7x1xf32> to vector<7x32xf32>
    %314 = arith.subf %306, %313 : vector<7x32xf32>
    %315 = arith.mulf %314, %314 : vector<7x32xf32>
    %cst_110 = arith.constant dense<0.000000e+00> : vector<7xf32>
    %316 = vector.multi_reduction <add>, %315, %cst_110 [1] : vector<7x32xf32> to vector<7xf32>
    %317 = vector.shape_cast %316 : vector<7xf32> to vector<7x1xf32>
    %cst_111 = arith.constant 3.200000e+01 : f32
    %318 = vector.broadcast %cst_111 : f32 to vector<7x1xf32>
    %319 = arith.divf %317, %318 : vector<7x1xf32>
    %320 = vector.broadcast %312 : vector<7x1xf32> to vector<7x32xf32>
    %321 = arith.subf %306, %320 : vector<7x32xf32>
    %cst_112 = arith.constant 9.99999974E-6 : f32
    %322 = vector.broadcast %cst_112 : f32 to vector<7x1xf32>
    %323 = arith.addf %319, %322 : vector<7x1xf32>
    %324 = math.rsqrt %323 : vector<7x1xf32>
    %325 = vector.broadcast %324 : vector<7x1xf32> to vector<7x32xf32>
    %326 = arith.mulf %321, %325 : vector<7x32xf32>
    %327 = vector.broadcast %307 : vector<1x32xf32> to vector<7x32xf32>
    %328 = arith.mulf %326, %327 : vector<7x32xf32>
    %329 = vector.broadcast %308 : vector<1x32xf32> to vector<7x32xf32>
    %330 = arith.addf %328, %329 : vector<7x32xf32>
    %c0_113 = arith.constant 0 : index
    %c0_114 = arith.constant 0 : index
    %c0_115 = arith.constant 0 : index
    %331 = vector.load %arg24[%c0_113, %c0_114, %c0_115] : memref<1x7x32xf32, #tpu.memory_space<vmem>>, vector<1x7x32xf32>
    %332 = vector.shape_cast %331 : vector<1x7x32xf32> to vector<7x32xf32>
    %333 = vector.shape_cast %330 : vector<7x32xf32> to vector<1x7x32xf32>
    tpu.vector_store %arg24[%c0_113, %c0_114, %c0_115], %333 {strides = array<i32>} : memref<1x7x32xf32, #tpu.memory_space<vmem>>, vector<1x7x32xf32>,
    return
  }
  func.func @transform_0(%arg0: i32) -> (i32, i32, i32) {
    %c0_i32 = arith.constant 0 : i32
    %c0_i32_0 = arith.constant 0 : i32
    %c0_i32_1 = arith.constant 0 : i32
    return %arg0, %c0_i32, %c0_i32_0 : i32, i32, i32
  }
  func.func @transform_1(%arg0: i32) -> (i32, i32, i32) {
    %c0_i32 = arith.constant 0 : i32
    %c0_i32_0 = arith.constant 0 : i32
    %c0_i32_1 = arith.constant 0 : i32
    return %arg0, %c0_i32, %c0_i32_0 : i32, i32, i32
  }
  func.func @transform_2(%arg0: i32) -> (i32, i32, i32, i32) {
    %c0_i32 = arith.constant 0 : i32
    %c0_i32_0 = arith.constant 0 : i32
    %c0_i32_1 = arith.constant 0 : i32
    %c0_i32_2 = arith.constant 0 : i32
    return %arg0, %c0_i32, %c0_i32_0, %c0_i32_1 : i32, i32, i32, i32
  }
  func.func @transform_3(%arg0: i32) -> (i32, i32) {
    %c0_i32 = arith.constant 0 : i32
    %c0_i32_0 = arith.constant 0 : i32
    %c0_i32_1 = arith.constant 0 : i32
    return %c0_i32, %c0_i32_0 : i32, i32
  }
  func.func @transform_4(%arg0: i32) -> (i32, i32) {
    %c0_i32 = arith.constant 0 : i32
    %c0_i32_0 = arith.constant 0 : i32
    %c0_i32_1 = arith.constant 0 : i32
    return %c0_i32, %c0_i32_0 : i32, i32
  }
  func.func @transform_5(%arg0: i32) -> (i32, i32) {
    %c0_i32 = arith.constant 0 : i32
    %c0_i32_0 = arith.constant 0 : i32
    %c0_i32_1 = arith.constant 0 : i32
    return %c0_i32, %c0_i32_0 : i32, i32
  }
  func.func @transform_6(%arg0: i32) -> (i32, i32) {
    %c0_i32 = arith.constant 0 : i32
    %c0_i32_0 = arith.constant 0 : i32
    %c0_i32_1 = arith.constant 0 : i32
    return %c0_i32, %c0_i32_0 : i32, i32
  }
  func.func @transform_7(%arg0: i32) -> (i32, i32) {
    %c0_i32 = arith.constant 0 : i32
    %c0_i32_0 = arith.constant 0 : i32
    %c0_i32_1 = arith.constant 0 : i32
    return %c0_i32, %c0_i32_0 : i32, i32
  }
  func.func @transform_8(%arg0: i32) -> (i32, i32) {
    %c0_i32 = arith.constant 0 : i32
    %c0_i32_0 = arith.constant 0 : i32
    %c0_i32_1 = arith.constant 0 : i32
    return %c0_i32, %c0_i32_0 : i32, i32
  }
  func.func @transform_9(%arg0: i32) -> (i32, i32) {
    %c0_i32 = arith.constant 0 : i32
    %c0_i32_0 = arith.constant 0 : i32
    %c0_i32_1 = arith.constant 0 : i32
    return %c0_i32, %c0_i32_0 : i32, i32
  }
  func.func @transform_10(%arg0: i32) -> (i32, i32) {
    %c0_i32 = arith.constant 0 : i32
    %c0_i32_0 = arith.constant 0 : i32
    %c0_i32_1 = arith.constant 0 : i32
    return %c0_i32, %c0_i32_0 : i32, i32
  }
  func.func @transform_11(%arg0: i32) -> (i32, i32) {
    %c0_i32 = arith.constant 0 : i32
    %c0_i32_0 = arith.constant 0 : i32
    %c0_i32_1 = arith.constant 0 : i32
    return %c0_i32, %c0_i32_0 : i32, i32
  }
  func.func @transform_12(%arg0: i32) -> (i32, i32) {
    %c0_i32 = arith.constant 0 : i32
    %c0_i32_0 = arith.constant 0 : i32
    %c0_i32_1 = arith.constant 0 : i32
    return %c0_i32, %c0_i32_0 : i32, i32
  }
  func.func @transform_13(%arg0: i32) -> (i32, i32) {
    %c0_i32 = arith.constant 0 : i32
    %c0_i32_0 = arith.constant 0 : i32
    %c0_i32_1 = arith.constant 0 : i32
    return %c0_i32, %c0_i32_0 : i32, i32
  }
  func.func @transform_14(%arg0: i32) -> (i32, i32) {
    %c0_i32 = arith.constant 0 : i32
    %c0_i32_0 = arith.constant 0 : i32
    %c0_i32_1 = arith.constant 0 : i32
    return %c0_i32, %c0_i32_0 : i32, i32
  }
  func.func @transform_15(%arg0: i32) -> (i32, i32) {
    %c0_i32 = arith.constant 0 : i32
    %c0_i32_0 = arith.constant 0 : i32
    %c0_i32_1 = arith.constant 0 : i32
    return %c0_i32, %c0_i32_0 : i32, i32
  }
  func.func @transform_16(%arg0: i32) -> (i32, i32) {
    %c0_i32 = arith.constant 0 : i32
    %c0_i32_0 = arith.constant 0 : i32
    %c0_i32_1 = arith.constant 0 : i32
    return %c0_i32, %c0_i32_0 : i32, i32
  }
  func.func @transform_17(%arg0: i32) -> (i32, i32) {
    %c0_i32 = arith.constant 0 : i32
    %c0_i32_0 = arith.constant 0 : i32
    %c0_i32_1 = arith.constant 0 : i32
    return %c0_i32, %c0_i32_0 : i32, i32
  }
  func.func @transform_18(%arg0: i32) -> (i32, i32) {
    %c0_i32 = arith.constant 0 : i32
    %c0_i32_0 = arith.constant 0 : i32
    %c0_i32_1 = arith.constant 0 : i32
    return %c0_i32, %c0_i32_0 : i32, i32
  }
  func.func @transform_19(%arg0: i32) -> (i32, i32) {
    %c0_i32 = arith.constant 0 : i32
    %c0_i32_0 = arith.constant 0 : i32
    %c0_i32_1 = arith.constant 0 : i32
    return %c0_i32, %c0_i32_0 : i32, i32
  }
  func.func @transform_20(%arg0: i32) -> (i32, i32) {
    %c0_i32 = arith.constant 0 : i32
    %c0_i32_0 = arith.constant 0 : i32
    %c0_i32_1 = arith.constant 0 : i32
    return %c0_i32, %c0_i32_0 : i32, i32
  }
  func.func @transform_21(%arg0: i32) -> (i32, i32) {
    %c0_i32 = arith.constant 0 : i32
    %c0_i32_0 = arith.constant 0 : i32
    %c0_i32_1 = arith.constant 0 : i32
    return %c0_i32, %c0_i32_0 : i32, i32
  }
  func.func @transform_22(%arg0: i32) -> (i32, i32) {
    %c0_i32 = arith.constant 0 : i32
    %c0_i32_0 = arith.constant 0 : i32
    %c0_i32_1 = arith.constant 0 : i32
    return %c0_i32, %c0_i32_0 : i32, i32
  }
  func.func @transform_23(%arg0: i32) -> (i32, i32, i32) {
    %c0_i32 = arith.constant 0 : i32
    %c0_i32_0 = arith.constant 0 : i32
    %c0_i32_1 = arith.constant 0 : i32
    return %arg0, %c0_i32, %c0_i32_0 : i32, i32, i32
  }
}

</mosaic_0001>

<bundles_post_ra>
// kernel: conformer_encoder.7
= control target key start
LH: loop header
LB: loop body
LE: loop exit
PB: predicated region body
PF: predicated region fallthrough
CT: control target
= control target key end

     0   :  { %s514_s12 = smov 0   ;;  %s620_s0 = inlined_call_operand.vmem [shape: f32[224,9], index: 0, kind: input, shape index: {}]   ;;  %s621_s1 = inlined_call_operand.vmem [shape: bf16[9,32], index: 1, kind: input, shape index: {}]   ;;  %s622_s2 = inlined_call_operand.vmem [shape: f32[1,32], index: 2, kind: input, shape index: {}]   ;;  %s623_s3 = inlined_call_operand.vmem [shape: f32[224,32], index: 3, kind: output, shape index: {}]  }
   0x1 LB: > { %s413_s13 = sadd.s32 4294967295, %s489_s12   ;;  %p417_p0 = scmp.ge.s32.totalorder %s489_s12, 1  ;;  %s489_s12 = sphi %s514_s12, %s13_s12  }
   0x2   : > { %p138_p1 = scmp.lt.s32.totalorder %s489_s12, 3 }
   0x4   : > { %p139_p2 = pnand %p417_p0, %p138_p1 }
   0x5   : > { %s162_s16 = smul.u32 (!%p139_p2), 14, %s413_s13 }
   0x6   : > { %142 = sbr.rel (%p139_p2) target bundleno = 245 (0xf5), region = 32 }
   0x7   : > { %p163_p3 = scmp.lt.s32.totalorder (!%p139_p2), %s162_s16, 27 }
   0xb   : > { %vm232_vm0 = vcmask 1043456   ;;  %v491_v0 = vmov 0.0   ;;  %v482_v1 = vld [vmem:[%s621_s1] sm:$0x1f]   ;;  %vm233_vm1 = vcmask 1044480   ;;  %v492_v2 = vmov 65535  }
   0xc   : > { %439 = vmatprep.subr.bf16.mxu0 %v491_v0  ;;  %469 = vmatprep.subr.bf16.mxu1 %v491_v0  ;;  %v234_v3 = vsel %vm232_vm0, 4294967295, %v492_v2  ;;  %vm493_vm2 = vmmov 0   ;;  %s625_s16 = smov (!%p163_p3, %s162_s16), 27  ;;  %vm210_vm3 = vcmask 72704   ;;  %v566_v27 = vld [vmem:[%s622_s2] ss:$0 sm:$0xff] }
   0xd   : > { %441 = vmatprep.mubr.msk.bf16.mxu0 %vm493_vm2, %v491_v0  ;;  %457 = vmatprep.mubr.msk.bf16.mxu1 %vm493_vm2, %v491_v0  ;;  %v235_v4 = vsel %vm233_vm1, %v234_v3, 0  ;;  %s418_s17 = sshll.u32 %s625_s16, 3  ;;  %vm342_vm4 = vcmask 261120  }
   0xe   : > { %v237_v5 = vand.u32 %v482_v1, %v235_v4  ;;  %s535_s20 = scalar_lea.vmem %s620_s0, %s418_s17  ;;  %s574_s25 = scalar_lea.vmem %s623_s3, %s418_s17 }
   0xf   : > { %v175_v6 = vld [vmem:[%s535_s20] sm:$0xff]  ;;  %v176_v7 = vld [vmem:[%s535_s20 + $0x8] sm:$0xff]  ;;  %v177_v12 = vld [vmem:[%s535_s20 + $0x10] sm:$0xff] }
  0x10   : > { %440 = vmatpush3.bf16.msra.mxu0 %v237_v5  ;;  %470 = vmatpush3.bf16.msra.mxu1 %v237_v5  ;;  %v183_v8 = vld [vmem:[%s535_s20 + $0x40] sm:$0xff]  ;;  %v189_v9 = vpack.c.bf16 %v176_v7, %v175_v6  ;;  %v184_v10 = vld [vmem:[%s535_s20 + $0x48] sm:$0xff]  ;;  %v178_v13 = vld [vmem:[%s535_s20 + $0x18] sm:$0xff] }
  0x11   : > { %v193_v11 = vpack.c.bf16 %v184_v10, %v183_v8  ;;  %v185_v14 = vld [vmem:[%s535_s20 + $0x50] sm:$0xff]  ;;  %v186_v15 = vld [vmem:[%s535_s20 + $0x58] sm:$0xff]  ;;  %v190_v16 = vpack.c.bf16 %v178_v13, %v177_v12  ;;  %v179_v18 = vld [vmem:[%s535_s20 + $0x20] sm:$0xff] }
  0x12   : > { %v194_v17 = vpack.c.bf16 %v186_v15, %v185_v14  ;;  %v180_v19 = vld [vmem:[%s535_s20 + $0x28] sm:$0xff]  ;;  %v187_v20 = vld [vmem:[%s535_s20 + $0x60] sm:$0xff]  ;;  %v181_v24 = vld [vmem:[%s535_s20 + $0x30] sm:$0xff] }
  0x13   : > { %442 = vmatmul.mubr.msk.bf16.vlgmr.msra.gmra.mxu0 %vm210_vm3, %v189_v9  ;;  %458 = vmatmul.mubr.msk.bf16.vlgmr.msra.gmra.mxu1 %vm210_vm3, %v193_v11  ;;  %v188_v21 = vld [vmem:[%s535_s20 + $0x68] sm:$0xff]  ;;  %v191_v22 = vpack.c.bf16 %v180_v19, %v179_v18  ;;  %v182_v25 = vld [vmem:[%s535_s20 + $0x38] sm:$0xff] }
  0x14   : > { %445 = vmatprep.mubr.msk.bf16.mxu0 %vm493_vm2, %v491_v0  ;;  %461 = vmatprep.mubr.msk.bf16.mxu1 %vm493_vm2, %v491_v0  ;;  %v195_v23 = vpack.c.bf16 %v188_v21, %v187_v20  ;;  %v192_v26 = vpack.c.bf16 %v182_v25, %v181_v24 }
  0x1b   : > { %446 = vmatmul.mubr.msk.bf16.gmra.mxu0 %vm210_vm3, %v190_v16  ;;  %462 = vmatmul.mubr.msk.bf16.gmra.mxu1 %vm210_vm3, %v194_v17 }
  0x1c   : > { %449 = vmatprep.mubr.msk.bf16.mxu0 %vm493_vm2, %v491_v0  ;;  %465 = vmatprep.mubr.msk.bf16.mxu1 %vm493_vm2, %v491_v0 }
  0x23   : > { %450 = vmatmul.mubr.msk.bf16.gmra.mxu0 %vm210_vm3, %v191_v22  ;;  %466 = vmatmul.mubr.msk.bf16.gmra.mxu1 %vm210_vm3, %v195_v23 }
  0x24   : > { %453 = vmatprep.mubr.msk.bf16.mxu0 %vm493_vm2, %v491_v0 }
  0x2b   : > { %454 = vmatmul.mubr.msk.bf16.gmra.mxu0 %vm210_vm3, %v192_v26 }
  0xd3   : > { %v273_v28 = vpop.f32.mrf.mxu0  ;;  %v305_v30 = vpop.f32.mrf.mxu1 }
  0xd4   : > { %v274_v29 = vadd.f32 %v566_v27, %v273_v28  ;;  %v306_v32 = vadd.f32 %v566_v27, %v305_v30 }
  0xd5   : > { %v443_v31 = vpop.f32.mrf.mxu0  ;;  %v459_v34 = vpop.f32.mrf.mxu1 }
  0xd6   : > { %v328_v33 = vmax.f32 %v274_v29, 0.0  ;;  %v336_v35 = vmax.f32 %v306_v32, 0.0 }
  0xd7   : > { %v276_v36 = vpop.f32.mrf.mxu0  ;;  %v308_v38 = vpop.f32.mrf.mxu1 }
  0xd8   : > { %343 = vst.msk [vmem:[%s574_s25] sm:$0xff] %vm342_vm4, %v328_v33  ;;  %v277_v37 = vadd.f32 %v566_v27, %v276_v36  ;;  %351 = vst.msk [vmem:[%s574_s25 + $0x40] sm:$0xff] %vm342_vm4, %v336_v35  ;;  %v309_v40 = vadd.f32 %v566_v27, %v308_v38 }
  0xd9   : > { %v444_v39 = vpop.f32.mrf.mxu0  ;;  %v460_v42 = vpop.f32.mrf.mxu1 }
  0xda   : > { %v329_v41 = vmax.f32 %v277_v37, 0.0  ;;  %v337_v43 = vmax.f32 %v309_v40, 0.0 }
  0xdb   : > { %v281_v44 = vpop.f32.mrf.mxu0  ;;  %v313_v46 = vpop.f32.mrf.mxu1 }
  0xdc   : > { %344 = vst.msk [vmem:[%s574_s25 + $0x8] sm:$0xff] %vm342_vm4, %v329_v41  ;;  %v282_v45 = vadd.f32 %v566_v27, %v281_v44  ;;  %352 = vst.msk [vmem:[%s574_s25 + $0x48] sm:$0xff] %vm342_vm4, %v337_v43  ;;  %v314_v48 = vadd.f32 %v566_v27, %v313_v46 }
  0xdd   : > { %v447_v47 = vpop.f32.mrf.mxu0  ;;  %v463_v50 = vpop.f32.mrf.mxu1 }
  0xde   : > { %v330_v49 = vmax.f32 %v282_v45, 0.0  ;;  %v338_v51 = vmax.f32 %v314_v48, 0.0 }
  0xdf   : > { %v284_v52 = vpop.f32.mrf.mxu0  ;;  %v316_v54 = vpop.f32.mrf.mxu1 }
  0xe0   : > { %345 = vst.msk [vmem:[%s574_s25 + $0x10] sm:$0xff] %vm342_vm4, %v330_v49  ;;  %v285_v53 = vadd.f32 %v566_v27, %v284_v52  ;;  %353 = vst.msk [vmem:[%s574_s25 + $0x50] sm:$0xff] %vm342_vm4, %v338_v51  ;;  %v317_v56 = vadd.f32 %v566_v27, %v316_v54 }
  0xe1   : > { %v448_v55 = vpop.f32.mrf.mxu0  ;;  %v464_v58 = vpop.f32.mrf.mxu1 }
  0xe2   : > { %v331_v57 = vmax.f32 %v285_v53, 0.0  ;;  %v339_v59 = vmax.f32 %v317_v56, 0.0 }
  0xe3   : > { %v289_v60 = vpop.f32.mrf.mxu0  ;;  %v321_v62 = vpop.f32.mrf.mxu1 }
  0xe4   : > { %346 = vst.msk [vmem:[%s574_s25 + $0x18] sm:$0xff] %vm342_vm4, %v331_v57  ;;  %v290_v61 = vadd.f32 %v566_v27, %v289_v60  ;;  %354 = vst.msk [vmem:[%s574_s25 + $0x58] sm:$0xff] %vm342_vm4, %v339_v59  ;;  %v322_v0 = vadd.f32 %v566_v27, %v321_v62 }
  0xe5   : > { %v451_v63 = vpop.f32.mrf.mxu0  ;;  %v467_v2 = vpop.f32.mrf.mxu1 }
  0xe6   : > { %v332_v1 = vmax.f32 %v290_v61, 0.0  ;;  %v340_v3 = vmax.f32 %v322_v0, 0.0 }
  0xe7   : > { %v292_v4 = vpop.f32.mrf.mxu0  ;;  %v324_v6 = vpop.f32.mrf.mxu1 }
  0xe8   : > { %347 = vst.msk [vmem:[%s574_s25 + $0x20] sm:$0xff] %vm342_vm4, %v332_v1  ;;  %v293_v5 = vadd.f32 %v566_v27, %v292_v4  ;;  %355 = vst.msk [vmem:[%s574_s25 + $0x60] sm:$0xff] %vm342_vm4, %v340_v3  ;;  %v325_v8 = vadd.f32 %v566_v27, %v324_v6 }
  0xe9   : > { %v452_v7 = vpop.f32.mrf.mxu0  ;;  %v468_v10 = vpop.f32.mrf.mxu1 }
  0xea   : > { %v333_v9 = vmax.f32 %v293_v5, 0.0  ;;  %v341_v11 = vmax.f32 %v325_v8, 0.0 }
  0xeb   : > { %v297_v12 = vpop.f32.mrf.mxu0 }
  0xec   : > { %348 = vst.msk [vmem:[%s574_s25 + $0x28] sm:$0xff] %vm342_vm4, %v333_v9  ;;  %v298_v13 = vadd.f32 %v566_v27, %v297_v12  ;;  %356 = vst.msk [vmem:[%s574_s25 + $0x68] sm:$0xff] %vm342_vm4, %v341_v11 }
  0xed   : > { %v455_v14 = vpop.f32.mrf.mxu0 }
  0xee   : > { %v334_v15 = vmax.f32 %v298_v13, 0.0 }
  0xef   : > { %v300_v16 = vpop.f32.mrf.mxu0 }
  0xf0   : > { %349 = vst.msk [vmem:[%s574_s25 + $0x30] sm:$0xff] %vm342_vm4, %v334_v15  ;;  %v301_v17 = vadd.f32 %v566_v27, %v300_v16 }
  0xf1   : > { %v456_v18 = vpop.f32.mrf.mxu0 }
  0xf2   : > { %v335_v19 = vmax.f32 %v301_v17, 0.0 }
  0xf4   : > { %350 = vst.msk [vmem:[%s574_s25 + $0x38] sm:$0xff] %vm342_vm4, %v335_v19 }
  0xf5 PF: > { %s13_s12 = sadd.s32 1, %s489_s12  }
  0xf6   : > { %p10_p4 = scmp.ge.s32.totalorder %s13_s12, 4  }
  0xf8   :  { %12 = sbr.rel (!%p10_p4) target bundleno = 1 (0x1), region = 62 }

// kernel: conformer_encoder.8
= control target key start
LH: loop header
LB: loop body
LE: loop exit
PB: predicated region body
PF: predicated region fallthrough
CT: control target
= control target key end

     0   :  { %s634_s12 = smov 0   ;;  %s728_s0 = inlined_call_operand.vmem [shape: f32[48,288], index: 0, kind: input, shape index: {}]   ;;  %s729_s1 = inlined_call_operand.vmem [shape: bf16[288,32], index: 1, kind: input, shape index: {}]   ;;  %s730_s2 = inlined_call_operand.vmem [shape: f32[1,32], index: 2, kind: input, shape index: {}]   ;;  %s731_s3 = inlined_call_operand.vmem [shape: f32[48,32], index: 3, kind: output, shape index: {}]  }
   0x1 LB: > { %s509_s13 = sadd.s32 4294967295, %s612_s12   ;;  %p513_p0 = scmp.ge.s32.totalorder %s612_s12, 1  ;;  %s612_s12 = sphi %s634_s12, %s13_s12  }
   0x2   : > { %p139_p1 = scmp.lt.s32.totalorder %s612_s12, 3 }
   0x4   : > { %p140_p2 = pnand %p513_p0, %p139_p1 }
   0x5   : > { %s164_s16 = smul.u32 (!%p140_p2), 3, %s509_s13 }
   0x6   : > { %143 = sbr.rel (%p140_p2) target bundleno = 256 (0x100), region = 32 }
   0x7   : > { %p165_p3 = scmp.lt.s32.totalorder (!%p140_p2), %s164_s16, 5 }
   0xb   : > { %v588_v0 = vld [vmem:[%s729_s1 + $0x78] sm:$0xff]   ;;  %v590_v2 = vld [vmem:[%s729_s1 + $0x70] sm:$0xff]   ;;  %v592_v4 = vld [vmem:[%s729_s1 + $0x68] sm:$0xff]   ;;  %s733_s16 = smov (!%p165_p3, %s164_s16), 5  ;;  %vm344_vm0 = vcmask 261120  }
   0xc   : > { %v589_v1 = vld [vmem:[%s729_s1 + $0x38] sm:$0xff]   ;;  %539 = vmatprep.subr.bf16.mxu0 %v588_v0  ;;  %v591_v3 = vld [vmem:[%s729_s1 + $0x30] sm:$0xff]   ;;  %v593_v5 = vld [vmem:[%s729_s1 + $0x28] sm:$0xff]   ;;  %s579_s4 = smul.u32 24, %s733_s16  ;;  %s515_s5 = sshll.u32 %s733_s16, 3 }
   0xd   : > { %540 = vmatpush3.bf16.msra.mxu0 %v589_v1  ;;  %v594_v6 = vld [vmem:[%s729_s1 + $0x60] sm:$0xff]   ;;  %v596_v8 = vld [vmem:[%s729_s1 + $0x58] sm:$0xff]   ;;  %v602_v9 = vld [vmem:[%s729_s1 + $0x88] sm:$0xff]   ;;  %s175_s8 = scalar_lea.vmem %s731_s3, %s515_s5 }
   0xe   : > { %541 = vmatprep.subr.bf16.mxu0 %v590_v2  ;;  %v595_v7 = vld [vmem:[%s729_s1 + $0x20] sm:$0xff]   ;;  %v597_v10 = vld [vmem:[%s729_s1 + $0x18] sm:$0xff]   ;;  %s681_s14 = scalar_lea.vmem %s728_s0, %s579_s4  ;;  %v598_v11 = vld [vmem:[%s729_s1 + $0x50] sm:$0xff]   ;;  %571 = vmatprep.subr.bf16.mxu1 %v602_v9 }
   0xf   : > { %572 = vmatpush3.bf16.msra.mxu1 %v602_v9  ;;  %v605_v12 = vld [vmem:[%s729_s1 + $0x80] sm:$0xff]   ;;  %v179_v13 = vld [vmem:[%s681_s14 + $0x8] sm:$0xff]  ;;  %v599_v15 = vld [vmem:[%s729_s1 + $0x10] sm:$0xff]  }
  0x10   : > { %v182_v14 = vld [vmem:[%s681_s14 + $0x20] sm:$0xff]  ;;  %573 = vmatprep.subr.bf16.mxu1 %v605_v12  ;;  %v180_v17 = vld [vmem:[%s681_s14 + $0x10] sm:$0xff]  ;;  %v183_v18 = vld [vmem:[%s681_s14 + $0x28] sm:$0xff] }
  0x11   : > { %542 = vmatpush3.bf16.msra.mxu0 %v591_v3  ;;  %v188_v16 = vpack.c.bf16 %v182_v14, %v179_v13  ;;  %v600_v19 = vld [vmem:[%s729_s1 + $0x48] sm:$0xff]   ;;  %v189_v20 = vpack.c.bf16 %v183_v18, %v180_v17  ;;  %v186_v21 = vld [vmem:[%s681_s14 + $0x40] sm:$0xff]  ;;  %v181_v27 = vld [vmem:[%s681_s14 + $0x18] sm:$0xff] }
  0x12   : > { %543 = vmatprep.subr.bf16.mxu0 %v592_v4  ;;  %v192_v22 = vpack.c.bf16 %v186_v21, %v186_v21  ;;  %v601_v23 = vld [vmem:[%s729_s1 + $0x8] sm:$0xff]   ;;  %v603_v24 = vld [vmem:[%s729_s1 + $0x40] sm:$0xff]   ;;  %v185_v28 = vld [vmem:[%s681_s14 + $0x38] sm:$0xff] }
  0x13   : > { %383 = vmatprep.mubr.bf16.mxu0 %v188_v16  ;;  %574 = vmatpush3.bf16.msra.mxu1 %v605_v12  ;;  %v604_v25 = vld [vmem:[%s729_s1] sm:$0xff]   ;;  %v191_v30 = vpack.c.bf16 %v185_v28, %v185_v28  ;;  %v184_v31 = vld [vmem:[%s681_s14 + $0x30] sm:$0xff] }
  0x14   : > { %575 = vmatprep.mubr.msk.bf16.mxu1 %vm344_vm0, %v189_v20  ;;  %v178_v26 = vld [vmem:[%s681_s14] sm:$0xff]  ;;  %v190_v32 = vpack.c.bf16 %v184_v31, %v184_v31 }
  0x15   : > { %544 = vmatpush3.bf16.msra.mxu0 %v593_v5  ;;  %v187_v29 = vpack.c.bf16 %v181_v27, %v178_v26  ;;  %v516_v38 = vld [vmem:[%s730_s2] ss:$0 sm:$0xff] }
  0x16   : > { %545 = vmatprep.subr.bf16.mxu0 %v594_v6  ;;  %576 = vmatmul.mubr.msk.bf16.vlgmr.msra.gmra.mxu1 %vm344_vm0, %v192_v22 }
  0x19   : > { %546 = vmatpush3.bf16.msra.mxu0 %v595_v7 }
  0x1a   : > { %547 = vmatprep.subr.bf16.mxu0 %v596_v8 }
  0x1d   : > { %548 = vmatpush3.bf16.msra.mxu0 %v597_v10 }
  0x1e   : > { %549 = vmatprep.subr.bf16.mxu0 %v598_v11 }
  0x21   : > { %550 = vmatpush3.bf16.msra.mxu0 %v599_v15 }
  0x22   : > { %551 = vmatprep.subr.bf16.mxu0 %v600_v19 }
  0x25   : > { %552 = vmatpush3.bf16.msra.mxu0 %v601_v23 }
  0x26   : > { %553 = vmatprep.subr.bf16.mxu0 %v603_v24 }
  0x29   : > { %554 = vmatpush3.bf16.msra.mxu0 %v604_v25 }
  0x2c   : > { %384 = vmatmul.mubr.bf16.vlgmr.msra.gmra.mxu0 %v187_v29 }
  0x2d   : > { %391 = vmatprep.mubr.bf16.mxu0 %v191_v30 }
  0x34   : > { %392 = vmatmul.mubr.bf16.gmra.mxu0 %v190_v32 }
  0xd6   : > { %v577_v33 = vpop.f32.mrf.mxu1 }
  0xd8   : > { %v433_v34 = vpop.f32.mrf.mxu1 }
  0xda   : > { %v578_v35 = vpop.f32.mrf.mxu1 }
  0xdc   : > { %v436_v48 = vpop.f32.mrf.mxu1 }
  0xec   : > { %v555_v36 = vpop.f32.mrf.mxu0 }
  0xee   : > { %v556_v37 = vpop.f32.mrf.mxu0 }
  0xef   : > { %v557_v39 = vadd.f32 %v556_v37, %v555_v36 }
  0xf0   : > { %v558_v40 = vpop.f32.mrf.mxu0 }
  0xf1   : > { %v386_v41 = vadd.f32 %v557_v39, %v516_v38 }
  0xf2   : > { %v559_v42 = vpop.f32.mrf.mxu0 }
  0xf3   : > { %v434_v43 = vadd.f32 %v433_v34, %v386_v41  ;;  %v560_v44 = vadd.f32 %v559_v42, %v558_v40 }
  0xf4   : > { %v561_v45 = vpop.f32.mrf.mxu0 }
  0xf5   : > { %v447_v46 = vmax.f32 %v434_v43, 0.0  ;;  %v389_v47 = vadd.f32 %v560_v44, %v516_v38 }
  0xf6   : > { %v562_v49 = vpop.f32.mrf.mxu0 }
  0xf7   : > { %450 = vst.msk [vmem:[%s175_s8] sm:$0xff] %vm344_vm0, %v447_v46  ;;  %v437_v50 = vadd.f32 %v436_v48, %v389_v47  ;;  %v563_v51 = vadd.f32 %v562_v49, %v561_v45 }
  0xf8   : > { %v564_v52 = vpop.f32.mrf.mxu0 }
  0xf9   : > { %v448_v53 = vmax.f32 %v437_v50, 0.0  ;;  %v394_v54 = vadd.f32 %v563_v51, %v516_v38 }
  0xfa   : > { %v565_v55 = vpop.f32.mrf.mxu0 }
  0xfb   : > { %451 = vst.msk [vmem:[%s175_s8 + $0x8] sm:$0xff] %vm344_vm0, %v448_v53  ;;  %v442_v56 = vadd.f32 %v577_v33, %v394_v54 }
  0xfd   : > { %v449_v57 = vmax.f32 %v442_v56, 0.0 }
  0xff   : > { %452 = vst.msk [vmem:[%s175_s8 + $0x10] sm:$0xff] %vm344_vm0, %v449_v57 }
 0x100 PF: > { %s13_s12 = sadd.s32 1, %s612_s12  }
 0x101   : > { %p10_p4 = scmp.ge.s32.totalorder %s13_s12, 4  }
 0x103   :  { %12 = sbr.rel (!%p10_p4) target bundleno = 1 (0x1), region = 62 }

// kernel: conformer_encoder.9
= control target key start
LH: loop header
LB: loop body
LE: loop exit
PB: predicated region body
PF: predicated region fallthrough
CT: control target
= control target key end

     0   :  { %s409_s12 = smov 0   ;;  %s447_s0 = inlined_call_operand.vmem [shape: f32[16,96], index: 0, kind: input, shape index: {}]   ;;  %s448_s1 = inlined_call_operand.vmem [shape: bf16[96,32], index: 1, kind: input, shape index: {}]   ;;  %s449_s2 = inlined_call_operand.vmem [shape: f32[1,32], index: 2, kind: input, shape index: {}]   ;;  %s450_s3 = inlined_call_operand.vmem [shape: f32[16,32], index: 3, kind: output, shape index: {}]  }
   0x1 LB: > { %s323_s13 = sadd.s32 4294967295, %s385_s12   ;;  %p327_p0 = scmp.ge.s32.totalorder %s385_s12, 1  ;;  %s385_s12 = sphi %s409_s12, %s13_s12  }
   0x2   : > { %p136_p1 = scmp.lt.s32.totalorder %s385_s12, 3 }
   0x4   : > { %p137_p2 = pnand %p327_p0, %p136_p1 }
   0x5   : > { %p158_p3 = scmp.lt.s32.totalorder (!%p137_p2), %s323_s13, 1 }
   0x6   : > { %140 = sbr.rel (%p137_p2) target bundleno = 235 (0xeb), region = 32 }
   0xb   : > { %v373_v0 = vld [vmem:[%s448_s1 + $0x28] sm:$0xff]   ;;  %v387_v1 = vmov 0.0   ;;  %v374_v2 = vld [vmem:[%s448_s1 + $0x20] sm:$0xff]   ;;  %vm388_vm0 = vmmov 0   ;;  %v375_v3 = vld [vmem:[%s448_s1 + $0x18] sm:$0xff]   ;;  %s452_s13 = smov (!%p158_p3, %s323_s13), 1 }
   0xc   : > { %347 = vmatprep.subr.bf16.mxu0 %v387_v1  ;;  %359 = vmatprep.mubr.msk.bf16.mxu0 %vm388_vm0, %v387_v1  ;;  %v376_v4 = vld [vmem:[%s448_s1 + $0x10] sm:$0xff]   ;;  %s328_s22 = sshll.u32 %s452_s13, 3  ;;  %v377_v5 = vld [vmem:[%s448_s1 + $0x8] sm:$0xff]   ;;  %v378_v6 = vld [vmem:[%s448_s1] sm:$0xff]   ;;  %vm224_vm1 = vcmask 785408   ;;  %vm268_vm2 = vcmask 261120  }
   0xd   : > { %348 = vmatpush3.bf16.msra.mxu0 %v373_v0  ;;  %s161_s27 = scalar_lea.vmem %s447_s0, %s328_s22  ;;  %v330_v9 = vld [vmem:[%s449_s2] ss:$0 sm:$0xff]  ;;  %s165_s7 = scalar_lea.vmem %s450_s3, %s328_s22 }
   0xe   : > { %349 = vmatprep.subr.bf16.mxu0 %v387_v1  ;;  %v167_v7 = vld [vmem:[%s161_s27] sm:$0xff] }
   0xf   : > { %v168_v8 = vpack.c.bf16 %v167_v7, %v167_v7 }
  0x11   : > { %350 = vmatpush3.bf16.msra.mxu0 %v374_v2 }
  0x12   : > { %351 = vmatprep.subr.bf16.mxu0 %v387_v1 }
  0x15   : > { %352 = vmatpush3.bf16.msra.mxu0 %v375_v3 }
  0x16   : > { %353 = vmatprep.subr.bf16.mxu0 %v387_v1 }
  0x19   : > { %354 = vmatpush3.bf16.msra.mxu0 %v376_v4 }
  0x1a   : > { %355 = vmatprep.subr.bf16.mxu0 %v387_v1 }
  0x1d   : > { %356 = vmatpush3.bf16.msra.mxu0 %v377_v5 }
  0x1e   : > { %357 = vmatprep.subr.bf16.mxu0 %v387_v1 }
  0x21   : > { %358 = vmatpush3.bf16.msra.mxu0 %v378_v6 }
  0x24   : > { %360 = vmatmul.mubr.msk.bf16.vlgmr.msra.gmra.mxu0 %vm224_vm1, %v168_v8 }
  0xe4   : > { %v262_v10 = vpop.f32.mrf.mxu0 }
  0xe5   : > { %v263_v11 = vadd.f32 %v330_v9, %v262_v10 }
  0xe6   : > { %v361_v12 = vpop.f32.mrf.mxu0 }
  0xe7   : > { %269 = vst.msk [vmem:[%s165_s7] sm:$0xff] %vm268_vm2, %v263_v11 }
  0xe8   : > { %v265_v13 = vpop.f32.mrf.mxu0 }
  0xea   : > { %v362_v14 = vpop.f32.mrf.mxu0 }
  0xeb PF: > { %s13_s12 = sadd.s32 1, %s385_s12  }
  0xec   : > { %p10_p4 = scmp.ge.s32.totalorder %s13_s12, 4  }
  0xee   :  { %12 = sbr.rel (!%p10_p4) target bundleno = 1 (0x1), region = 62 }

// kernel: conformer_encoder.10
= control target key start
LH: loop header
LB: loop body
LE: loop exit
PB: predicated region body
PF: predicated region fallthrough
CT: control target
= control target key end

     0   :  { %s1534_s21 = smov 0   ;;  %s1694_s0 = inlined_call_operand.vmem [shape: f32[2,7,32], index: 0, kind: input, shape index: {}]   ;;  %s1695_s1 = inlined_call_operand.vmem [shape: f32[1,32], index: 1, kind: input, shape index: {}]   ;;  %s1696_s2 = inlined_call_operand.vmem [shape: f32[1,32], index: 2, kind: input, shape index: {}]   ;;  %s1697_s3 = inlined_call_operand.vmem [shape: bf16[32,128], index: 3, kind: input, shape index: {}]   ;;  %s1698_s4 = inlined_call_operand.vmem [shape: f32[1,128], index: 4, kind: input, shape index: {}]   ;;  %s1699_s5 = inlined_call_operand.vmem [shape: bf16[128,32], index: 5, kind: input, shape index: {}]   ;;  %s1700_s6 = inlined_call_operand.vmem [shape: f32[1,32], index: 6, kind: input, shape index: {}]   ;;  %s1701_s7 = inlined_call_operand.vmem [shape: f32[1,32], index: 7, kind: input, shape index: {}]   ;;  %s1702_s8 = inlined_call_operand.vmem [shape: f32[1,32], index: 8, kind: input, shape index: {}]   ;;  %s1703_s9 = inlined_call_operand.vmem [shape: bf16[32,96], index: 9, kind: input, shape index: {}]   ;;  %s1704_s10 = inlined_call_operand.vmem [shape: f32[1,96], index: 10, kind: input, shape index: {}]   ;;  %s1705_s11 = inlined_call_operand.vmem [shape: bf16[32,32], index: 11, kind: input, shape index: {}]   ;;  %s1706_s12 = inlined_call_operand.vmem [shape: f32[7,32], index: 12, kind: input, shape index: {}]   ;;  %s1707_s13 = inlined_call_operand.vmem [shape: f32[1,32], index: 13, kind: input, shape index: {}]   ;;  %s1708_s14 = inlined_call_operand.vmem [shape: f32[2,7,32], index: 14, kind: output, shape index: {0}]   ;;  %s1709_s15 = inlined_call_operand.vmem [shape: bf16[2,7,96], index: 15, kind: output, shape index: {1}]   ;;  %s1710_s16 = inlined_call_operand.vmem [shape: f32[2,4,7,7], index: 16, kind: output, shape index: {2}]  }
   0x1   :  { %1711 = sst [smem:[#allocation2_spill]] %s1694_s0 }
   0x2 LB: > { %s1261_s22 = sadd.s32 4294967295, %s1442_s21   ;;  %p1265_p0 = scmp.ge.s32.totalorder %s1442_s21, 1  ;;  %s1442_s21 = sphi %s1534_s21, %s27_s21  }
   0x3   : > { %p466_p1 = scmp.lt.s32.totalorder %s1442_s21, 3 }
   0x5   : > { %p467_p2 = pnand %p1265_p0, %p466_p1 }
   0x6   : > { %p523_p3 = scmp.lt.s32.totalorder (!%p467_p2), %s1261_s22, 1  ;;  %s1712_s26 = sld [smem:[#allocation2_spill]] (!%p467_p2) }
   0x7   : > { %470 = sbr.rel (%p467_p2) target bundleno = 1599 (0x63f), region = 76  ;;  %s1446_s0 = smov (!%p467_p2), 120  }
   0x8   : > { %s1447_s17 = smov (!%p467_p2), 112   ;;  %s1448_s18 = smov (!%p467_p2), 104  }
   0xc   : > { %s1714_s22 = smov (!%p523_p3, %s1261_s22), 1  ;;  %vm566_vm0 = vcmask 260096   ;;  %v1414_v7 = vld [vmem:[%s1697_s3 + $0x8] sm:$0xff]   ;;  %v1444_v8 = vmov 0.0   ;;  %vm1445_vm1 = vmmov 0   ;;  %v1415_v9 = vld [vmem:[%s1697_s3] sm:$0xff]  }
   0xd   : > { %s1266_s23 = sshll.u32 %s1714_s22, 3  ;;  %1333 = vmatprep.subr.bf16.mxu0 %v1444_v8  ;;  %1337 = vmatprep.mubr.msk.bf16.mxu0 %vm1445_vm1, %v1444_v8  ;;  %v1271_v14 = vld [vmem:[%s1695_s1] ss:$0 sm:$0xff]  ;;  %vm614_vm2 = vcmask 261120   ;;  %v1416_v20 = vld [vmem:[%s1699_s5 + $0x38] sm:$0xff]   ;;  %v1417_v21 = vld [vmem:[%s1699_s5 + $0x30] sm:$0xff]  }
   0xe   : > { %s526_s27 = scalar_lea.vmem %s1712_s26, %s1266_s23  ;;  %1334 = vmatpush3.bf16.msra.mxu0 %v1414_v7  ;;  %1341 = vmatprep.subr.bf16.mxu1 %v1444_v8  ;;  %v1272_v16 = vld [vmem:[%s1696_s2] ss:$0 sm:$0xff]  ;;  %v1418_v22 = vld [vmem:[%s1699_s5 + $0x28] sm:$0xff]   ;;  %v1420_v24 = vld [vmem:[%s1699_s5 + $0x18] sm:$0xff]   ;;  %s530_s19 = scalar_lea.vmem %s1708_s14, %s1266_s23  ;;  %vm860_vm3 = vcmask 781312   ;;  %vm937_vm6 = vcmask 64512  }
   0xf   : > { %v1550_v0 = vld [vmem:[%s526_s27] sm:$0x7f]  ;;  %1335 = vmatprep.subr.bf16.mxu0 %v1444_v8  ;;  %1357 = vmatprep.mubr.msk.bf16.mxu1 %vm1445_vm1, %v1444_v8  ;;  %v1421_v25 = vld [vmem:[%s1699_s5 + $0x10] sm:$0xff]   ;;  %v1422_v26 = vld [vmem:[%s1699_s5 + $0x8] sm:$0xff]   ;;  %s1268_s24 = sshll.u32 %s1714_s22, 2  ;;  %vm984_vm7 = vcmask 55296  }
  0x10   : > { %v567_v1 = vsel %vm566_vm0, %v1550_v0, 0.0  ;;  %1342 = vmatpush3.bf16.msra.mxu1 %v1416_v20  ;;  %v1419_v23 = vld [vmem:[%s1699_s5 + $0x20] sm:$0xff]   ;;  %v1424_v54 = vld [vmem:[%s1703_s9 + $0x8] sm:$0xff]   ;;  %s534_s28 = scalar_lea.vmem %s1709_s15, %s1268_s24  ;;  %vm861_vm4 = vsmask.f32 3328 }
  0x11   : > { %568 = vadd.xlane.f32.xlu0 %v567_v1  ;;  %1343 = vmatprep.subr.bf16.mxu1 %v1444_v8  ;;  %v1423_v27 = vld [vmem:[%s1699_s5] sm:$0xff]   ;;  %v1426_v1 = vld [vmem:[%s1705_s11 + $0x8] sm:$0xff]   ;;  %vm862_vm5 = vmand %vm860_vm3, %vm861_vm4 }
  0x12   : > { %1336 = vmatpush3.bf16.msra.mxu0 %v1415_v9  ;;  %v1273_v28 = vld [vmem:[%s1698_s4] ss:$0 sm:$0xff] }
  0x13   : > { %1361 = vmatprep.subr.bf16.mxu0 %v1444_v8  ;;  %v1278_v40 = vld [vmem:[%s1700_s6] ss:$0 sm:$0xff] }
  0x14   : > { %1344 = vmatpush3.bf16.msra.mxu1 %v1417_v21  ;;  %v1425_v55 = vld [vmem:[%s1703_s9] sm:$0xff]  }
  0x15   : > { %1345 = vmatprep.subr.bf16.mxu1 %v1444_v8  ;;  %v1287_v60 = vld [vmem:[%s1701_s7] ss:$0 sm:$0xff] }
  0x16   : > { %v1288_v62 = vld [vmem:[%s1702_s8] ss:$0 sm:$0xff] }
  0x17   : > { %v1296_v9 = vld [vmem:[%s1707_s13] ss:$0 sm:$0xff] }
  0x18   : > { %1346 = vmatpush3.bf16.msra.mxu1 %v1418_v22 }
  0x19   : > { %1347 = vmatprep.subr.bf16.mxu1 %v1444_v8 }
  0x1c   : > { %1348 = vmatpush3.bf16.msra.mxu1 %v1419_v23 }
  0x1d   : > { %1349 = vmatprep.subr.bf16.mxu1 %v1444_v8 }
  0x20   : > { %1350 = vmatpush3.bf16.msra.mxu1 %v1420_v24 }
  0x21   : > { %1351 = vmatprep.subr.bf16.mxu1 %v1444_v8 }
  0x24   : > { %1352 = vmatpush3.bf16.msra.mxu1 %v1421_v25 }
  0x25   : > { %1353 = vmatprep.subr.bf16.mxu1 %v1444_v8 }
  0x28   : > { %1354 = vmatpush3.bf16.msra.mxu1 %v1422_v26 }
  0x29   : > { %1355 = vmatprep.subr.bf16.mxu1 %v1444_v8 }
  0x2c   : > { %1356 = vmatpush3.bf16.msra.mxu1 %v1423_v27 }
  0x2d   : > { %1389 = vmatprep.subr.bf16.mxu1 %v1444_v8 }
  0x9a   : > { %v569_v2 = vpop.xlane.xlu0 %568 }
  0x9b   : > { %v571_v3 = vmul.f32 0.03125, %v569_v2 }
  0x9d   : > { %v572_v4 = vsub.f32 %v1550_v0, %v571_v3  ;;  %v1427_v3 = vld [vmem:[%s1705_s11] sm:$0xff]  }
  0x9f   : > { %v573_v5 = vmul.f32 %v572_v4, %v572_v4 }
  0xa1   : > { %v574_v6 = vsel %vm566_vm0, %v573_v5, 0.0 }
  0xa2   : > { %575 = vadd.xlane.f32.xlu0 %v574_v6  ;;  %v1289_v6 = vld [vmem:[%s1704_s10] ss:$0 sm:$0xff] }
 0x12b   : > { %v576_v10 = vpop.xlane.xlu0 %575 }
 0x12c   : > { %v577_v11 = vmul.f32 0.03125, %v576_v10 }
 0x12e   : > { %v578_v12 = vadd.f32 1e-05, %v577_v11  ;;  %v863_v11 = vld [vmem:[%s534_s28] sm:$0xf] }
 0x130   : > { %1428 = vrsqrt.f32 %v578_v12 }
 0x13d   : > { %v1429_v13 = vpop.eup %1428 }
 0x13e   : > { %v580_v15 = vmul.f32 %v1429_v13, %v572_v4  ;;  %v866_v4 = vld [vmem:[%s1706_s12] sm:$0x7f] }
 0x13f   : > { %v867_v5 = vpack.c.bf16 %v866_v4, %v866_v4 }
 0x140   : > { %v587_v17 = vmul.f32 %v1271_v14, %v580_v15 }
 0x142   : > { %v594_v18 = vadd.f32 %v1272_v16, %v587_v17 }
 0x144   : > { %v595_v19 = vpack.c.bf16 %v594_v18, %v594_v18 }
 0x146   : > { %1338 = vmatmul.mubr.msk.bf16.vlgmr.msra.gmra.mxu0 %vm614_vm2, %v595_v19 }
 0x147   : > { %1365 = vmatprep.mubr.msk.bf16.mxu0 %vm1445_vm1, %v1444_v8  ;;  %1362 = vmatpush3.bf16.msra.mxu0 %v1424_v54 }
 0x148   : > { %1363 = vmatprep.subr.bf16.mxu0 %v1444_v8 }
 0x14b   : > { %1364 = vmatpush3.bf16.msra.mxu0 %v1425_v55 }
 0x14c   : > { %1369 = vmatprep.subr.bf16.mxu0 %v1444_v8 }
 0x206   : > { %v652_v29 = vpop.f32.mrf.mxu0 }
 0x207   : > { %v653_v30 = vadd.f32 %v1273_v28, %v652_v29 }
 0x208   : > { %v1339_v31 = vpop.f32.mrf.mxu0 }
 0x209   : > { %v1277_v32 = vmul.f32 -1.442695, %v653_v30 }
 0x20a   : > { %v655_v33 = vpop.f32.mrf.mxu0 }
 0x20b   : > { %1430 = vpow2.f32 %v1277_v32 }
 0x20c   : > { %v1340_v34 = vpop.f32.mrf.mxu0 }
 0x218   : > { %v1431_v35 = vpop.eup %1430 }
 0x219   : > { %v661_v36 = vadd.f32 1.0, %v1431_v35 }
 0x21b   : > { %1432 = vrcp.f32 %v661_v36 }
 0x228   : > { %v1433_v37 = vpop.eup %1432 }
 0x229   : > { %v664_v38 = vmul.f32 %v1433_v37, %v653_v30 }
 0x22b   : > { %v665_v39 = vpack.c.bf16 %v664_v38, %v664_v38 }
 0x22d   : > { %1358 = vmatmul.mubr.bf16.vlgmr.msra.gmra.mxu1 %v665_v39 }
 0x22e   : > { %1391 = vmatprep.mubr.msk.bf16.mxu1 %vm1445_vm1, %v1444_v8 }
 0x2ed   : > { %v754_v41 = vpop.f32.mrf.mxu1 }
 0x2ee   : > { %v755_v42 = vadd.f32 %v1278_v40, %v754_v41 }
 0x2ef   : > { %v1359_v43 = vpop.f32.mrf.mxu1 }
 0x2f0   : > { %v760_v44 = vmul.f32 0.5, %v755_v42 }
 0x2f1   : > { %v757_v45 = vpop.f32.mrf.mxu1 }
 0x2f2   : > { %v761_v46 = vadd.f32 %v760_v44, %v1550_v0 }
 0x2f3   : > { %v1360_v47 = vpop.f32.mrf.mxu1 }
 0x2f4   : > { %762 = vst.msk [vmem:[%s530_s19] sm:$0x7f] %vm566_vm0, %v761_v46  ;;  %v765_v48 = vsel %vm566_vm0, %v761_v46, 0.0  ;;  %s1306_s19 = sshll.u32 %s1714_s22, 5 }
 0x2f5   : > { %766 = vadd.xlane.f32.xlu1 %v765_v48  ;;  %s539_s23 = scalar_lea.vmem %s1710_s16, %s1306_s19 }
 0x37e   : > { %v767_v49 = vpop.xlane.xlu1 %766 }
 0x37f   : > { %v768_v50 = vmul.f32 0.03125, %v767_v49 }
 0x381   : > { %v769_v51 = vsub.f32 %v761_v46, %v768_v50 }
 0x383   : > { %v770_v52 = vmul.f32 %v769_v51, %v769_v51 }
 0x385   : > { %v771_v53 = vsel %vm566_vm0, %v770_v52, 0.0 }
 0x386   : > { %772 = vadd.xlane.f32.xlu1 %v771_v53 }
 0x40f   : > { %v773_v56 = vpop.xlane.xlu1 %772 }
 0x410   : > { %v774_v57 = vmul.f32 0.03125, %v773_v56 }
 0x412   : > { %v775_v58 = vadd.f32 1e-05, %v774_v57 }
 0x414   : > { %1434 = vrsqrt.f32 %v775_v58 }
 0x421   : > { %v1435_v59 = vpop.eup %1434 }
 0x422   : > { %v777_v61 = vmul.f32 %v1435_v59, %v769_v51 }
 0x424   : > { %v784_v63 = vmul.f32 %v1287_v60, %v777_v61 }
 0x426   : > { %v791_v0 = vadd.f32 %v1288_v62, %v784_v63 }
 0x428   : > { %v792_v2 = vpack.c.bf16 %v791_v0, %v791_v0 }
 0x42a   : > { %1366 = vmatmul.mubr.msk.bf16.vlgmr.msra.gmra.mxu0 %vm614_vm2, %v792_v2 }
 0x42b   : > { %1370 = vmatpush3.bf16.msra.mxu0 %v1426_v1  ;;  %1373 = vmatprep.mubr.msk.bf16.mxu0 %vm1445_vm1, %v1444_v8 }
 0x42c   : > { %1371 = vmatprep.subr.bf16.mxu0 %v1444_v8 }
 0x42f   : > { %1372 = vmatpush3.bf16.msra.mxu0 %v1427_v3 }
 0x430   : > { %1377 = vmatprep.subr.bf16.mxu0 %v1444_v8 }
 0x432   : > { %1374 = vmatmul.mubr.msk.bf16.vlgmr.msra.gmra.mxu0 %vm614_vm2, %v867_v5 }
 0x433   : > { %1379 = vmatprep.mubr.msk.bf16.mxu0 %vm1445_vm1, %v1444_v8 }
 0x4ea   : > { %v853_v7 = vpop.f32.mrf.mxu0 }
 0x4eb   : > { %v854_v10 = vadd.f32 %v1289_v6, %v853_v7 }
 0x4ec   : > { %v1367_v12 = vpop.f32.mrf.mxu0 }
 0x4ed   : > { %v859_v13 = vpack.c.bf16 %v854_v10, %v854_v10  ;;  %v934_v14 = vadd.f32 %v1296_v9, %v854_v10 }
 0x4ee   : > { %v856_v15 = vpop.f32.mrf.mxu0 }
 0x4ef   : > { %v864_v16 = vsel %vm862_vm5, %v859_v13, %v863_v11  ;;  %v935_v17 = vpack.c.bf16 %v934_v14, %v934_v14 }
 0x4f0   : > { %865 = vst [vmem:[%s534_s28] sm:$0xf] %v864_v16  ;;  %v1368_v18 = vpop.f32.mrf.mxu0 }
 0x4f1   : > { %987 = vrot.lane.b32.xlu1 %v935_v17, %s1446_s0 }
 0x4f2   : > { %v921_v19 = vpop.f32.mrf.mxu0 }
 0x4f3   : > { %v936_v20 = vpack.c.bf16 %v921_v19, %v921_v19 }
 0x4f4   : > { %v1375_v21 = vpop.f32.mrf.mxu0 }
 0x4f5   : > { %1042 = vrot.lane.b32.xlu1 %v936_v20, %s1447_s17  ;;  %990 = vrot.lane.b32.xlu0 %v936_v20, %s1446_s0  ;;  %v942_v22 = vsel %vm937_vm6, %v936_v20, 0 }
 0x4f6   : > { %v924_v23 = vpop.f32.mrf.mxu0  ;;  %1378 = vmatpush3.bf16.xpose.msra.mxu0 %v942_v22 }
 0x4f7   : > { %1383 = vmatprep.subr.bf16.mxu0 %v1444_v8 }
 0x4f8   : > { %v1376_v24 = vpop.f32.mrf.mxu0 }
 0x4f9   : > { %1094 = vrot.lane.b32.xlu1 %v936_v20, %s1448_s18  ;;  %1040 = vrot.lane.b32.xlu0 %v935_v17, %s1447_s17 }
 0x4fd   : > { %1092 = vrot.lane.b32.xlu1 %v935_v17, %s1448_s18  ;;  %1380 = vmatmul.mubr.msk.bf16.vlgmr.msra.gmra.mxu0 %vm937_vm6, %v935_v17 }
 0x4fe   : > { %1385 = vmatprep.mubr.msk.bf16.mxu0 %vm1445_vm1, %v1444_v8 }
 0x563   : > { %v988_v25 = vpop.permute.xlu1 %987 }
 0x567   : > { %v1043_v26 = vpop.permute.xlu1 %1042  ;;  %v991_v27 = vpop.permute.xlu0 %990 }
 0x568   : > { %v1048_v28 = vsel %vm937_vm6, %v1043_v26, 0  ;;  %v996_v29 = vsel %vm937_vm6, %v991_v27, 0 }
 0x569   : > { %1384 = vmatpush3.bf16.xpose.msra.mxu0 %v996_v29  ;;  %1390 = vmatpush3.bf16.xpose.msra.mxu1 %v1048_v28 }
 0x56a   : > { %1395 = vmatprep.subr.bf16.mxu0 %v1444_v8 }
 0x56b   : > { %v1095_v30 = vpop.permute.xlu1 %1094  ;;  %v1041_v31 = vpop.permute.xlu0 %1040 }
 0x56c   : > { %v1100_v32 = vsel %vm937_vm6, %v1095_v30, 0 }
 0x56f   : > { %v1093_v33 = vpop.permute.xlu1 %1092 }
 0x570   : > { %1386 = vmatmul.mubr.msk.bf16.vlgmr.msra.gmra.mxu0 %vm937_vm6, %v988_v25  ;;  %1392 = vmatmul.mubr.msk.bf16.vlgmr.msra.gmra.mxu1 %vm937_vm6, %v1041_v31 }
 0x571   : > { %1396 = vmatpush3.bf16.xpose.msra.mxu0 %v1100_v32  ;;  %1397 = vmatprep.mubr.msk.bf16.mxu0 %vm1445_vm1, %v1444_v8 }
 0x578   : > { %1398 = vmatmul.mubr.msk.bf16.vlgmr.msra.gmra.mxu0 %vm937_vm6, %v1093_v33 }
 0x5bd   : > { %v978_v34 = vpop.f32.mrf.mxu0 }
 0x5be   : > { %985 = vst.msk [vmem:[%s539_s23] sm:$0x7f] %vm984_vm7, %v978_v34 }
 0x5bf   : > { %v1381_v35 = vpop.f32.mrf.mxu0 }
 0x5c1   : > { %v981_v36 = vpop.f32.mrf.mxu0 }
 0x5c3   : > { %v1382_v37 = vpop.f32.mrf.mxu0 }
 0x630   : > { %v1032_v38 = vpop.f32.mrf.mxu0  ;;  %v1084_v39 = vpop.f32.mrf.mxu1 }
 0x631   : > { %1299 = vst.msk [vmem:[%s539_s23 + $0x8] sm:$0x7f] %vm984_vm7, %v1032_v38  ;;  %1301 = vst.msk [vmem:[%s539_s23 + $0x10] sm:$0x7f] %vm984_vm7, %v1084_v39 }
 0x632   : > { %v1387_v8 = vpop.f32.mrf.mxu0  ;;  %v1393_v40 = vpop.f32.mrf.mxu1 }
 0x634   : > { %v1035_v41 = vpop.f32.mrf.mxu0  ;;  %v1087_v42 = vpop.f32.mrf.mxu1 }
 0x636   : > { %v1388_v43 = vpop.f32.mrf.mxu0  ;;  %v1394_v44 = vpop.f32.mrf.mxu1 }
 0x638   : > { %v1136_v45 = vpop.f32.mrf.mxu0 }
 0x639   : > { %1303 = vst.msk [vmem:[%s539_s23 + $0x18] sm:$0x7f] %vm984_vm7, %v1136_v45 }
 0x63a   : > { %v1399_v46 = vpop.f32.mrf.mxu0 }
 0x63c   : > { %v1139_v47 = vpop.f32.mrf.mxu0 }
 0x63e   : > { %v1400_v48 = vpop.f32.mrf.mxu0 }
 0x63f PF: > { %s27_s21 = sadd.s32 1, %s1442_s21  }
 0x640   : > { %p24_p4 = scmp.ge.s32.totalorder %s27_s21, 4  }
 0x642   :  { %26 = sbr.rel (!%p24_p4) target bundleno = 2 (0x2), region = 133 }

// kernel: conformer_encoder.11
= control target key start
LH: loop header
LB: loop body
LE: loop exit
PB: predicated region body
PF: predicated region fallthrough
CT: control target
= control target key end

     0   :  { %s3358_s0 = inlined_call_operand.vmem [shape: f32[2,7,32], index: 0, kind: input, shape index: {}]   ;;  %s3359_s1 = inlined_call_operand.vmem [shape: bf16[2,7,96], index: 1, kind: input, shape index: {}]   ;;  %s3360_s2 = inlined_call_operand.vmem [shape: f32[2,4,7,7], index: 2, kind: input, shape index: {}]   ;;  %s3361_s3 = inlined_call_operand.vmem [shape: f32[1,32], index: 3, kind: input, shape index: {}]   ;;  %s3362_s4 = inlined_call_operand.vmem [shape: bf16[32,32], index: 4, kind: input, shape index: {}]   ;;  %s3363_s5 = inlined_call_operand.vmem [shape: f32[1,32], index: 5, kind: input, shape index: {}]   ;;  %s3364_s6 = inlined_call_operand.vmem [shape: f32[1,32], index: 6, kind: input, shape index: {}]   ;;  %s3365_s7 = inlined_call_operand.vmem [shape: f32[1,32], index: 7, kind: input, shape index: {}]   ;;  %s3366_s8 = inlined_call_operand.vmem [shape: bf16[32,64], index: 8, kind: input, shape index: {}]   ;;  %s3367_s9 = inlined_call_operand.vmem [shape: f32[1,64], index: 9, kind: input, shape index: {}]   ;;  %s3368_s10 = inlined_call_operand.vmem [shape: f32[7,32], index: 10, kind: input, shape index: {}]   ;;  %s3369_s11 = inlined_call_operand.vmem [shape: f32[1,32], index: 11, kind: input, shape index: {}]   ;;  %s3370_s12 = inlined_call_operand.vmem [shape: f32[1,32], index: 12, kind: input, shape index: {}]   ;;  %s3371_s13 = inlined_call_operand.vmem [shape: bf16[32,32], index: 13, kind: input, shape index: {}]   ;;  %s3372_s14 = inlined_call_operand.vmem [shape: f32[1,32], index: 14, kind: input, shape index: {}]   ;;  %s3373_s15 = inlined_call_operand.vmem [shape: f32[1,32], index: 15, kind: input, shape index: {}]   ;;  %s3374_s16 = inlined_call_operand.vmem [shape: f32[1,32], index: 16, kind: input, shape index: {}]   ;;  %s3375_s17 = inlined_call_operand.vmem [shape: bf16[32,128], index: 17, kind: input, shape index: {}]   ;;  %s3376_s18 = inlined_call_operand.vmem [shape: f32[1,128], index: 18, kind: input, shape index: {}]   ;;  %s3377_s19 = inlined_call_operand.vmem [shape: bf16[128,32], index: 19, kind: input, shape index: {}]   ;;  %s3378_s20 = inlined_call_operand.vmem [shape: f32[1,32], index: 20, kind: input, shape index: {}]   ;;  %s3379_s21 = inlined_call_operand.vmem [shape: f32[1,32], index: 21, kind: input, shape index: {}]   ;;  %s3380_s22 = inlined_call_operand.vmem [shape: f32[1,32], index: 22, kind: input, shape index: {}]   ;;  %s3381_s23 = inlined_call_operand.vmem [shape: f32[2,7,32], index: 23, kind: output, shape index: {}]  }
   0x1   :  { %3383 = sst [smem:[#allocation2_spill]] %s3358_s0 }
   0x2   :  { %3384 = sst [smem:[#allocation3_spill]] %s3359_s1 }
   0x3   :  { %3385 = sst [smem:[#allocation4_spill]] %s3360_s2 }
   0x4   :  { %3386 = sst [smem:[#allocation5_spill]] %s3361_s3 }
   0x5   :  { %3387 = sst [smem:[#allocation6_spill]] %s3362_s4  ;;  %s3032_s4 = smov 0  }
   0x6   :  { %3388 = sst [smem:[#allocation7_spill]] %s3363_s5 }
   0x7   :  { %3389 = sst [smem:[#allocation8_spill]] %s3364_s6 }
   0x8   :  { %3390 = sst [smem:[#allocation9_spill]] %s3365_s7 }
   0x9 LB: > { %s2528_s30 = sadd.s32 4294967295, %s2896_s4   ;;  %p2532_p0 = scmp.ge.s32.totalorder %s2896_s4, 1  ;;  %s2896_s4 = sphi %s3032_s4, %s33_s4  }
   0xa   : > { %p655_p1 = scmp.lt.s32.totalorder %s2896_s4, 3 }
   0xc   : > { %p656_p2 = pnand %p2532_p0, %p655_p1 }
   0xd   : > { %p726_p3 = scmp.lt.s32.totalorder (!%p656_p2), %s2528_s30, 1  ;;  %s3391_s1 = sld [smem:[#allocation3_spill]] (!%p656_p2) }
   0xe   : > { %659 = sbr.rel (%p656_p2) target bundleno = 4956 (0x135c), region = 112  ;;  %s2900_s2 = smov (!%p656_p2), 96  }
   0xf   : > { %s3392_s7 = sld [smem:[#allocation5_spill]] (!%p656_p2)  ;;  %s2901_s28 = smov (!%p656_p2), 64  }
  0x10   : > { %s2903_s5 = smov (!%p656_p2), 88   ;;  %s2906_s6 = smov (!%p656_p2), 80  }
  0x11   : > { %s2907_s27 = smov (!%p656_p2), 112  }
  0x13   : > { %v2898_v0 = vmov 0.0   ;;  %vm2899_vm0 = vmmov 0   ;;  %s3400_s30 = smov (!%p726_p3, %s2528_s30), 1  ;;  %vm766_vm1 = vcmask 64512   ;;  %vm814_vm2 = vcmask 55296  }
  0x14   : > { %2668 = vmatprep.subr.bf16.mxu1 %v2898_v0  ;;  %2670 = vmatprep.mubr.msk.bf16.mxu1 %vm2899_vm0, %v2898_v0  ;;  %s2534_s24 = sshll.u32 %s3400_s30, 2  ;;  %s2611_s29 = sshll.u32 %s3400_s30, 5  ;;  %vm833_vm3 = vcmask 1042432   ;;  %vm834_vm4 = vcmask 1043456   ;;  %v2902_v18 = vmov 65535   ;;  %vm829_vm5 = vcmask 56320  }
  0x15   : > { %2686 = vmatprep.subr.bf16.mxu0 %v2898_v0  ;;  %2688 = vmatprep.mubr.msk.bf16.mxu0 %vm2899_vm0, %v2898_v0  ;;  %s733_s26 = scalar_lea.vmem %s3391_s1, %s2534_s24  ;;  %v2538_v4 = vld [vmem:[%s3392_s7] ss:$0 sm:$0xff]  ;;  %s3393_s24 = sld [smem:[#allocation4_spill]]  ;;  %v835_v19 = vsel %vm833_vm3, 4294967295, %v2902_v18  ;;  %vm1421_vm6 = vcmask 260096   ;;  %vm1474_vm7 = vcmask 261120  }
  0x16   : > { %v745_v1 = vld [vmem:[%s733_s26] sm:$0xf]  ;;  %v3077_v20 = vsel %vm834_vm4, %v835_v19, 0  ;;  %s2904_s1 = smov 120   ;;  %s2905_s26 = smov 56   ;;  %vm1541_vm10 = vcmask 1046528  }
  0x17   : > { %v3052_v2 = vcombine.low %v745_v1, %v745_v1  ;;  %v746_v3 = vunpack.c.l.bf16 %v745_v1 }
  0x19   : > { %764 = vrot.lane.b32.xlu0 %v3052_v2, %s2900_s2  ;;  %v758_v7 = vadd.f32 %v2538_v4, %v746_v3  ;;  %827 = vrot.lane.b32.xlu1 %v3052_v2, %s2901_s28  ;;  %s2533_s28 = sshll.u32 %s3400_s30, 3 }
  0x1a   : > { %s742_s3 = scalar_lea.vmem %s3381_s23, %s2533_s28 }
  0x1b   : > { %v3061_v8 = vpack.c.bf16 %v758_v7, %v758_v7  ;;  %s3072_s25 = scalar_lea.vmem %s3393_s24, %s2611_s29  ;;  %s3394_s29 = sld [smem:[#allocation6_spill]] }
  0x1c   : > { %v760_v9 = vld [vmem:[%s3072_s25] sm:$0x7f]  ;;  %v2542_v38 = vld [vmem:[%s3072_s25 + $0x8] sm:$0x7f]  ;;  %s2908_s24 = smov 48  }
  0x21   : > { %v748_v55 = vld [vmem:[%s3394_s29] sm:$0xf]  ;;  %v749_v60 = vld [vmem:[%s3394_s29 + $0x4] sm:$0xf] }
  0x22   : > { %v1046_v58 = vsel %vm834_vm4, %v748_v55, 0  ;;  %v1000_v61 = vsel %vm834_vm4, %v749_v60, 0 }
  0x8b   : > { %v765_v5 = vpop.permute.xlu0 %764  ;;  %v828_v17 = vpop.permute.xlu1 %827 }
  0x8c   : > { %v771_v6 = vsel %vm766_vm1, %v765_v5, 0  ;;  %v838_v21 = vand.u32 %v3077_v20, %v828_v17  ;;  %v2547_v17 = vld [vmem:[%s3072_s25 + $0x10] sm:$0x7f] }
  0x8d   : > { %2669 = vmatpush3.bf16.xpose.msra.mxu1 %v771_v6 }
  0x8e   : > { %2674 = vmatprep.subr.bf16.mxu1 %v2898_v0 }
  0x94   : > { %2671 = vmatmul.mubr.msk.bf16.vlgmr.msra.gmra.mxu1 %vm766_vm1, %v3061_v8 }
  0x95   : > { %2676 = vmatprep.mubr.msk.bf16.mxu1 %vm2899_vm0, %v2898_v0  ;;  %2675 = vmatpush3.bf16.msra.mxu1 %v838_v21 }
  0x96   : > { %2680 = vmatprep.subr.bf16.mxu1 %v2898_v0 }
 0x154   : > { %v807_v10 = vpop.f32.mrf.mxu1 }
 0x155   : > { %v808_v11 = vadd.f32 %v807_v10, %v760_v9 }
 0x156   : > { %v2672_v12 = vpop.f32.mrf.mxu1 }
 0x157   : > { %v813_v13 = vmul.f32 0.17677669, %v808_v11 }
 0x158   : > { %v810_v14 = vpop.f32.mrf.mxu1 }
 0x159   : > { %v815_v15 = vsel %vm814_vm2, %v813_v13, -inf }
 0x15a   : > { %816 = vmax.xlane.f32.xlu0 %v815_v15  ;;  %v2673_v16 = vpop.f32.mrf.mxu1 }
 0x1e3   : > { %v817_v22 = vpop.xlane.xlu0 %816 }
 0x1e4   : > { %v818_v23 = vsub.f32 %v813_v13, %v817_v22 }
 0x1e6   : > { %v819_v24 = vmul.f32 1.442695, %v818_v23 }
 0x1e8   : > { %2856 = vpow2.f32 %v819_v24 }
 0x1f5   : > { %v2857_v25 = vpop.eup %2856 }
 0x1f6   : > { %v821_v26 = vsel %vm814_vm2, %v2857_v25, 0.0 }
 0x1f7   : > { %822 = vadd.xlane.f32.xlu1 %v821_v26 }
 0x208   : > { %886 = vrot.lane.b32.xlu1 %v3052_v2, %s2903_s5  ;;  %s2909_s5 = smov 72  }
 0x20c   : > { %884 = vrot.lane.b32.xlu1 %v3061_v8, %s2904_s1  ;;  %s2910_s1 = smov 104  }
 0x280   : > { %v823_v27 = vpop.xlane.xlu1 %822 }
 0x281   : > { %2858 = vrcp.f32 %v823_v27 }
 0x284   : > { %v887_v29 = vpop.permute.xlu1 %886 }
 0x285   : > { %v892_v31 = vsel %vm766_vm1, %v887_v29, 0 }
 0x288   : > { %v885_v33 = vpop.permute.xlu1 %884 }
 0x28e   : > { %v2859_v28 = vpop.eup %2858 }
 0x28f   : > { %v825_v30 = vmul.f32 %v2859_v28, %v2857_v25 }
 0x291   : > { %v826_v32 = vpack.c.bf16 %v825_v30, %v825_v30 }
 0x293   : > { %2677 = vmatmul.mubr.msk.bf16.vlgmr.msra.gmra.mxu1 %vm829_vm5, %v826_v32 }
 0x294   : > { %2681 = vmatpush3.bf16.xpose.msra.mxu1 %v892_v31  ;;  %2682 = vmatprep.mubr.msk.bf16.mxu1 %vm2899_vm0, %v2898_v0 }
 0x295   : > { %2692 = vmatprep.subr.bf16.mxu1 %v2898_v0 }
 0x29b   : > { %2683 = vmatmul.mubr.msk.bf16.vlgmr.msra.gmra.mxu1 %vm766_vm1, %v885_v33 }
 0x29c   : > { %2694 = vmatprep.mubr.msk.bf16.mxu1 %vm2899_vm0, %v2898_v0  ;;  %2693 = vmatpush3.bf16.msra.mxu1 %v1000_v61 }
 0x29d   : > { %2704 = vmatprep.subr.bf16.mxu1 %v2898_v0 }
 0x353   : > { %v874_v34 = vpop.f32.mrf.mxu1 }
 0x354   : > { %v880_v59 = vpack.c.bf16 %v874_v34, %v874_v34 }
 0x355   : > { %v2678_v35 = vpop.f32.mrf.mxu1 }
 0x357   : > { %v877_v36 = vpop.f32.mrf.mxu1 }
 0x359   : > { %v2679_v37 = vpop.f32.mrf.mxu1 }
 0x35b   : > { %v928_v39 = vpop.f32.mrf.mxu1 }
 0x35c   : > { %v929_v40 = vadd.f32 %v2542_v38, %v928_v39  ;;  %v750_v39 = vld [vmem:[%s3394_s29 + $0x8] sm:$0xf] }
 0x35d   : > { %v2684_v41 = vpop.f32.mrf.mxu1 }
 0x35e   : > { %v934_v42 = vmul.f32 0.17677669, %v929_v40  ;;  %v1206_v40 = vsel %vm834_vm4, %v750_v39, 0 }
 0x35f   : > { %v931_v43 = vpop.f32.mrf.mxu1 }
 0x360   : > { %v935_v44 = vsel %vm814_vm2, %v934_v42, -inf }
 0x361   : > { %936 = vmax.xlane.f32.xlu1 %v935_v44  ;;  %v2685_v45 = vpop.f32.mrf.mxu1 }
 0x3ea   : > { %v937_v46 = vpop.xlane.xlu1 %936 }
 0x3eb   : > { %v938_v47 = vsub.f32 %v934_v42, %v937_v46  ;;  %v2551_v46 = vld [vmem:[%s3072_s25 + $0x18] sm:$0x7f] }
 0x3ed   : > { %v939_v48 = vmul.f32 1.442695, %v938_v47 }
 0x3ef   : > { %2860 = vpow2.f32 %v939_v48 }
 0x3fc   : > { %v2861_v49 = vpop.eup %2860 }
 0x3fd   : > { %v941_v50 = vsel %vm814_vm2, %v2861_v49, 0.0 }
 0x3fe   : > { %942 = vadd.xlane.f32.xlu0 %v941_v50 }
 0x414   : > { %947 = vrot.lane.b32.xlu0 %v3052_v2, %s2905_s26 }
 0x418   : > { %1092 = vrot.lane.b32.xlu0 %v3052_v2, %s2906_s6  ;;  %s3396_s6 = sld [smem:[#allocation7_spill]] }
 0x41c   : > { %1090 = vrot.lane.b32.xlu0 %v3061_v8, %s2907_s27  ;;  %s2911_s27 = smov 40  }
 0x487   : > { %v943_v51 = vpop.xlane.xlu0 %942 }
 0x488   : > { %2862 = vrcp.f32 %v943_v51 }
 0x48b   : > { %v948_v52 = vpop.permute.xlu0 %947 }
 0x48c   : > { %v953_v53 = vand.u32 %v948_v52, %v3077_v20 }
 0x48e   : > { %2687 = vmatpush3.bf16.msra.mxu0 %v953_v53 }
 0x48f   : > { %2698 = vmatprep.subr.bf16.mxu0 %v2898_v0  ;;  %v1093_v62 = vpop.permute.xlu0 %1092 }
 0x490   : > { %v1098_v3 = vsel %vm766_vm1, %v1093_v62, 0 }
 0x493   : > { %v1091_v9 = vpop.permute.xlu0 %1090 }
 0x495   : > { %v2863_v54 = vpop.eup %2862 }
 0x496   : > { %v945_v56 = vmul.f32 %v2863_v54, %v2861_v49 }
 0x498   : > { %v946_v57 = vpack.c.bf16 %v945_v56, %v945_v56 }
 0x49a   : > { %2689 = vmatmul.mubr.msk.bf16.vlgmr.msra.gmra.mxu0 %vm829_vm5, %v946_v57 }
 0x49b   : > { %2699 = vmatpush3.bf16.msra.mxu0 %v1046_v58  ;;  %2700 = vmatprep.mubr.msk.bf16.mxu0 %vm2899_vm0, %v2898_v0 }
 0x49c   : > { %2710 = vmatprep.subr.bf16.mxu0 %v2898_v0 }
 0x4a2   : > { %2701 = vmatmul.mubr.msk.bf16.vlgmr.msra.gmra.mxu0 %vm766_vm1, %v880_v59 }
 0x4a3   : > { %2712 = vmatprep.mubr.msk.bf16.mxu0 %vm2899_vm0, %v2898_v0 }
 0x55a   : > { %v989_v63 = vpop.f32.mrf.mxu0 }
 0x55b   : > { %v995_v1 = vpack.c.bf16 %v989_v63, %v989_v63 }
 0x55c   : > { %v2690_v4 = vpop.f32.mrf.mxu0 }
 0x55d   : > { %2695 = vmatmul.mubr.msk.bf16.vlgmr.msra.gmra.mxu1 %vm766_vm1, %v995_v1 }
 0x55e   : > { %v992_v5 = vpop.f32.mrf.mxu0  ;;  %2705 = vmatpush3.bf16.xpose.msra.mxu1 %v1098_v3  ;;  %2706 = vmatprep.mubr.msk.bf16.mxu1 %vm2899_vm0, %v2898_v0 }
 0x55f   : > { %2716 = vmatprep.subr.bf16.mxu1 %v2898_v0 }
 0x560   : > { %v2691_v6 = vpop.f32.mrf.mxu0 }
 0x562   : > { %v3121_v7 = vpop.f32.mrf.mxu0 }
 0x564   : > { %v2702_v10 = vpop.f32.mrf.mxu0 }
 0x565   : > { %2707 = vmatmul.mubr.msk.bf16.vlgmr.msra.gmra.mxu1 %vm766_vm1, %v1091_v9 }
 0x566   : > { %v1085_v11 = vpop.f32.mrf.mxu0  ;;  %2718 = vmatprep.mubr.msk.bf16.mxu1 %vm2899_vm0, %v2898_v0  ;;  %2717 = vmatpush3.bf16.msra.mxu1 %v1206_v40 }
 0x567   : > { %2728 = vmatprep.subr.bf16.mxu1 %v2898_v0 }
 0x568   : > { %v2703_v12 = vpop.f32.mrf.mxu0 }
 0x61d   : > { %v3126_v13 = vpop.f32.mrf.mxu1 }
 0x61e   : > { %v1083_v59 = vadd.f32 %v3121_v7, %v3126_v13  ;;  %v751_v7 = vld [vmem:[%s3394_s29 + $0xc] sm:$0xf] }
 0x61f   : > { %v2696_v14 = vpop.f32.mrf.mxu1  ;;  %v1367_v10 = vsel %vm834_vm4, %v751_v7, 0 }
 0x621   : > { %v1039_v15 = vpop.f32.mrf.mxu1 }
 0x623   : > { %v2697_v16 = vpop.f32.mrf.mxu1 }
 0x625   : > { %v1134_v18 = vpop.f32.mrf.mxu1 }
 0x626   : > { %v1135_v19 = vadd.f32 %v2547_v17, %v1134_v18  ;;  %v2555_v18 = vld [vmem:[%s3396_s6] ss:$0 sm:$0xff]  ;;  %s3398_s6 = sld [smem:[#allocation9_spill]] }
 0x627   : > { %v2708_v21 = vpop.f32.mrf.mxu1 }
 0x628   : > { %v1140_v22 = vmul.f32 0.17677669, %v1135_v19 }
 0x629   : > { %v1137_v23 = vpop.f32.mrf.mxu1 }
 0x62a   : > { %v1141_v24 = vsel %vm814_vm2, %v1140_v22, -inf }
 0x62b   : > { %1142 = vmax.xlane.f32.xlu1 %v1141_v24  ;;  %v2709_v25 = vpop.f32.mrf.mxu1 }
 0x63c   : > { %1153 = vrot.lane.b32.xlu1 %v3052_v2, %s2908_s24  ;;  %s3395_s24 = sld [smem:[#allocation2_spill]] }
 0x640   : > { %1253 = vrot.lane.b32.xlu1 %v3052_v2, %s2909_s5 }
 0x642   : > { %s729_s5 = scalar_lea.vmem %s3395_s24, %s2533_s28 }
 0x643   : > { %v744_v15 = vld [vmem:[%s729_s5] sm:$0x7f]  ;;  %s3397_s5 = sld [smem:[#allocation8_spill]] }
 0x644   : > { %1251 = vrot.lane.b32.xlu1 %v3061_v8, %s2910_s1 }
 0x6b4   : > { %v1143_v26 = vpop.xlane.xlu1 %1142 }
 0x6b5   : > { %v1144_v27 = vsub.f32 %v1140_v22, %v1143_v26 }
 0x6b7   : > { %v1145_v28 = vmul.f32 1.442695, %v1144_v27 }
 0x6b8   : > { %v1154_v31 = vpop.permute.xlu1 %1153 }
 0x6b9   : > { %2864 = vpow2.f32 %v1145_v28  ;;  %v1159_v32 = vand.u32 %v1154_v31, %v3077_v20  ;;  %v2842_v31 = vld [vmem:[%s3366_s8 + $0x8] sm:$0xff]  }
 0x6bb   : > { %2711 = vmatpush3.bf16.msra.mxu0 %v1159_v32  ;;  %v2843_v32 = vld [vmem:[%s3366_s8] sm:$0xff]  }
 0x6bc   : > { %2722 = vmatprep.subr.bf16.mxu0 %v2898_v0  ;;  %v1254_v35 = vpop.permute.xlu1 %1253 }
 0x6bd   : > { %v1259_v8 = vsel %vm766_vm1, %v1254_v35, 0 }
 0x6c0   : > { %v1252_v38 = vpop.permute.xlu1 %1251 }
 0x6c6   : > { %v2865_v29 = vpop.eup %2864 }
 0x6c7   : > { %v1147_v30 = vsel %vm814_vm2, %v2865_v29, 0.0 }
 0x6c8   : > { %1148 = vadd.xlane.f32.xlu0 %v1147_v30 }
 0x751   : > { %v1149_v33 = vpop.xlane.xlu0 %1148 }
 0x752   : > { %2866 = vrcp.f32 %v1149_v33 }
 0x75f   : > { %v2867_v34 = vpop.eup %2866 }
 0x760   : > { %v1151_v36 = vmul.f32 %v2867_v34, %v2865_v29 }
 0x762   : > { %v1152_v37 = vpack.c.bf16 %v1151_v36, %v1151_v36 }
 0x764   : > { %2713 = vmatmul.mubr.msk.bf16.vlgmr.msra.gmra.mxu0 %vm829_vm5, %v1152_v37 }
 0x765   : > { %2723 = vmatpush3.bf16.xpose.msra.mxu0 %v1259_v8  ;;  %2724 = vmatprep.mubr.msk.bf16.mxu0 %vm2899_vm0, %v2898_v0  ;;  %v2556_v8 = vld [vmem:[%s3397_s5] ss:$0 sm:$0xff] }
 0x766   : > { %2734 = vmatprep.subr.bf16.mxu0 %v2898_v0 }
 0x76c   : > { %2725 = vmatmul.mubr.msk.bf16.vlgmr.msra.gmra.mxu0 %vm766_vm1, %v1252_v38  ;;  %v2557_v38 = vld [vmem:[%s3398_s6] ss:$0 sm:$0xff] }
 0x76d   : > { %2736 = vmatprep.mubr.msk.bf16.mxu0 %vm2899_vm0, %v2898_v0  ;;  %2735 = vmatpush3.bf16.msra.mxu0 %v1367_v10 }
 0x76e   : > { %2753 = vmatprep.subr.mxu0 %v2898_v0 }
 0x824   : > { %v1195_v41 = vpop.f32.mrf.mxu0 }
 0x825   : > { %v1201_v42 = vpack.c.bf16 %v1195_v41, %v1195_v41 }
 0x826   : > { %v2714_v43 = vpop.f32.mrf.mxu0 }
 0x827   : > { %2719 = vmatmul.mubr.msk.bf16.vlgmr.msra.gmra.mxu1 %vm766_vm1, %v1201_v42  ;;  %v2558_v42 = vld [vmem:[%s3367_s9] ss:$0 sm:$0xff] }
 0x828   : > { %v1198_v44 = vpop.f32.mrf.mxu0  ;;  %2730 = vmatprep.mubr.msk.bf16.mxu1 %vm2899_vm0, %v2898_v0 }
 0x82a   : > { %v2715_v45 = vpop.f32.mrf.mxu0 }
 0x82c   : > { %v1295_v47 = vpop.f32.mrf.mxu0 }
 0x82d   : > { %v1296_v48 = vadd.f32 %v2551_v46, %v1295_v47 }
 0x82e   : > { %v2726_v49 = vpop.f32.mrf.mxu0 }
 0x82f   : > { %v1301_v50 = vmul.f32 0.17677669, %v1296_v48 }
 0x830   : > { %v1298_v51 = vpop.f32.mrf.mxu0 }
 0x831   : > { %v1302_v52 = vsel %vm814_vm2, %v1301_v50, -inf }
 0x832   : > { %1303 = vmax.xlane.f32.xlu1 %v1302_v52  ;;  %v2727_v53 = vpop.f32.mrf.mxu0  ;;  %v1529_v52 = vlaneseq }
 0x834   : > { %v3207_v53 = vshrl.u32 %v1529_v52, 7 }
 0x836   : > { %v1781_v10 = vsub.s32 2, %v3207_v53 }
 0x8bb   : > { %v1304_v54 = vpop.xlane.xlu1 %1303 }
 0x8bc   : > { %v1305_v55 = vsub.f32 %v1301_v50, %v1304_v54  ;;  %v1532_v54 = vand.u32 127, %v1529_v52 }
 0x8be   : > { %v1306_v56 = vmul.f32 1.442695, %v1305_v55  ;;  %v1534_v55 = vsub.s32 %v1532_v54, %v3207_v53 }
 0x8c0   : > { %2868 = vpow2.f32 %v1306_v56  ;;  %vm1535_vm8 = vcmp.eq.s32.totalorder %v1534_v55, 4294967293  ;;  %vm1621_vm9 = vcmp.eq.s32.totalorder %v1534_v55, 4294967294  ;;  %vm1703_vm11 = vcmp.eq.s32.totalorder %v1534_v55, 4294967295 }
 0x8c1   : > { %vm1785_vm12 = vcmp.eq.s32.totalorder %v1534_v55, 0  ;;  %vm1867_vm13 = vcmp.eq.s32.totalorder %v1534_v55, 1  ;;  %vm1949_vm14 = vcmp.eq.s32.totalorder %v1534_v55, 2  ;;  %vm2031_vm15 = vcmp.eq.s32.totalorder %v1534_v55, 3 }
 0x8cd   : > { %v2869_v57 = vpop.eup %2868 }
 0x8ce   : > { %v1308_v58 = vsel %vm814_vm2, %v2869_v57, 0.0 }
 0x8cf   : > { %1309 = vadd.xlane.f32.xlu0 %v1308_v58  ;;  %v2563_v58 = vsel %vm1535_vm8, 1.0, %v2898_v0 }
 0x8e5   : > { %1314 = vrot.lane.b32.xlu0 %v3052_v2, %s2911_s27 }
 0x8e7   : > { %v1242_v60 = vpop.f32.mrf.mxu1 }
 0x8e8   : > { %v1248_v61 = vadd.f32 %v1242_v60, %v1083_v59  ;;  %v2566_v59 = vsel %vm1621_vm9, 1.0, %v2898_v0  ;;  %v2569_v60 = vsel %vm1703_vm11, 1.0, %v2898_v0 }
 0x8e9   : > { %v2720_v62 = vpop.f32.mrf.mxu1 }
 0x8ea   : > { %v2575_v62 = vsel %vm1867_vm13, 1.0, %v2898_v0 }
 0x8eb   : > { %v1245_v63 = vpop.f32.mrf.mxu1 }
 0x8ec   : > { %v2578_v63 = vsel %vm1949_vm14, 1.0, %v2898_v0 }
 0x8ed   : > { %v2721_v1 = vpop.f32.mrf.mxu1 }
 0x8ee   : > { %v2581_v1 = vsel %vm2031_vm15, 1.0, %v2898_v0 }
 0x958   : > { %v1310_v3 = vpop.xlane.xlu0 %1309 }
 0x959   : > { %2870 = vrcp.f32 %v1310_v3  ;;  %v2844_v3 = vld [vmem:[%s3371_s13 + $0x8] sm:$0xff]  }
 0x95c   : > { %v1315_v4 = vpop.permute.xlu0 %1314 }
 0x95d   : > { %v1320_v5 = vand.u32 %v1315_v4, %v3077_v20  ;;  %v2845_v4 = vld [vmem:[%s3371_s13] sm:$0xff]  }
 0x95f   : > { %2729 = vmatpush3.bf16.msra.mxu1 %v1320_v5  ;;  %v1617_v5 = vsub.s32 0, %v3207_v53 }
 0x960   : > { %2740 = vmatprep.subr.bf16.mxu1 %v2898_v0 }
 0x966   : > { %v2871_v6 = vpop.eup %2870 }
 0x967   : > { %v1312_v9 = vmul.f32 %v2871_v6, %v2869_v57  ;;  %v1699_v6 = vsub.s32 1, %v3207_v53 }
 0x969   : > { %v1313_v2 = vpack.c.bf16 %v1312_v9, %v1312_v9  ;;  %v1533_v9 = vld [vmem:[%s3368_s10] sm:$0x7f] }
 0x96a   : > { %v1700_v7 = vrot.slane %v1533_v9, %v1699_v6 }
 0x96b   : > { %2731 = vmatmul.mubr.msk.bf16.vlgmr.msra.gmra.mxu1 %vm829_vm5, %v1313_v2  ;;  %v1618_v2 = vrot.slane %v1533_v9, %v1617_v5 }
 0x96c   : > { %2744 = vmatprep.mubr.msk.bf16.mxu1 %vm2899_vm0, %v2898_v0  ;;  %2741 = vmatpush3.bf16.msra.mxu1 %v2842_v31 }
 0x96d   : > { %2742 = vmatprep.subr.bf16.mxu1 %v2898_v0 }
 0x970   : > { %2743 = vmatpush3.bf16.msra.mxu1 %v2843_v32 }
 0x971   : > { %2748 = vmatprep.subr.mxu1 %v2898_v0 }
 0xa2b   : > { %v1356_v20 = vpop.f32.mrf.mxu1 }
 0xa2c   : > { %v1362_v11 = vpack.c.bf16 %v1356_v20, %v1356_v20  ;;  %v1863_v20 = vsub.s32 3, %v3207_v53 }
 0xa2d   : > { %v2732_v12 = vpop.f32.mrf.mxu1 }
 0xa2e   : > { %2737 = vmatmul.mubr.msk.bf16.vlgmr.msra.gmra.mxu0 %vm766_vm1, %v1362_v11 }
 0xa2f   : > { %v1359_v13 = vpop.f32.mrf.mxu1  ;;  %2755 = vmatprep.mubr.msk.f32.mxu0 %vm2899_vm0, %v2898_v0 }
 0xa30   : > { %v1945_v13 = vsub.s32 4, %v3207_v53 }
 0xa31   : > { %v2733_v14 = vpop.f32.mrf.mxu1 }
 0xa32   : > { %v2027_v14 = vsub.s32 5, %v3207_v53 }
 0xaee   : > { %v1403_v16 = vpop.f32.mrf.mxu0 }
 0xaef   : > { %v1409_v17 = vadd.f32 %v1403_v16, %v1248_v61  ;;  %v2572_v61 = vsel %vm1785_vm12, 1.0, %v2898_v0 }
 0xaf0   : > { %v2738_v19 = vpop.f32.mrf.mxu0 }
 0xaf1   : > { %v1410_v21 = vadd.f32 %v1409_v17, %v744_v15  ;;  %v1782_v19 = vrot.slane %v1533_v9, %v1781_v10 }
 0xaf2   : > { %v1406_v22 = vpop.f32.mrf.mxu0 }
 0xaf3   : > { %v3180_v23 = vadd.f32 %v2555_v18, %v1410_v21  ;;  %v1864_v21 = vrot.slane %v1533_v9, %v1863_v20 }
 0xaf4   : > { %v2739_v24 = vpop.f32.mrf.mxu0 }
 0xaf5   : > { %v1422_v25 = vsel %vm1421_vm6, %v3180_v23, 0.0 }
 0xaf6   : > { %1423 = vadd.xlane.f32.xlu0 %v1422_v25  ;;  %v1946_v25 = vrot.slane %v1533_v9, %v1945_v13 }
 0xb7f   : > { %v1424_v26 = vpop.xlane.xlu0 %1423 }
 0xb80   : > { %v1426_v27 = vmul.f32 0.03125, %v1424_v26  ;;  %v2028_v26 = vrot.slane %v1533_v9, %v2027_v14  ;;  %v2592_v14 = vld [vmem:[%s3374_s16] ss:$0 sm:$0xff] }
 0xb82   : > { %v1427_v28 = vsub.f32 %v3180_v23, %v1426_v27 }
 0xb84   : > { %v1428_v29 = vmul.f32 %v1427_v28, %v1427_v28 }
 0xb86   : > { %v1429_v30 = vsel %vm1421_vm6, %v1428_v29, 0.0 }
 0xb87   : > { %1430 = vadd.xlane.f32.xlu1 %v1429_v30  ;;  %v2109_v30 = vsub.s32 6, %v3207_v53 }
 0xc10   : > { %v1431_v33 = vpop.xlane.xlu1 %1430 }
 0xc11   : > { %v1432_v34 = vmul.f32 0.03125, %v1431_v33 }
 0xc13   : > { %v1433_v35 = vadd.f32 1e-05, %v1432_v34 }
 0xc15   : > { %2872 = vrsqrt.f32 %v1433_v35 }
 0xc22   : > { %v2873_v36 = vpop.eup %2872 }
 0xc23   : > { %v1435_v37 = vmul.f32 %v2873_v36, %v1427_v28 }
 0xc25   : > { %v1442_v39 = vmul.f32 %v2556_v8, %v1435_v37 }
 0xc27   : > { %v1449_v40 = vadd.f32 %v2557_v38, %v1442_v39  ;;  %v2110_v38 = vrot.slane %v1533_v9, %v2109_v30 }
 0xc29   : > { %v1450_v41 = vpack.c.bf16 %v1449_v40, %v1449_v40 }
 0xc2b   : > { %2745 = vmatmul.mubr.msk.bf16.vlgmr.msra.gmra.mxu1 %vm1474_vm7, %v1450_v41 }
 0xc2c   : > { %2750 = vmatprep.mubr.msk.f32.mxu1 %vm2899_vm0, %v2898_v0 }
 0xceb   : > { %v1512_v43 = vpop.f32.mrf.mxu1 }
 0xcec   : > { %v1513_v44 = vadd.f32 %v2558_v42, %v1512_v43 }
 0xced   : > { %v2746_v45 = vpop.f32.mrf.mxu1 }
 0xcee   : > { %v2562_v46 = vmul.f32 -1.442695, %v1513_v44  ;;  %v2584_v45 = vld [vmem:[%s3369_s11] ss:$0 sm:$0xff] }
 0xcef   : > { %v1515_v47 = vpop.f32.mrf.mxu1 }
 0xcf0   : > { %2874 = vpow2.f32 %v2562_v46 }
 0xcf1   : > { %v2747_v48 = vpop.f32.mrf.mxu1 }
 0xcf2   : > { %v2585_v48 = vld [vmem:[%s3370_s12] ss:$0 sm:$0xff] }
 0xcfd   : > { %v2875_v49 = vpop.eup %2874 }
 0xcfe   : > { %v1521_v50 = vadd.f32 1.0, %v2875_v49 }
 0xd00   : > { %2876 = vrcp.f32 %v1521_v50 }
 0xd0d   : > { %v2877_v51 = vpop.eup %2876 }
 0xd0e   : > { %1525 = vrot.lane.b32.xlu1 %v2877_v51, %s2900_s2 }
 0xd80   : > { %v1526_v56 = vpop.permute.xlu1 %1525 }
 0xd81   : > { %v1528_v57 = vmul.f32 %v1526_v56, %v1513_v44 }
 0xd83   : > { %2749 = vmatpush3.msk.msra.mxu1 %vm1541_vm10, %v1528_v57  ;;  %2754 = vmatpush3.msk.msra.mxu0 %vm1541_vm10, %v1528_v57 }
 0xd84   : > { %2751 = vmatmul.mubr.msk.f32.vlgmr.msra.gmra.mxu1 %vm829_vm5, %v2563_v58  ;;  %2756 = vmatmul.mubr.msk.f32.vlgmr.msra.gmra.mxu0 %vm829_vm5, %v2566_v59 }
 0xd85   : > { %2758 = vmatprep.subr.mxu1 %v2898_v0  ;;  %2763 = vmatprep.subr.mxu0 %v2898_v0 }
 0xd86   : > { %2759 = vmatpush3.msk.msra.mxu1 %vm1541_vm10, %v1528_v57  ;;  %2764 = vmatpush3.msk.msra.mxu0 %vm1541_vm10, %v1528_v57 }
 0xd87   : > { %2760 = vmatprep.mubr.msk.f32.mxu1 %vm2899_vm0, %v2898_v0  ;;  %2765 = vmatprep.mubr.msk.f32.mxu0 %vm2899_vm0, %v2898_v0 }
 0xd88   : > { %2768 = vmatprep.subr.mxu1 %v2898_v0  ;;  %2773 = vmatprep.subr.mxu0 %v2898_v0 }
 0xd89   : > { %2761 = vmatmul.mubr.msk.f32.vlgmr.msra.gmra.mxu1 %vm829_vm5, %v2569_v60  ;;  %2766 = vmatmul.mubr.msk.f32.vlgmr.msra.gmra.mxu0 %vm829_vm5, %v2572_v61 }
 0xd8a   : > { %2769 = vmatpush3.msk.msra.mxu1 %vm1541_vm10, %v1528_v57  ;;  %2774 = vmatpush3.msk.msra.mxu0 %vm1541_vm10, %v1528_v57 }
 0xd8b   : > { %2770 = vmatprep.mubr.msk.f32.mxu1 %vm2899_vm0, %v2898_v0  ;;  %2778 = vmatprep.subr.mxu1 %v2898_v0 }
 0xd8c   : > { %2775 = vmatprep.mubr.msk.f32.mxu0 %vm2899_vm0, %v2898_v0  ;;  %2783 = vmatprep.subr.bf16.mxu0 %v2898_v0 }
 0xd8d   : > { %2771 = vmatmul.mubr.msk.f32.vlgmr.msra.gmra.mxu1 %vm829_vm5, %v2575_v62  ;;  %2776 = vmatmul.mubr.msk.f32.vlgmr.msra.gmra.mxu0 %vm829_vm5, %v2578_v63 }
 0xd8e   : > { %2779 = vmatpush3.msk.msra.mxu1 %vm1541_vm10, %v1528_v57  ;;  %2780 = vmatprep.mubr.msk.f32.mxu1 %vm2899_vm0, %v2898_v0  ;;  %v2587_v57 = vld [vmem:[%s3372_s14] ss:$0 sm:$0xff] }
 0xd8f   : > { %2787 = vmatprep.mubr.msk.bf16.mxu0 %vm2899_vm0, %v2898_v0  ;;  %2791 = vmatprep.subr.bf16.mxu1 %v2898_v0 }
 0xd90   : > { %2784 = vmatpush3.bf16.msra.mxu0 %v2844_v3 }
 0xd91   : > { %2781 = vmatmul.mubr.msk.f32.vlgmr.msra.gmra.mxu1 %vm829_vm5, %v2581_v1  ;;  %2785 = vmatprep.subr.bf16.mxu0 %v2898_v0 }
 0xd92   : > { %2795 = vmatprep.mubr.msk.bf16.mxu1 %vm2899_vm0, %v2898_v0 }
 0xd94   : > { %2786 = vmatpush3.bf16.msra.mxu0 %v2845_v4 }
 0xd95   : > { %2799 = vmatprep.subr.bf16.mxu0 %v2898_v0 }
 0xe44   : > { %v1611_v11 = vpop.f32.mrf.mxu1  ;;  %v1693_v12 = vpop.f32.mrf.mxu0 }
 0xe45   : > { %v1619_v15 = vmul.f32 %v1618_v2, %v1611_v11  ;;  %v1701_v17 = vmul.f32 %v1700_v7, %v1693_v12  ;;  %v2846_v2 = vld [vmem:[%s3375_s17 + $0x8] sm:$0xff]   ;;  %v2591_v12 = vld [vmem:[%s3373_s15] ss:$0 sm:$0xff] }
 0xe46   : > { %v2752_v16 = vpop.f32.mrf.mxu1  ;;  %v2757_v18 = vpop.f32.mrf.mxu0  ;;  %2792 = vmatpush3.bf16.msra.mxu1 %v2846_v2 }
 0xe47   : > { %v1702_v27 = vadd.f32 %v1701_v17, %v1619_v15  ;;  %2793 = vmatprep.subr.bf16.mxu1 %v2898_v0  ;;  %v2848_v18 = vld [vmem:[%s3377_s19 + $0x38] sm:$0xff]  }
 0xe49   : > { %v1775_v22 = vpop.f32.mrf.mxu1  ;;  %v1857_v24 = vpop.f32.mrf.mxu0 }
 0xe4a   : > { %v1783_v28 = vmul.f32 %v1782_v19, %v1775_v22  ;;  %v1865_v29 = vmul.f32 %v1864_v21, %v1857_v24  ;;  %v2849_v19 = vld [vmem:[%s3377_s19 + $0x30] sm:$0xff]   ;;  %v2850_v21 = vld [vmem:[%s3377_s19 + $0x28] sm:$0xff]   ;;  %v2851_v22 = vld [vmem:[%s3377_s19 + $0x20] sm:$0xff]  }
 0xe4b   : > { %v2762_v31 = vpop.f32.mrf.mxu1  ;;  %v2767_v32 = vpop.f32.mrf.mxu0  ;;  %v2852_v24 = vld [vmem:[%s3377_s19 + $0x18] sm:$0xff]  }
 0xe4c   : > { %v1784_v33 = vadd.f32 %v1783_v28, %v1702_v27  ;;  %v2855_v27 = vld [vmem:[%s3377_s19] sm:$0xff]  }
 0xe4d   : > { %v1939_v34 = vpop.f32.mrf.mxu1  ;;  %v2021_v35 = vpop.f32.mrf.mxu0  ;;  %v2593_v28 = vld [vmem:[%s3376_s18] ss:$0 sm:$0xff] }
 0xe4e   : > { %v1866_v36 = vadd.f32 %v1865_v29, %v1784_v33  ;;  %v1947_v8 = vmul.f32 %v1946_v25, %v1939_v34  ;;  %v2029_v37 = vmul.f32 %v2028_v26, %v2021_v35  ;;  %v2853_v25 = vld [vmem:[%s3377_s19 + $0x10] sm:$0xff]   ;;  %v2854_v26 = vld [vmem:[%s3377_s19 + $0x8] sm:$0xff]  }
 0xe4f   : > { %v2772_v39 = vpop.f32.mrf.mxu1  ;;  %v2777_v40 = vpop.f32.mrf.mxu0 }
 0xe50   : > { %v1948_v41 = vadd.f32 %v1947_v8, %v1866_v36 }
 0xe51   : > { %v2103_v42 = vpop.f32.mrf.mxu1 }
 0xe52   : > { %v2030_v43 = vadd.f32 %v2029_v37, %v1948_v41  ;;  %v2111_v44 = vmul.f32 %v2110_v38, %v2103_v42  ;;  %v2598_v38 = vld [vmem:[%s3378_s20] ss:$0 sm:$0xff] }
 0xe53   : > { %v2782_v46 = vpop.f32.mrf.mxu1 }
 0xe54   : > { %v2112_v47 = vadd.f32 %v2111_v44, %v2030_v43 }
 0xe56   : > { %v2120_v49 = vmul.f32 %v2584_v45, %v2112_v47 }
 0xe58   : > { %v2128_v50 = vadd.f32 %v2585_v48, %v2120_v49 }
 0xe5a   : > { %v2586_v51 = vmul.f32 -1.442695, %v2128_v50 }
 0xe5c   : > { %2878 = vpow2.f32 %v2586_v51 }
 0xe69   : > { %v2879_v52 = vpop.eup %2878 }
 0xe6a   : > { %v2132_v53 = vadd.f32 1.0, %v2879_v52 }
 0xe6c   : > { %2880 = vrcp.f32 %v2132_v53 }
 0xe79   : > { %v2881_v54 = vpop.eup %2880 }
 0xe7a   : > { %v2135_v55 = vmul.f32 %v2881_v54, %v2128_v50 }
 0xe7c   : > { %v2136_v56 = vpack.c.bf16 %v2135_v55, %v2135_v55 }
 0xe7e   : > { %2788 = vmatmul.mubr.msk.bf16.vlgmr.msra.gmra.mxu0 %vm1474_vm7, %v2136_v56  ;;  %v2607_v56 = vld [vmem:[%s3379_s21] ss:$0 sm:$0xff] }
 0xe7f   : > { %2815 = vmatprep.mubr.msk.bf16.mxu0 %vm2899_vm0, %v2898_v0  ;;  %2800 = vmatpush3.bf16.msra.mxu0 %v2848_v18 }
 0xe80   : > { %2801 = vmatprep.subr.bf16.mxu0 %v2898_v0 }
 0xe83   : > { %2802 = vmatpush3.bf16.msra.mxu0 %v2849_v19 }
 0xe84   : > { %2803 = vmatprep.subr.bf16.mxu0 %v2898_v0 }
 0xe87   : > { %2804 = vmatpush3.bf16.msra.mxu0 %v2850_v21 }
 0xe88   : > { %2805 = vmatprep.subr.bf16.mxu0 %v2898_v0 }
 0xe8b   : > { %2806 = vmatpush3.bf16.msra.mxu0 %v2851_v22 }
 0xe8c   : > { %2807 = vmatprep.subr.bf16.mxu0 %v2898_v0 }
 0xe8f   : > { %2808 = vmatpush3.bf16.msra.mxu0 %v2852_v24 }
 0xe90   : > { %2809 = vmatprep.subr.bf16.mxu0 %v2898_v0 }
 0xe93   : > { %2810 = vmatpush3.bf16.msra.mxu0 %v2853_v25 }
 0xe94   : > { %2811 = vmatprep.subr.bf16.mxu0 %v2898_v0 }
 0xe97   : > { %2812 = vmatpush3.bf16.msra.mxu0 %v2854_v26 }
 0xe98   : > { %2813 = vmatprep.subr.bf16.mxu0 %v2898_v0 }
 0xe9b   : > { %2814 = vmatpush3.bf16.msra.mxu0 %v2855_v27 }
 0xf3e   : > { %v2197_v58 = vpop.f32.mrf.mxu0 }
 0xf3f   : > { %v2198_v59 = vadd.f32 %v2587_v57, %v2197_v58  ;;  %v2608_v58 = vld [vmem:[%s3380_s22] ss:$0 sm:$0xff] }
 0xf40   : > { %v2789_v60 = vpop.f32.mrf.mxu0 }
 0xf41   : > { %v3283_v61 = vadd.f32 %v2198_v59, %v3180_v23  ;;  %v2847_v23 = vld [vmem:[%s3375_s17] sm:$0xff]  }
 0xf42   : > { %v2200_v62 = vpop.f32.mrf.mxu0  ;;  %2794 = vmatpush3.bf16.msra.mxu1 %v2847_v23 }
 0xf43   : > { %v2228_v63 = vsel %vm1421_vm6, %v3283_v61, 0.0 }
 0xf44   : > { %2229 = vadd.xlane.f32.xlu1 %v2228_v63  ;;  %v2790_v1 = vpop.f32.mrf.mxu0 }
 0xfcd   : > { %v2230_v3 = vpop.xlane.xlu1 %2229 }
 0xfce   : > { %v2231_v4 = vmul.f32 0.03125, %v2230_v3 }
 0xfd0   : > { %v2232_v5 = vsub.f32 %v3283_v61, %v2231_v4 }
 0xfd2   : > { %v2233_v6 = vmul.f32 %v2232_v5, %v2232_v5 }
 0xfd4   : > { %v2234_v9 = vsel %vm1421_vm6, %v2233_v6, 0.0 }
 0xfd5   : > { %2235 = vadd.xlane.f32.xlu0 %v2234_v9 }
0x105e   : > { %v2236_v7 = vpop.xlane.xlu0 %2235 }
0x105f   : > { %v2237_v10 = vmul.f32 0.03125, %v2236_v7 }
0x1061   : > { %v2238_v20 = vadd.f32 1e-05, %v2237_v10 }
0x1063   : > { %2882 = vrsqrt.f32 %v2238_v20 }
0x1070   : > { %v2883_v11 = vpop.eup %2882 }
0x1071   : > { %v2240_v13 = vmul.f32 %v2883_v11, %v2232_v5 }
0x1073   : > { %v2247_v15 = vmul.f32 %v2591_v12, %v2240_v13 }
0x1075   : > { %v2254_v16 = vadd.f32 %v2592_v14, %v2247_v15 }
0x1077   : > { %v2255_v17 = vpack.c.bf16 %v2254_v16, %v2254_v16 }
0x1079   : > { %2796 = vmatmul.mubr.msk.bf16.vlgmr.msra.gmra.mxu1 %vm1474_vm7, %v2255_v17 }
0x1139   : > { %v2311_v29 = vpop.f32.mrf.mxu1 }
0x113a   : > { %v2312_v30 = vadd.f32 %v2593_v28, %v2311_v29 }
0x113b   : > { %v2797_v31 = vpop.f32.mrf.mxu1 }
0x113c   : > { %v2597_v32 = vmul.f32 -1.442695, %v2312_v30 }
0x113d   : > { %v2314_v33 = vpop.f32.mrf.mxu1 }
0x113e   : > { %2884 = vpow2.f32 %v2597_v32 }
0x113f   : > { %v2798_v34 = vpop.f32.mrf.mxu1 }
0x114b   : > { %v2885_v35 = vpop.eup %2884 }
0x114c   : > { %v2320_v36 = vadd.f32 1.0, %v2885_v35 }
0x114e   : > { %2886 = vrcp.f32 %v2320_v36 }
0x115b   : > { %v2887_v0 = vpop.eup %2886 }
0x115c   : > { %v2323_v8 = vmul.f32 %v2887_v0, %v2312_v30 }
0x115e   : > { %v2324_v37 = vpack.c.bf16 %v2323_v8, %v2323_v8 }
0x1160   : > { %2816 = vmatmul.mubr.bf16.vlgmr.msra.gmra.mxu0 %v2324_v37 }
0x1220   : > { %v2413_v39 = vpop.f32.mrf.mxu0 }
0x1221   : > { %v2414_v40 = vadd.f32 %v2598_v38, %v2413_v39 }
0x1222   : > { %v2817_v41 = vpop.f32.mrf.mxu0 }
0x1223   : > { %v2419_v42 = vmul.f32 0.5, %v2414_v40 }
0x1224   : > { %v2416_v43 = vpop.f32.mrf.mxu0 }
0x1225   : > { %v2420_v44 = vadd.f32 %v2419_v42, %v3283_v61 }
0x1226   : > { %v2818_v45 = vpop.f32.mrf.mxu0 }
0x1227   : > { %v2423_v46 = vsel %vm1421_vm6, %v2420_v44, 0.0 }
0x1228   : > { %2424 = vadd.xlane.f32.xlu0 %v2423_v46 }
0x12b1   : > { %v2425_v47 = vpop.xlane.xlu0 %2424 }
0x12b2   : > { %v2426_v48 = vmul.f32 0.03125, %v2425_v47 }
0x12b4   : > { %v2427_v49 = vsub.f32 %v2420_v44, %v2426_v48 }
0x12b6   : > { %v2428_v50 = vmul.f32 %v2427_v49, %v2427_v49 }
0x12b8   : > { %v2429_v51 = vsel %vm1421_vm6, %v2428_v50, 0.0 }
0x12b9   : > { %2430 = vadd.xlane.f32.xlu0 %v2429_v51 }
0x1342   : > { %v2431_v52 = vpop.xlane.xlu0 %2430 }
0x1343   : > { %v2432_v53 = vmul.f32 0.03125, %v2431_v52 }
0x1345   : > { %v2433_v54 = vadd.f32 1e-05, %v2432_v53 }
0x1347   : > { %2888 = vrsqrt.f32 %v2433_v54 }
0x1354   : > { %v2889_v55 = vpop.eup %2888 }
0x1355   : > { %v2435_v57 = vmul.f32 %v2889_v55, %v2427_v49 }
0x1357   : > { %v2442_v59 = vmul.f32 %v2607_v56, %v2435_v57 }
0x1359   : > { %v2449_v60 = vadd.f32 %v2608_v58, %v2442_v59 }
0x135b   : > { %2450 = vst.msk [vmem:[%s742_s3] sm:$0x7f] %vm1421_vm6, %v2449_v60 }
0x135c PF: > { %s33_s4 = sadd.s32 1, %s2896_s4  }
0x135d   : > { %p30_p4 = scmp.ge.s32.totalorder %s33_s4, 4  }
0x135f   :  { %32 = sbr.rel (!%p30_p4) target bundleno = 9 (0x9), region = 151 }

</bundles_post_ra>
